<compile_context>
chip_gen: v7x
topology: tpu7x:2x2x1
jax: 0.10.0
libtpu: 0.0.40
codegen_flags: <defaults>
</compile_context>

<pallas_src>
import functools
import math

import jax
import jax.numpy as jnp
from jax import lax
from jax.experimental import pallas as pl
from jax.experimental.pallas import tpu as pltpu


# ----------------------------- kernel -----------------------------


def _layernorm(x, g, b, eps=1e-5):
    mu = jnp.mean(x, axis=-1, keepdims=True)
    var = jnp.mean((x - mu) ** 2, axis=-1, keepdims=True)
    return (x - mu) * lax.rsqrt(var + eps) * g + b


def fused_forward_kernel(x_ref, pos_ref, amask_ref, wi_ref, bi_ref,
                         wqkv_ref, bqkv_ref, wo_ref, bo_ref,
                         ln1g_ref, ln1b_ref, ln2g_ref, ln2b_ref,
                         w1_ref, b1_ref, w2_ref, b2_ref,
                         wout_ref, bout_ref,
                         o_ref, *, num_heads, pred_len, batch):
    f32 = jnp.float32
    bf16 = jnp.bfloat16

    x_full = x_ref[...].astype(f32)                       # (B*Lt, C) rows = batch-major
    R, C = x_full.shape
    Lt = R // batch
    D = wi_ref.shape[1]
    depth = wqkv_ref.shape[0]
    hd = D // num_heads
    scale = 1.0 / math.sqrt(hd)
    li = Lt - pred_len - 1                                # last observed step (per batch)

    # ---- LOCF (last observed value) subtraction, static unroll over batch ----
    locf = [x_full[b * Lt + li: b * Lt + li + 1, :] for b in range(batch)]   # (1, C) each
    locf_rows = jnp.concatenate(
        [jnp.broadcast_to(locf[b], (Lt, C)) for b in range(batch)], axis=0)  # (R, C)
    xc = x_full - locf_rows

    # ---- input projection on the VPU (contraction dim C is tiny) + positional emb ----
    h = pos_ref[...] + bi_ref[...]                        # (R, D) f32
    for c in range(C):                                    # static unroll over channels
        h = h + xc[:, c:c + 1] * wi_ref[c:c + 1, :]

    amask = amask_ref[...]                                # (R, R) block-diagonal additive mask

    # ---- encoder layers (pre-norm, relu, eval mode), static unroll over depth ----
    for l in range(depth):
        # ---- self-attention block: h = h + MHA(LN1(h)) ----
        xn = _layernorm(h, ln1g_ref[l], ln1b_ref[l])
        qkv = jnp.dot(xn.astype(bf16), wqkv_ref[l],
                      preferred_element_type=f32) + bqkv_ref[l]            # (R, 3D) f32
        qkv_bf = qkv.astype(bf16)                         # single hoisted cast per layer

        heads = []
        for hh in range(num_heads):                       # static unroll over heads
            q0 = hh * hd
            qh = qkv_bf[:, q0:q0 + hd]                    # (R, hd) bf16
            kh = qkv_bf[:, D + q0:D + q0 + hd]
            vh = qkv_bf[:, 2 * D + q0:2 * D + q0 + hd]
            # scores for the whole folded batch at once; off-batch pairs masked out
            s = lax.dot_general(qh, kh, (((1,), (1,)), ((), ())),
                                preferred_element_type=f32) * scale + amask  # (R, R)
            s = s - jnp.max(s, axis=-1, keepdims=True)
            p = jnp.exp(s)                                # un-normalized probabilities
            inv = pl.reciprocal(jnp.sum(p, axis=-1, keepdims=True), approx=True)
            # deferred normalization: scale the (R, hd) PV result, not the (R, R) probs
            oh = jnp.dot(p.astype(bf16), vh, preferred_element_type=f32) * inv
            heads.append(oh)

        # heads concatenated along lanes -> ONE Wo matmul instead of per-head accumulation
        attn_heads = jnp.concatenate(heads, axis=1).astype(bf16)            # (R, D)
        attn = jnp.dot(attn_heads, wo_ref[l], preferred_element_type=f32) + bo_ref[l]
        h = h + attn

        # ---- feed-forward block: h = h + FFN(LN2(h)) ----
        xn2 = _layernorm(h, ln2g_ref[l], ln2b_ref[l])
        f1 = jnp.dot(xn2.astype(bf16), w1_ref[l],
                     preferred_element_type=f32) + b1_ref[l]
        f1 = jnp.maximum(f1, 0.0)                         # relu
        f2 = jnp.dot(f1.astype(bf16), w2_ref[l],
                     preferred_element_type=f32) + b2_ref[l]
        h = h + f2

    # ---- output projection on the prediction windows + LOCF add-back ----
    hp = jnp.concatenate(
        [h[b * Lt + Lt - pred_len:(b + 1) * Lt, :] for b in range(batch)], axis=0)  # (B*P, D)
    locf_out = jnp.concatenate(
        [jnp.broadcast_to(locf[b], (pred_len, C)) for b in range(batch)], axis=0)    # (B*P, C)
    y = jnp.dot(hp.astype(bf16), wout_ref[...], preferred_element_type=f32)
    y = y + bout_ref[...] + locf_out
    o_ref[...] = y.astype(o_ref.dtype)                    # single lane-contiguous store


# ----------------------------- wrapper -----------------------------


def forward(x, params, *, pred_len, num_heads):
    B, Lin, C = x.shape
    Lt = Lin + pred_len
    bf16 = jnp.bfloat16

    out_emb = jnp.broadcast_to(params["output_embedding"], (B, pred_len, C))
    x_cat = jnp.concatenate([x, out_emb], axis=1)         # (B, Lt, C)
    x_flat = x_cat.reshape(B * Lt, C)                     # batch folded into rows

    pos = params["positional_embedding"][0, :Lt, :]       # (Lt, D)
    pos_tiled = jnp.tile(pos, (B, 1))                     # (B*Lt, D)

    # block-diagonal additive mask: rows of different batches may not attend to each other
    bid = jnp.repeat(jnp.arange(B, dtype=jnp.int32), Lt)  # (B*Lt,)
    amask = jnp.where(bid[:, None] == bid[None, :], 0.0, -1e30).astype(jnp.float32)

    kernel = functools.partial(fused_forward_kernel,
                               num_heads=num_heads, pred_len=pred_len, batch=B)

    vmem = pl.BlockSpec(memory_space=pltpu.MemorySpace.VMEM)

    y_flat = pl.pallas_call(
        kernel,
        out_shape=jax.ShapeDtypeStruct((B * pred_len, C), jnp.float32),
        in_specs=[vmem] * 19,
        out_specs=vmem,
    )(x_flat, pos_tiled, amask,
      params["wi"], params["bi"],
      params["wqkv"].astype(bf16), params["bqkv"],
      params["wo_attn"].astype(bf16), params["bo_attn"],
      params["ln1g"], params["ln1b"], params["ln2g"], params["ln2b"],
      params["w1"].astype(bf16), params["b1"],
      params["w2"].astype(bf16), params["b2"],
      params["wout"].astype(bf16), params["bout"])

    return y_flat.reshape(B, pred_len, C)


# ----------------------------- parameter init -----------------------------


def _linear(key, fan_in, fan_out):
    kw, kb = jax.random.split(key)
    lim = 1.0 / math.sqrt(fan_in)
    w = jax.random.uniform(kw, (fan_in, fan_out), jnp.float32, -lim, lim)
    b = jax.random.uniform(kb, (1, fan_out), jnp.float32, -lim, lim)
    return w, b


def init_params(key, *, pred_len, C, D, mlp_ratio, depth):
    Dff = mlp_ratio * D
    keys = jax.random.split(key, 4 + depth)
    params = {
        "positional_embedding": 0.01 * jax.random.normal(keys[0], (1, 8192, D), jnp.float32),
        "output_embedding": 0.01 * jax.random.normal(keys[1], (1, pred_len, C), jnp.float32),
    }
    params["wi"], params["bi"] = _linear(keys[2], C, D)
    params["wout"], params["bout"] = _linear(keys[3], D, C)

    wqkv, bqkv, wo, bo = [], [], [], []
    ln1g, ln1b, ln2g, ln2b = [], [], [], []
    w1s, b1s, w2s, b2s = [], [], [], []
    for i in range(depth):
        ks = jax.random.split(keys[4 + i], 6)
        wq, bq = _linear(ks[0], D, D)
        wk, bk = _linear(ks[1], D, D)
        wv, bv = _linear(ks[2], D, D)
        wo_l, bo_l = _linear(ks[3], D, D)
        w1_l, b1_l = _linear(ks[4], D, Dff)
        w2_l, b2_l = _linear(ks[5], Dff, D)
        wqkv.append(jnp.concatenate([wq, wk, wv], axis=1))   # (D, 3D) fused QKV
        bqkv.append(jnp.concatenate([bq, bk, bv], axis=1))   # (1, 3D)
        wo.append(wo_l); bo.append(bo_l)
        w1s.append(w1_l); b1s.append(b1_l)
        w2s.append(w2_l); b2s.append(b2_l)
        ln1g.append(jnp.ones((1, D), jnp.float32)); ln1b.append(jnp.zeros((1, D), jnp.float32))
        ln2g.append(jnp.ones((1, D), jnp.float32)); ln2b.append(jnp.zeros((1, D), jnp.float32))

    params.update(
        wqkv=jnp.stack(wqkv), bqkv=jnp.stack(bqkv),
        wo_attn=jnp.stack(wo), bo_attn=jnp.stack(bo),
        ln1g=jnp.stack(ln1g), ln1b=jnp.stack(ln1b),
        ln2g=jnp.stack(ln2g), ln2b=jnp.stack(ln2b),
        w1=jnp.stack(w1s), b1=jnp.stack(b1s),
        w2=jnp.stack(w2s), b2=jnp.stack(b2s))
    return params


# ----------------------------- main -----------------------------


if __name__ == "__main__":
    # small shapes consistent with the module's config
    B, seq_len, pred_len = 2, 16, 8
    C, D, H, mlp_ratio, depth = 4, 32, 4, 4, 2

    key = jax.random.PRNGKey(0)
    k_param, k_x = jax.random.split(key)
    params = init_params(k_param, pred_len=pred_len, C=C, D=D,
                         mlp_ratio=mlp_ratio, depth=depth)
    x = jax.random.normal(k_x, (B, seq_len, C), jnp.float32)

    fwd = jax.jit(functools.partial(forward, pred_len=pred_len, num_heads=H))
    y = fwd(x, params)
    y = jax.block_until_ready(y)
    assert y.shape == (B, pred_len, C), y.shape
    assert jnp.all(jnp.isfinite(y))
    print("KERNEL_OK")
</pallas_src>

<mosaic_0001>
module attributes {stable_mosaic.version = 11 : i64} {
  func.func @fused_forward_kernel(%arg0: memref<48x4xf32, #tpu.memory_space<vmem>>, %arg1: memref<48x32xf32, #tpu.memory_space<vmem>>, %arg2: memref<48x48xf32, #tpu.memory_space<vmem>>, %arg3: memref<4x32xf32, #tpu.memory_space<vmem>>, %arg4: memref<1x32xf32, #tpu.memory_space<vmem>>, %arg5: memref<2x32x96xbf16, #tpu.memory_space<vmem>>, %arg6: memref<2x1x96xf32, #tpu.memory_space<vmem>>, %arg7: memref<2x32x32xbf16, #tpu.memory_space<vmem>>, %arg8: memref<2x1x32xf32, #tpu.memory_space<vmem>>, %arg9: memref<2x1x32xf32, #tpu.memory_space<vmem>>, %arg10: memref<2x1x32xf32, #tpu.memory_space<vmem>>, %arg11: memref<2x1x32xf32, #tpu.memory_space<vmem>>, %arg12: memref<2x1x32xf32, #tpu.memory_space<vmem>>, %arg13: memref<2x32x128xbf16, #tpu.memory_space<vmem>>, %arg14: memref<2x1x128xf32, #tpu.memory_space<vmem>>, %arg15: memref<2x128x32xbf16, #tpu.memory_space<vmem>>, %arg16: memref<2x1x32xf32, #tpu.memory_space<vmem>>, %arg17: memref<32x4xbf16, #tpu.memory_space<vmem>>, %arg18: memref<1x4xf32, #tpu.memory_space<vmem>>, %arg19: memref<16x4xf32, #tpu.memory_space<vmem>>) attributes {dimension_semantics = [], scalar_prefetch = 0 : i64, scratch_operands = 0 : i64, tpu.core_type = #tpu.core_type<tc>} {
    %c0 = arith.constant 0 : index
    %c0_0 = arith.constant 0 : index
    %0 = vector.load %arg0[%c0, %c0_0] : memref<48x4xf32, #tpu.memory_space<vmem>>, vector<48x4xf32>
    %1 = vector.extract_strided_slice %0 {offsets = [15, 0], sizes = [1, 4], strides = [1, 1]} : vector<48x4xf32> to vector<1x4xf32>
    %2 = vector.extract_strided_slice %0 {offsets = [39, 0], sizes = [1, 4], strides = [1, 1]} : vector<48x4xf32> to vector<1x4xf32>
    %3 = vector.shape_cast %1 : vector<1x4xf32> to vector<1x4xf32>
    %4 = vector.broadcast %3 : vector<1x4xf32> to vector<24x4xf32>
    %5 = vector.shape_cast %2 : vector<1x4xf32> to vector<1x4xf32>
    %6 = vector.broadcast %5 : vector<1x4xf32> to vector<24x4xf32>
    %7 = tpu.concatenate %4, %6 in 0 : vector<24x4xf32>, vector<24x4xf32> -> vector<48x4xf32>
    %8 = arith.subf %0, %7 : vector<48x4xf32>
    %c0_1 = arith.constant 0 : index
    %c0_2 = arith.constant 0 : index
    %9 = vector.load %arg1[%c0_1, %c0_2] : memref<48x32xf32, #tpu.memory_space<vmem>>, vector<48x32xf32>
    %c0_3 = arith.constant 0 : index
    %c0_4 = arith.constant 0 : index
    %10 = vector.load %arg4[%c0_3, %c0_4] : memref<1x32xf32, #tpu.memory_space<vmem>>, vector<1x32xf32>
    %11 = vector.broadcast %10 : vector<1x32xf32> to vector<48x32xf32>
    %12 = arith.addf %9, %11 : vector<48x32xf32>
    %13 = vector.extract_strided_slice %8 {offsets = [0, 0], sizes = [48, 1], strides = [1, 1]} : vector<48x4xf32> to vector<48x1xf32>
    %c0_5 = arith.constant 0 : index
    %c0_6 = arith.constant 0 : index
    %14 = vector.load %arg3[%c0_5, %c0_6] : memref<4x32xf32, #tpu.memory_space<vmem>>, vector<1x32xf32>
    %15 = vector.broadcast %13 : vector<48x1xf32> to vector<48x32xf32>
    %16 = vector.broadcast %14 : vector<1x32xf32> to vector<48x32xf32>
    %17 = arith.mulf %15, %16 : vector<48x32xf32>
    %18 = arith.addf %12, %17 : vector<48x32xf32>
    %19 = vector.extract_strided_slice %8 {offsets = [0, 1], sizes = [48, 1], strides = [1, 1]} : vector<48x4xf32> to vector<48x1xf32>
    %c1 = arith.constant 1 : index
    %c0_7 = arith.constant 0 : index
    %20 = vector.load %arg3[%c1, %c0_7] : memref<4x32xf32, #tpu.memory_space<vmem>>, vector<1x32xf32>
    %21 = vector.broadcast %19 : vector<48x1xf32> to vector<48x32xf32>
    %22 = vector.broadcast %20 : vector<1x32xf32> to vector<48x32xf32>
    %23 = arith.mulf %21, %22 : vector<48x32xf32>
    %24 = arith.addf %18, %23 : vector<48x32xf32>
    %25 = vector.extract_strided_slice %8 {offsets = [0, 2], sizes = [48, 1], strides = [1, 1]} : vector<48x4xf32> to vector<48x1xf32>
    %c2 = arith.constant 2 : index
    %c0_8 = arith.constant 0 : index
    %26 = vector.load %arg3[%c2, %c0_8] : memref<4x32xf32, #tpu.memory_space<vmem>>, vector<1x32xf32>
    %27 = vector.broadcast %25 : vector<48x1xf32> to vector<48x32xf32>
    %28 = vector.broadcast %26 : vector<1x32xf32> to vector<48x32xf32>
    %29 = arith.mulf %27, %28 : vector<48x32xf32>
    %30 = arith.addf %24, %29 : vector<48x32xf32>
    %31 = vector.extract_strided_slice %8 {offsets = [0, 3], sizes = [48, 1], strides = [1, 1]} : vector<48x4xf32> to vector<48x1xf32>
    %c3 = arith.constant 3 : index
    %c0_9 = arith.constant 0 : index
    %32 = vector.load %arg3[%c3, %c0_9] : memref<4x32xf32, #tpu.memory_space<vmem>>, vector<1x32xf32>
    %33 = vector.broadcast %31 : vector<48x1xf32> to vector<48x32xf32>
    %34 = vector.broadcast %32 : vector<1x32xf32> to vector<48x32xf32>
    %35 = arith.mulf %33, %34 : vector<48x32xf32>
    %36 = arith.addf %30, %35 : vector<48x32xf32>
    %c0_10 = arith.constant 0 : index
    %c0_11 = arith.constant 0 : index
    %37 = vector.load %arg2[%c0_10, %c0_11] : memref<48x48xf32, #tpu.memory_space<vmem>>, vector<48x48xf32>
    %c0_12 = arith.constant 0 : index
    %c0_13 = arith.constant 0 : index
    %c0_14 = arith.constant 0 : index
    %38 = vector.load %arg9[%c0_12, %c0_13, %c0_14] : memref<2x1x32xf32, #tpu.memory_space<vmem>>, vector<1x1x32xf32>
    %39 = vector.shape_cast %38 : vector<1x1x32xf32> to vector<1x32xf32>
    %c0_15 = arith.constant 0 : index
    %c0_16 = arith.constant 0 : index
    %c0_17 = arith.constant 0 : index
    %40 = vector.load %arg10[%c0_15, %c0_16, %c0_17] : memref<2x1x32xf32, #tpu.memory_space<vmem>>, vector<1x1x32xf32>
    %41 = vector.shape_cast %40 : vector<1x1x32xf32> to vector<1x32xf32>
    %cst = arith.constant dense<0.000000e+00> : vector<48xf32>
    %42 = vector.multi_reduction <add>, %36, %cst [1] : vector<48x32xf32> to vector<48xf32>
    %43 = vector.shape_cast %42 : vector<48xf32> to vector<48x1xf32>
    %cst_18 = arith.constant 3.200000e+01 : f32
    %44 = vector.broadcast %cst_18 : f32 to vector<48x1xf32>
    %45 = arith.divf %43, %44 : vector<48x1xf32>
    %46 = vector.broadcast %45 : vector<48x1xf32> to vector<48x32xf32>
    %47 = arith.subf %36, %46 : vector<48x32xf32>
    %48 = arith.mulf %47, %47 : vector<48x32xf32>
    %cst_19 = arith.constant dense<0.000000e+00> : vector<48xf32>
    %49 = vector.multi_reduction <add>, %48, %cst_19 [1] : vector<48x32xf32> to vector<48xf32>
    %50 = vector.shape_cast %49 : vector<48xf32> to vector<48x1xf32>
    %cst_20 = arith.constant 3.200000e+01 : f32
    %51 = vector.broadcast %cst_20 : f32 to vector<48x1xf32>
    %52 = arith.divf %50, %51 : vector<48x1xf32>
    %53 = vector.broadcast %45 : vector<48x1xf32> to vector<48x32xf32>
    %54 = arith.subf %36, %53 : vector<48x32xf32>
    %cst_21 = arith.constant 9.99999974E-6 : f32
    %55 = vector.broadcast %cst_21 : f32 to vector<48x1xf32>
    %56 = arith.addf %52, %55 : vector<48x1xf32>
    %57 = math.rsqrt %56 : vector<48x1xf32>
    %58 = vector.broadcast %57 : vector<48x1xf32> to vector<48x32xf32>
    %59 = arith.mulf %54, %58 : vector<48x32xf32>
    %60 = vector.broadcast %39 : vector<1x32xf32> to vector<48x32xf32>
    %61 = arith.mulf %59, %60 : vector<48x32xf32>
    %62 = vector.broadcast %41 : vector<1x32xf32> to vector<48x32xf32>
    %63 = arith.addf %61, %62 : vector<48x32xf32>
    %64 = arith.truncf %63 : vector<48x32xf32> to vector<48x32xbf16>
    %c0_22 = arith.constant 0 : index
    %c0_23 = arith.constant 0 : index
    %c0_24 = arith.constant 0 : index
    %65 = vector.load %arg5[%c0_22, %c0_23, %c0_24] : memref<2x32x96xbf16, #tpu.memory_space<vmem>>, vector<1x32x96xbf16>
    %66 = vector.shape_cast %65 : vector<1x32x96xbf16> to vector<32x96xbf16>
    %cst_25 = arith.constant dense<0.000000e+00> : vector<48x96xf32>
    %67 = tpu.matmul %64, %66, %cst_25 {dimension_numbers = #tpu.dot_dimension_numbers<[1], [0], [0], [1], [0, 0, 1, 1], [], []>} : vector<48x32xbf16>, vector<32x96xbf16>, vector<48x96xf32> -> vector<48x96xf32>
    %c0_26 = arith.constant 0 : index
    %c0_27 = arith.constant 0 : index
    %c0_28 = arith.constant 0 : index
    %68 = vector.load %arg6[%c0_26, %c0_27, %c0_28] : memref<2x1x96xf32, #tpu.memory_space<vmem>>, vector<1x1x96xf32>
    %69 = vector.shape_cast %68 : vector<1x1x96xf32> to vector<1x96xf32>
    %70 = vector.broadcast %69 : vector<1x96xf32> to vector<48x96xf32>
    %71 = arith.addf %67, %70 : vector<48x96xf32>
    %72 = arith.truncf %71 : vector<48x96xf32> to vector<48x96xbf16>
    %73 = vector.extract_strided_slice %72 {offsets = [0, 0], sizes = [48, 8], strides = [1, 1]} : vector<48x96xbf16> to vector<48x8xbf16>
    %74 = vector.extract_strided_slice %72 {offsets = [0, 32], sizes = [48, 8], strides = [1, 1]} : vector<48x96xbf16> to vector<48x8xbf16>
    %75 = vector.extract_strided_slice %72 {offsets = [0, 64], sizes = [48, 8], strides = [1, 1]} : vector<48x96xbf16> to vector<48x8xbf16>
    %cst_29 = arith.constant dense<0.000000e+00> : vector<48x48xf32>
    %76 = tpu.matmul %73, %74, %cst_29 {dimension_numbers = #tpu.dot_dimension_numbers<[1], [1], [0], [0], [0, 0, 1, 0], [], []>} : vector<48x8xbf16>, vector<48x8xbf16>, vector<48x48xf32> -> vector<48x48xf32>
    %cst_30 = arith.constant 0.353553385 : f32
    %77 = vector.broadcast %cst_30 : f32 to vector<48x48xf32>
    %78 = arith.mulf %76, %77 : vector<48x48xf32>
    %79 = arith.addf %78, %37 : vector<48x48xf32>
    %cst_31 = arith.constant dense<0xFF800000> : vector<48xf32>
    %80 = vector.multi_reduction <maximumf>, %79, %cst_31 [1] : vector<48x48xf32> to vector<48xf32>
    %81 = vector.shape_cast %80 : vector<48xf32> to vector<48x1xf32>
    %82 = vector.broadcast %81 : vector<48x1xf32> to vector<48x48xf32>
    %83 = arith.subf %79, %82 : vector<48x48xf32>
    %84 = math.exp %83 : vector<48x48xf32>
    %cst_32 = arith.constant dense<0.000000e+00> : vector<48xf32>
    %85 = vector.multi_reduction <add>, %84, %cst_32 [1] : vector<48x48xf32> to vector<48xf32>
    %86 = vector.shape_cast %85 : vector<48xf32> to vector<48x1xf32>
    %87 = tpu.reciprocal %86 {approx = true} : vector<48x1xf32> -> vector<48x1xf32>
    %88 = arith.truncf %84 : vector<48x48xf32> to vector<48x48xbf16>
    %cst_33 = arith.constant dense<0.000000e+00> : vector<48x8xf32>
    %89 = tpu.matmul %88, %75, %cst_33 {dimension_numbers = #tpu.dot_dimension_numbers<[1], [0], [0], [1], [0, 0, 1, 1], [], []>} : vector<48x48xbf16>, vector<48x8xbf16>, vector<48x8xf32> -> vector<48x8xf32>
    %90 = vector.broadcast %87 : vector<48x1xf32> to vector<48x8xf32>
    %91 = arith.mulf %89, %90 : vector<48x8xf32>
    %92 = vector.extract_strided_slice %72 {offsets = [0, 8], sizes = [48, 8], strides = [1, 1]} : vector<48x96xbf16> to vector<48x8xbf16>
    %93 = vector.extract_strided_slice %72 {offsets = [0, 40], sizes = [48, 8], strides = [1, 1]} : vector<48x96xbf16> to vector<48x8xbf16>
    %94 = vector.extract_strided_slice %72 {offsets = [0, 72], sizes = [48, 8], strides = [1, 1]} : vector<48x96xbf16> to vector<48x8xbf16>
    %cst_34 = arith.constant dense<0.000000e+00> : vector<48x48xf32>
    %95 = tpu.matmul %92, %93, %cst_34 {dimension_numbers = #tpu.dot_dimension_numbers<[1], [1], [0], [0], [0, 0, 1, 0], [], []>} : vector<48x8xbf16>, vector<48x8xbf16>, vector<48x48xf32> -> vector<48x48xf32>
    %cst_35 = arith.constant 0.353553385 : f32
    %96 = vector.broadcast %cst_35 : f32 to vector<48x48xf32>
    %97 = arith.mulf %95, %96 : vector<48x48xf32>
    %98 = arith.addf %97, %37 : vector<48x48xf32>
    %cst_36 = arith.constant dense<0xFF800000> : vector<48xf32>
    %99 = vector.multi_reduction <maximumf>, %98, %cst_36 [1] : vector<48x48xf32> to vector<48xf32>
    %100 = vector.shape_cast %99 : vector<48xf32> to vector<48x1xf32>
    %101 = vector.broadcast %100 : vector<48x1xf32> to vector<48x48xf32>
    %102 = arith.subf %98, %101 : vector<48x48xf32>
    %103 = math.exp %102 : vector<48x48xf32>
    %cst_37 = arith.constant dense<0.000000e+00> : vector<48xf32>
    %104 = vector.multi_reduction <add>, %103, %cst_37 [1] : vector<48x48xf32> to vector<48xf32>
    %105 = vector.shape_cast %104 : vector<48xf32> to vector<48x1xf32>
    %106 = tpu.reciprocal %105 {approx = true} : vector<48x1xf32> -> vector<48x1xf32>
    %107 = arith.truncf %103 : vector<48x48xf32> to vector<48x48xbf16>
    %cst_38 = arith.constant dense<0.000000e+00> : vector<48x8xf32>
    %108 = tpu.matmul %107, %94, %cst_38 {dimension_numbers = #tpu.dot_dimension_numbers<[1], [0], [0], [1], [0, 0, 1, 1], [], []>} : vector<48x48xbf16>, vector<48x8xbf16>, vector<48x8xf32> -> vector<48x8xf32>
    %109 = vector.broadcast %106 : vector<48x1xf32> to vector<48x8xf32>
    %110 = arith.mulf %108, %109 : vector<48x8xf32>
    %111 = vector.extract_strided_slice %72 {offsets = [0, 16], sizes = [48, 8], strides = [1, 1]} : vector<48x96xbf16> to vector<48x8xbf16>
    %112 = vector.extract_strided_slice %72 {offsets = [0, 48], sizes = [48, 8], strides = [1, 1]} : vector<48x96xbf16> to vector<48x8xbf16>
    %113 = vector.extract_strided_slice %72 {offsets = [0, 80], sizes = [48, 8], strides = [1, 1]} : vector<48x96xbf16> to vector<48x8xbf16>
    %cst_39 = arith.constant dense<0.000000e+00> : vector<48x48xf32>
    %114 = tpu.matmul %111, %112, %cst_39 {dimension_numbers = #tpu.dot_dimension_numbers<[1], [1], [0], [0], [0, 0, 1, 0], [], []>} : vector<48x8xbf16>, vector<48x8xbf16>, vector<48x48xf32> -> vector<48x48xf32>
    %cst_40 = arith.constant 0.353553385 : f32
    %115 = vector.broadcast %cst_40 : f32 to vector<48x48xf32>
    %116 = arith.mulf %114, %115 : vector<48x48xf32>
    %117 = arith.addf %116, %37 : vector<48x48xf32>
    %cst_41 = arith.constant dense<0xFF800000> : vector<48xf32>
    %118 = vector.multi_reduction <maximumf>, %117, %cst_41 [1] : vector<48x48xf32> to vector<48xf32>
    %119 = vector.shape_cast %118 : vector<48xf32> to vector<48x1xf32>
    %120 = vector.broadcast %119 : vector<48x1xf32> to vector<48x48xf32>
    %121 = arith.subf %117, %120 : vector<48x48xf32>
    %122 = math.exp %121 : vector<48x48xf32>
    %cst_42 = arith.constant dense<0.000000e+00> : vector<48xf32>
    %123 = vector.multi_reduction <add>, %122, %cst_42 [1] : vector<48x48xf32> to vector<48xf32>
    %124 = vector.shape_cast %123 : vector<48xf32> to vector<48x1xf32>
    %125 = tpu.reciprocal %124 {approx = true} : vector<48x1xf32> -> vector<48x1xf32>
    %126 = arith.truncf %122 : vector<48x48xf32> to vector<48x48xbf16>
    %cst_43 = arith.constant dense<0.000000e+00> : vector<48x8xf32>
    %127 = tpu.matmul %126, %113, %cst_43 {dimension_numbers = #tpu.dot_dimension_numbers<[1], [0], [0], [1], [0, 0, 1, 1], [], []>} : vector<48x48xbf16>, vector<48x8xbf16>, vector<48x8xf32> -> vector<48x8xf32>
    %128 = vector.broadcast %125 : vector<48x1xf32> to vector<48x8xf32>
    %129 = arith.mulf %127, %128 : vector<48x8xf32>
    %130 = vector.extract_strided_slice %72 {offsets = [0, 24], sizes = [48, 8], strides = [1, 1]} : vector<48x96xbf16> to vector<48x8xbf16>
    %131 = vector.extract_strided_slice %72 {offsets = [0, 56], sizes = [48, 8], strides = [1, 1]} : vector<48x96xbf16> to vector<48x8xbf16>
    %132 = vector.extract_strided_slice %72 {offsets = [0, 88], sizes = [48, 8], strides = [1, 1]} : vector<48x96xbf16> to vector<48x8xbf16>
    %cst_44 = arith.constant dense<0.000000e+00> : vector<48x48xf32>
    %133 = tpu.matmul %130, %131, %cst_44 {dimension_numbers = #tpu.dot_dimension_numbers<[1], [1], [0], [0], [0, 0, 1, 0], [], []>} : vector<48x8xbf16>, vector<48x8xbf16>, vector<48x48xf32> -> vector<48x48xf32>
    %cst_45 = arith.constant 0.353553385 : f32
    %134 = vector.broadcast %cst_45 : f32 to vector<48x48xf32>
    %135 = arith.mulf %133, %134 : vector<48x48xf32>
    %136 = arith.addf %135, %37 : vector<48x48xf32>
    %cst_46 = arith.constant dense<0xFF800000> : vector<48xf32>
    %137 = vector.multi_reduction <maximumf>, %136, %cst_46 [1] : vector<48x48xf32> to vector<48xf32>
    %138 = vector.shape_cast %137 : vector<48xf32> to vector<48x1xf32>
    %139 = vector.broadcast %138 : vector<48x1xf32> to vector<48x48xf32>
    %140 = arith.subf %136, %139 : vector<48x48xf32>
    %141 = math.exp %140 : vector<48x48xf32>
    %cst_47 = arith.constant dense<0.000000e+00> : vector<48xf32>
    %142 = vector.multi_reduction <add>, %141, %cst_47 [1] : vector<48x48xf32> to vector<48xf32>
    %143 = vector.shape_cast %142 : vector<48xf32> to vector<48x1xf32>
    %144 = tpu.reciprocal %143 {approx = true} : vector<48x1xf32> -> vector<48x1xf32>
    %145 = arith.truncf %141 : vector<48x48xf32> to vector<48x48xbf16>
    %cst_48 = arith.constant dense<0.000000e+00> : vector<48x8xf32>
    %146 = tpu.matmul %145, %132, %cst_48 {dimension_numbers = #tpu.dot_dimension_numbers<[1], [0], [0], [1], [0, 0, 1, 1], [], []>} : vector<48x48xbf16>, vector<48x8xbf16>, vector<48x8xf32> -> vector<48x8xf32>
    %147 = vector.broadcast %144 : vector<48x1xf32> to vector<48x8xf32>
    %148 = arith.mulf %146, %147 : vector<48x8xf32>
    %149 = tpu.concatenate %91, %110, %129, %148 in 1 : vector<48x8xf32>, vector<48x8xf32>, vector<48x8xf32>, vector<48x8xf32> -> vector<48x32xf32>
    %150 = arith.truncf %149 : vector<48x32xf32> to vector<48x32xbf16>
    %c0_49 = arith.constant 0 : index
    %c0_50 = arith.constant 0 : index
    %c0_51 = arith.constant 0 : index
    %151 = vector.load %arg7[%c0_49, %c0_50, %c0_51] : memref<2x32x32xbf16, #tpu.memory_space<vmem>>, vector<1x32x32xbf16>
    %152 = vector.shape_cast %151 : vector<1x32x32xbf16> to vector<32x32xbf16>
    %cst_52 = arith.constant dense<0.000000e+00> : vector<48x32xf32>
    %153 = tpu.matmul %150, %152, %cst_52 {dimension_numbers = #tpu.dot_dimension_numbers<[1], [0], [0], [1], [0, 0, 1, 1], [], []>} : vector<48x32xbf16>, vector<32x32xbf16>, vector<48x32xf32> -> vector<48x32xf32>
    %c0_53 = arith.constant 0 : index
    %c0_54 = arith.constant 0 : index
    %c0_55 = arith.constant 0 : index
    %154 = vector.load %arg8[%c0_53, %c0_54, %c0_55] : memref<2x1x32xf32, #tpu.memory_space<vmem>>, vector<1x1x32xf32>
    %155 = vector.shape_cast %154 : vector<1x1x32xf32> to vector<1x32xf32>
    %156 = vector.broadcast %155 : vector<1x32xf32> to vector<48x32xf32>
    %157 = arith.addf %153, %156 : vector<48x32xf32>
    %158 = arith.addf %36, %157 : vector<48x32xf32>
    %c0_56 = arith.constant 0 : index
    %c0_57 = arith.constant 0 : index
    %c0_58 = arith.constant 0 : index
    %159 = vector.load %arg11[%c0_56, %c0_57, %c0_58] : memref<2x1x32xf32, #tpu.memory_space<vmem>>, vector<1x1x32xf32>
    %160 = vector.shape_cast %159 : vector<1x1x32xf32> to vector<1x32xf32>
    %c0_59 = arith.constant 0 : index
    %c0_60 = arith.constant 0 : index
    %c0_61 = arith.constant 0 : index
    %161 = vector.load %arg12[%c0_59, %c0_60, %c0_61] : memref<2x1x32xf32, #tpu.memory_space<vmem>>, vector<1x1x32xf32>
    %162 = vector.shape_cast %161 : vector<1x1x32xf32> to vector<1x32xf32>
    %cst_62 = arith.constant dense<0.000000e+00> : vector<48xf32>
    %163 = vector.multi_reduction <add>, %158, %cst_62 [1] : vector<48x32xf32> to vector<48xf32>
    %164 = vector.shape_cast %163 : vector<48xf32> to vector<48x1xf32>
    %cst_63 = arith.constant 3.200000e+01 : f32
    %165 = vector.broadcast %cst_63 : f32 to vector<48x1xf32>
    %166 = arith.divf %164, %165 : vector<48x1xf32>
    %167 = vector.broadcast %166 : vector<48x1xf32> to vector<48x32xf32>
    %168 = arith.subf %158, %167 : vector<48x32xf32>
    %169 = arith.mulf %168, %168 : vector<48x32xf32>
    %cst_64 = arith.constant dense<0.000000e+00> : vector<48xf32>
    %170 = vector.multi_reduction <add>, %169, %cst_64 [1] : vector<48x32xf32> to vector<48xf32>
    %171 = vector.shape_cast %170 : vector<48xf32> to vector<48x1xf32>
    %cst_65 = arith.constant 3.200000e+01 : f32
    %172 = vector.broadcast %cst_65 : f32 to vector<48x1xf32>
    %173 = arith.divf %171, %172 : vector<48x1xf32>
    %174 = vector.broadcast %166 : vector<48x1xf32> to vector<48x32xf32>
    %175 = arith.subf %158, %174 : vector<48x32xf32>
    %cst_66 = arith.constant 9.99999974E-6 : f32
    %176 = vector.broadcast %cst_66 : f32 to vector<48x1xf32>
    %177 = arith.addf %173, %176 : vector<48x1xf32>
    %178 = math.rsqrt %177 : vector<48x1xf32>
    %179 = vector.broadcast %178 : vector<48x1xf32> to vector<48x32xf32>
    %180 = arith.mulf %175, %179 : vector<48x32xf32>
    %181 = vector.broadcast %160 : vector<1x32xf32> to vector<48x32xf32>
    %182 = arith.mulf %180, %181 : vector<48x32xf32>
    %183 = vector.broadcast %162 : vector<1x32xf32> to vector<48x32xf32>
    %184 = arith.addf %182, %183 : vector<48x32xf32>
    %185 = arith.truncf %184 : vector<48x32xf32> to vector<48x32xbf16>
    %c0_67 = arith.constant 0 : index
    %c0_68 = arith.constant 0 : index
    %c0_69 = arith.constant 0 : index
    %186 = vector.load %arg13[%c0_67, %c0_68, %c0_69] : memref<2x32x128xbf16, #tpu.memory_space<vmem>>, vector<1x32x128xbf16>
    %187 = vector.shape_cast %186 : vector<1x32x128xbf16> to vector<32x128xbf16>
    %cst_70 = arith.constant dense<0.000000e+00> : vector<48x128xf32>
    %188 = tpu.matmul %185, %187, %cst_70 {dimension_numbers = #tpu.dot_dimension_numbers<[1], [0], [0], [1], [0, 0, 1, 1], [], []>} : vector<48x32xbf16>, vector<32x128xbf16>, vector<48x128xf32> -> vector<48x128xf32>
    %c0_71 = arith.constant 0 : index
    %c0_72 = arith.constant 0 : index
    %c0_73 = arith.constant 0 : index
    %189 = vector.load %arg14[%c0_71, %c0_72, %c0_73] : memref<2x1x128xf32, #tpu.memory_space<vmem>>, vector<1x1x128xf32>
    %190 = vector.shape_cast %189 : vector<1x1x128xf32> to vector<1x128xf32>
    %191 = vector.broadcast %190 : vector<1x128xf32> to vector<48x128xf32>
    %192 = arith.addf %188, %191 : vector<48x128xf32>
    %cst_74 = arith.constant 0.000000e+00 : f32
    %193 = vector.broadcast %cst_74 : f32 to vector<48x128xf32>
    %194 = arith.maximumf %192, %193 : vector<48x128xf32>
    %195 = arith.truncf %194 : vector<48x128xf32> to vector<48x128xbf16>
    %c0_75 = arith.constant 0 : index
    %c0_76 = arith.constant 0 : index
    %c0_77 = arith.constant 0 : index
    %196 = vector.load %arg15[%c0_75, %c0_76, %c0_77] : memref<2x128x32xbf16, #tpu.memory_space<vmem>>, vector<1x128x32xbf16>
    %197 = vector.shape_cast %196 : vector<1x128x32xbf16> to vector<128x32xbf16>
    %cst_78 = arith.constant dense<0.000000e+00> : vector<48x32xf32>
    %198 = tpu.matmul %195, %197, %cst_78 {dimension_numbers = #tpu.dot_dimension_numbers<[1], [0], [0], [1], [0, 0, 1, 1], [], []>} : vector<48x128xbf16>, vector<128x32xbf16>, vector<48x32xf32> -> vector<48x32xf32>
    %c0_79 = arith.constant 0 : index
    %c0_80 = arith.constant 0 : index
    %c0_81 = arith.constant 0 : index
    %199 = vector.load %arg16[%c0_79, %c0_80, %c0_81] : memref<2x1x32xf32, #tpu.memory_space<vmem>>, vector<1x1x32xf32>
    %200 = vector.shape_cast %199 : vector<1x1x32xf32> to vector<1x32xf32>
    %201 = vector.broadcast %200 : vector<1x32xf32> to vector<48x32xf32>
    %202 = arith.addf %198, %201 : vector<48x32xf32>
    %203 = arith.addf %158, %202 : vector<48x32xf32>
    %c1_82 = arith.constant 1 : index
    %c0_83 = arith.constant 0 : index
    %c0_84 = arith.constant 0 : index
    %204 = vector.load %arg9[%c1_82, %c0_83, %c0_84] : memref<2x1x32xf32, #tpu.memory_space<vmem>>, vector<1x1x32xf32>
    %205 = vector.shape_cast %204 : vector<1x1x32xf32> to vector<1x32xf32>
    %c1_85 = arith.constant 1 : index
    %c0_86 = arith.constant 0 : index
    %c0_87 = arith.constant 0 : index
    %206 = vector.load %arg10[%c1_85, %c0_86, %c0_87] : memref<2x1x32xf32, #tpu.memory_space<vmem>>, vector<1x1x32xf32>
    %207 = vector.shape_cast %206 : vector<1x1x32xf32> to vector<1x32xf32>
    %cst_88 = arith.constant dense<0.000000e+00> : vector<48xf32>
    %208 = vector.multi_reduction <add>, %203, %cst_88 [1] : vector<48x32xf32> to vector<48xf32>
    %209 = vector.shape_cast %208 : vector<48xf32> to vector<48x1xf32>
    %cst_89 = arith.constant 3.200000e+01 : f32
    %210 = vector.broadcast %cst_89 : f32 to vector<48x1xf32>
    %211 = arith.divf %209, %210 : vector<48x1xf32>
    %212 = vector.broadcast %211 : vector<48x1xf32> to vector<48x32xf32>
    %213 = arith.subf %203, %212 : vector<48x32xf32>
    %214 = arith.mulf %213, %213 : vector<48x32xf32>
    %cst_90 = arith.constant dense<0.000000e+00> : vector<48xf32>
    %215 = vector.multi_reduction <add>, %214, %cst_90 [1] : vector<48x32xf32> to vector<48xf32>
    %216 = vector.shape_cast %215 : vector<48xf32> to vector<48x1xf32>
    %cst_91 = arith.constant 3.200000e+01 : f32
    %217 = vector.broadcast %cst_91 : f32 to vector<48x1xf32>
    %218 = arith.divf %216, %217 : vector<48x1xf32>
    %219 = vector.broadcast %211 : vector<48x1xf32> to vector<48x32xf32>
    %220 = arith.subf %203, %219 : vector<48x32xf32>
    %cst_92 = arith.constant 9.99999974E-6 : f32
    %221 = vector.broadcast %cst_92 : f32 to vector<48x1xf32>
    %222 = arith.addf %218, %221 : vector<48x1xf32>
    %223 = math.rsqrt %222 : vector<48x1xf32>
    %224 = vector.broadcast %223 : vector<48x1xf32> to vector<48x32xf32>
    %225 = arith.mulf %220, %224 : vector<48x32xf32>
    %226 = vector.broadcast %205 : vector<1x32xf32> to vector<48x32xf32>
    %227 = arith.mulf %225, %226 : vector<48x32xf32>
    %228 = vector.broadcast %207 : vector<1x32xf32> to vector<48x32xf32>
    %229 = arith.addf %227, %228 : vector<48x32xf32>
    %230 = arith.truncf %229 : vector<48x32xf32> to vector<48x32xbf16>
    %c1_93 = arith.constant 1 : index
    %c0_94 = arith.constant 0 : index
    %c0_95 = arith.constant 0 : index
    %231 = vector.load %arg5[%c1_93, %c0_94, %c0_95] : memref<2x32x96xbf16, #tpu.memory_space<vmem>>, vector<1x32x96xbf16>
    %232 = vector.shape_cast %231 : vector<1x32x96xbf16> to vector<32x96xbf16>
    %cst_96 = arith.constant dense<0.000000e+00> : vector<48x96xf32>
    %233 = tpu.matmul %230, %232, %cst_96 {dimension_numbers = #tpu.dot_dimension_numbers<[1], [0], [0], [1], [0, 0, 1, 1], [], []>} : vector<48x32xbf16>, vector<32x96xbf16>, vector<48x96xf32> -> vector<48x96xf32>
    %c1_97 = arith.constant 1 : index
    %c0_98 = arith.constant 0 : index
    %c0_99 = arith.constant 0 : index
    %234 = vector.load %arg6[%c1_97, %c0_98, %c0_99] : memref<2x1x96xf32, #tpu.memory_space<vmem>>, vector<1x1x96xf32>
    %235 = vector.shape_cast %234 : vector<1x1x96xf32> to vector<1x96xf32>
    %236 = vector.broadcast %235 : vector<1x96xf32> to vector<48x96xf32>
    %237 = arith.addf %233, %236 : vector<48x96xf32>
    %238 = arith.truncf %237 : vector<48x96xf32> to vector<48x96xbf16>
    %239 = vector.extract_strided_slice %238 {offsets = [0, 0], sizes = [48, 8], strides = [1, 1]} : vector<48x96xbf16> to vector<48x8xbf16>
    %240 = vector.extract_strided_slice %238 {offsets = [0, 32], sizes = [48, 8], strides = [1, 1]} : vector<48x96xbf16> to vector<48x8xbf16>
    %241 = vector.extract_strided_slice %238 {offsets = [0, 64], sizes = [48, 8], strides = [1, 1]} : vector<48x96xbf16> to vector<48x8xbf16>
    %cst_100 = arith.constant dense<0.000000e+00> : vector<48x48xf32>
    %242 = tpu.matmul %239, %240, %cst_100 {dimension_numbers = #tpu.dot_dimension_numbers<[1], [1], [0], [0], [0, 0, 1, 0], [], []>} : vector<48x8xbf16>, vector<48x8xbf16>, vector<48x48xf32> -> vector<48x48xf32>
    %cst_101 = arith.constant 0.353553385 : f32
    %243 = vector.broadcast %cst_101 : f32 to vector<48x48xf32>
    %244 = arith.mulf %242, %243 : vector<48x48xf32>
    %245 = arith.addf %244, %37 : vector<48x48xf32>
    %cst_102 = arith.constant dense<0xFF800000> : vector<48xf32>
    %246 = vector.multi_reduction <maximumf>, %245, %cst_102 [1] : vector<48x48xf32> to vector<48xf32>
    %247 = vector.shape_cast %246 : vector<48xf32> to vector<48x1xf32>
    %248 = vector.broadcast %247 : vector<48x1xf32> to vector<48x48xf32>
    %249 = arith.subf %245, %248 : vector<48x48xf32>
    %250 = math.exp %249 : vector<48x48xf32>
    %cst_103 = arith.constant dense<0.000000e+00> : vector<48xf32>
    %251 = vector.multi_reduction <add>, %250, %cst_103 [1] : vector<48x48xf32> to vector<48xf32>
    %252 = vector.shape_cast %251 : vector<48xf32> to vector<48x1xf32>
    %253 = tpu.reciprocal %252 {approx = true} : vector<48x1xf32> -> vector<48x1xf32>
    %254 = arith.truncf %250 : vector<48x48xf32> to vector<48x48xbf16>
    %cst_104 = arith.constant dense<0.000000e+00> : vector<48x8xf32>
    %255 = tpu.matmul %254, %241, %cst_104 {dimension_numbers = #tpu.dot_dimension_numbers<[1], [0], [0], [1], [0, 0, 1, 1], [], []>} : vector<48x48xbf16>, vector<48x8xbf16>, vector<48x8xf32> -> vector<48x8xf32>
    %256 = vector.broadcast %253 : vector<48x1xf32> to vector<48x8xf32>
    %257 = arith.mulf %255, %256 : vector<48x8xf32>
    %258 = vector.extract_strided_slice %238 {offsets = [0, 8], sizes = [48, 8], strides = [1, 1]} : vector<48x96xbf16> to vector<48x8xbf16>
    %259 = vector.extract_strided_slice %238 {offsets = [0, 40], sizes = [48, 8], strides = [1, 1]} : vector<48x96xbf16> to vector<48x8xbf16>
    %260 = vector.extract_strided_slice %238 {offsets = [0, 72], sizes = [48, 8], strides = [1, 1]} : vector<48x96xbf16> to vector<48x8xbf16>
    %cst_105 = arith.constant dense<0.000000e+00> : vector<48x48xf32>
    %261 = tpu.matmul %258, %259, %cst_105 {dimension_numbers = #tpu.dot_dimension_numbers<[1], [1], [0], [0], [0, 0, 1, 0], [], []>} : vector<48x8xbf16>, vector<48x8xbf16>, vector<48x48xf32> -> vector<48x48xf32>
    %cst_106 = arith.constant 0.353553385 : f32
    %262 = vector.broadcast %cst_106 : f32 to vector<48x48xf32>
    %263 = arith.mulf %261, %262 : vector<48x48xf32>
    %264 = arith.addf %263, %37 : vector<48x48xf32>
    %cst_107 = arith.constant dense<0xFF800000> : vector<48xf32>
    %265 = vector.multi_reduction <maximumf>, %264, %cst_107 [1] : vector<48x48xf32> to vector<48xf32>
    %266 = vector.shape_cast %265 : vector<48xf32> to vector<48x1xf32>
    %267 = vector.broadcast %266 : vector<48x1xf32> to vector<48x48xf32>
    %268 = arith.subf %264, %267 : vector<48x48xf32>
    %269 = math.exp %268 : vector<48x48xf32>
    %cst_108 = arith.constant dense<0.000000e+00> : vector<48xf32>
    %270 = vector.multi_reduction <add>, %269, %cst_108 [1] : vector<48x48xf32> to vector<48xf32>
    %271 = vector.shape_cast %270 : vector<48xf32> to vector<48x1xf32>
    %272 = tpu.reciprocal %271 {approx = true} : vector<48x1xf32> -> vector<48x1xf32>
    %273 = arith.truncf %269 : vector<48x48xf32> to vector<48x48xbf16>
    %cst_109 = arith.constant dense<0.000000e+00> : vector<48x8xf32>
    %274 = tpu.matmul %273, %260, %cst_109 {dimension_numbers = #tpu.dot_dimension_numbers<[1], [0], [0], [1], [0, 0, 1, 1], [], []>} : vector<48x48xbf16>, vector<48x8xbf16>, vector<48x8xf32> -> vector<48x8xf32>
    %275 = vector.broadcast %272 : vector<48x1xf32> to vector<48x8xf32>
    %276 = arith.mulf %274, %275 : vector<48x8xf32>
    %277 = vector.extract_strided_slice %238 {offsets = [0, 16], sizes = [48, 8], strides = [1, 1]} : vector<48x96xbf16> to vector<48x8xbf16>
    %278 = vector.extract_strided_slice %238 {offsets = [0, 48], sizes = [48, 8], strides = [1, 1]} : vector<48x96xbf16> to vector<48x8xbf16>
    %279 = vector.extract_strided_slice %238 {offsets = [0, 80], sizes = [48, 8], strides = [1, 1]} : vector<48x96xbf16> to vector<48x8xbf16>
    %cst_110 = arith.constant dense<0.000000e+00> : vector<48x48xf32>
    %280 = tpu.matmul %277, %278, %cst_110 {dimension_numbers = #tpu.dot_dimension_numbers<[1], [1], [0], [0], [0, 0, 1, 0], [], []>} : vector<48x8xbf16>, vector<48x8xbf16>, vector<48x48xf32> -> vector<48x48xf32>
    %cst_111 = arith.constant 0.353553385 : f32
    %281 = vector.broadcast %cst_111 : f32 to vector<48x48xf32>
    %282 = arith.mulf %280, %281 : vector<48x48xf32>
    %283 = arith.addf %282, %37 : vector<48x48xf32>
    %cst_112 = arith.constant dense<0xFF800000> : vector<48xf32>
    %284 = vector.multi_reduction <maximumf>, %283, %cst_112 [1] : vector<48x48xf32> to vector<48xf32>
    %285 = vector.shape_cast %284 : vector<48xf32> to vector<48x1xf32>
    %286 = vector.broadcast %285 : vector<48x1xf32> to vector<48x48xf32>
    %287 = arith.subf %283, %286 : vector<48x48xf32>
    %288 = math.exp %287 : vector<48x48xf32>
    %cst_113 = arith.constant dense<0.000000e+00> : vector<48xf32>
    %289 = vector.multi_reduction <add>, %288, %cst_113 [1] : vector<48x48xf32> to vector<48xf32>
    %290 = vector.shape_cast %289 : vector<48xf32> to vector<48x1xf32>
    %291 = tpu.reciprocal %290 {approx = true} : vector<48x1xf32> -> vector<48x1xf32>
    %292 = arith.truncf %288 : vector<48x48xf32> to vector<48x48xbf16>
    %cst_114 = arith.constant dense<0.000000e+00> : vector<48x8xf32>
    %293 = tpu.matmul %292, %279, %cst_114 {dimension_numbers = #tpu.dot_dimension_numbers<[1], [0], [0], [1], [0, 0, 1, 1], [], []>} : vector<48x48xbf16>, vector<48x8xbf16>, vector<48x8xf32> -> vector<48x8xf32>
    %294 = vector.broadcast %291 : vector<48x1xf32> to vector<48x8xf32>
    %295 = arith.mulf %293, %294 : vector<48x8xf32>
    %296 = vector.extract_strided_slice %238 {offsets = [0, 24], sizes = [48, 8], strides = [1, 1]} : vector<48x96xbf16> to vector<48x8xbf16>
    %297 = vector.extract_strided_slice %238 {offsets = [0, 56], sizes = [48, 8], strides = [1, 1]} : vector<48x96xbf16> to vector<48x8xbf16>
    %298 = vector.extract_strided_slice %238 {offsets = [0, 88], sizes = [48, 8], strides = [1, 1]} : vector<48x96xbf16> to vector<48x8xbf16>
    %cst_115 = arith.constant dense<0.000000e+00> : vector<48x48xf32>
    %299 = tpu.matmul %296, %297, %cst_115 {dimension_numbers = #tpu.dot_dimension_numbers<[1], [1], [0], [0], [0, 0, 1, 0], [], []>} : vector<48x8xbf16>, vector<48x8xbf16>, vector<48x48xf32> -> vector<48x48xf32>
    %cst_116 = arith.constant 0.353553385 : f32
    %300 = vector.broadcast %cst_116 : f32 to vector<48x48xf32>
    %301 = arith.mulf %299, %300 : vector<48x48xf32>
    %302 = arith.addf %301, %37 : vector<48x48xf32>
    %cst_117 = arith.constant dense<0xFF800000> : vector<48xf32>
    %303 = vector.multi_reduction <maximumf>, %302, %cst_117 [1] : vector<48x48xf32> to vector<48xf32>
    %304 = vector.shape_cast %303 : vector<48xf32> to vector<48x1xf32>
    %305 = vector.broadcast %304 : vector<48x1xf32> to vector<48x48xf32>
    %306 = arith.subf %302, %305 : vector<48x48xf32>
    %307 = math.exp %306 : vector<48x48xf32>
    %cst_118 = arith.constant dense<0.000000e+00> : vector<48xf32>
    %308 = vector.multi_reduction <add>, %307, %cst_118 [1] : vector<48x48xf32> to vector<48xf32>
    %309 = vector.shape_cast %308 : vector<48xf32> to vector<48x1xf32>
    %310 = tpu.reciprocal %309 {approx = true} : vector<48x1xf32> -> vector<48x1xf32>
    %311 = arith.truncf %307 : vector<48x48xf32> to vector<48x48xbf16>
    %cst_119 = arith.constant dense<0.000000e+00> : vector<48x8xf32>
    %312 = tpu.matmul %311, %298, %cst_119 {dimension_numbers = #tpu.dot_dimension_numbers<[1], [0], [0], [1], [0, 0, 1, 1], [], []>} : vector<48x48xbf16>, vector<48x8xbf16>, vector<48x8xf32> -> vector<48x8xf32>
    %313 = vector.broadcast %310 : vector<48x1xf32> to vector<48x8xf32>
    %314 = arith.mulf %312, %313 : vector<48x8xf32>
    %315 = tpu.concatenate %257, %276, %295, %314 in 1 : vector<48x8xf32>, vector<48x8xf32>, vector<48x8xf32>, vector<48x8xf32> -> vector<48x32xf32>
    %316 = arith.truncf %315 : vector<48x32xf32> to vector<48x32xbf16>
    %c1_120 = arith.constant 1 : index
    %c0_121 = arith.constant 0 : index
    %c0_122 = arith.constant 0 : index
    %317 = vector.load %arg7[%c1_120, %c0_121, %c0_122] : memref<2x32x32xbf16, #tpu.memory_space<vmem>>, vector<1x32x32xbf16>
    %318 = vector.shape_cast %317 : vector<1x32x32xbf16> to vector<32x32xbf16>
    %cst_123 = arith.constant dense<0.000000e+00> : vector<48x32xf32>
    %319 = tpu.matmul %316, %318, %cst_123 {dimension_numbers = #tpu.dot_dimension_numbers<[1], [0], [0], [1], [0, 0, 1, 1], [], []>} : vector<48x32xbf16>, vector<32x32xbf16>, vector<48x32xf32> -> vector<48x32xf32>
    %c1_124 = arith.constant 1 : index
    %c0_125 = arith.constant 0 : index
    %c0_126 = arith.constant 0 : index
    %320 = vector.load %arg8[%c1_124, %c0_125, %c0_126] : memref<2x1x32xf32, #tpu.memory_space<vmem>>, vector<1x1x32xf32>
    %321 = vector.shape_cast %320 : vector<1x1x32xf32> to vector<1x32xf32>
    %322 = vector.broadcast %321 : vector<1x32xf32> to vector<48x32xf32>
    %323 = arith.addf %319, %322 : vector<48x32xf32>
    %324 = arith.addf %203, %323 : vector<48x32xf32>
    %c1_127 = arith.constant 1 : index
    %c0_128 = arith.constant 0 : index
    %c0_129 = arith.constant 0 : index
    %325 = vector.load %arg11[%c1_127, %c0_128, %c0_129] : memref<2x1x32xf32, #tpu.memory_space<vmem>>, vector<1x1x32xf32>
    %326 = vector.shape_cast %325 : vector<1x1x32xf32> to vector<1x32xf32>
    %c1_130 = arith.constant 1 : index
    %c0_131 = arith.constant 0 : index
    %c0_132 = arith.constant 0 : index
    %327 = vector.load %arg12[%c1_130, %c0_131, %c0_132] : memref<2x1x32xf32, #tpu.memory_space<vmem>>, vector<1x1x32xf32>
    %328 = vector.shape_cast %327 : vector<1x1x32xf32> to vector<1x32xf32>
    %cst_133 = arith.constant dense<0.000000e+00> : vector<48xf32>
    %329 = vector.multi_reduction <add>, %324, %cst_133 [1] : vector<48x32xf32> to vector<48xf32>
    %330 = vector.shape_cast %329 : vector<48xf32> to vector<48x1xf32>
    %cst_134 = arith.constant 3.200000e+01 : f32
    %331 = vector.broadcast %cst_134 : f32 to vector<48x1xf32>
    %332 = arith.divf %330, %331 : vector<48x1xf32>
    %333 = vector.broadcast %332 : vector<48x1xf32> to vector<48x32xf32>
    %334 = arith.subf %324, %333 : vector<48x32xf32>
    %335 = arith.mulf %334, %334 : vector<48x32xf32>
    %cst_135 = arith.constant dense<0.000000e+00> : vector<48xf32>
    %336 = vector.multi_reduction <add>, %335, %cst_135 [1] : vector<48x32xf32> to vector<48xf32>
    %337 = vector.shape_cast %336 : vector<48xf32> to vector<48x1xf32>
    %cst_136 = arith.constant 3.200000e+01 : f32
    %338 = vector.broadcast %cst_136 : f32 to vector<48x1xf32>
    %339 = arith.divf %337, %338 : vector<48x1xf32>
    %340 = vector.broadcast %332 : vector<48x1xf32> to vector<48x32xf32>
    %341 = arith.subf %324, %340 : vector<48x32xf32>
    %cst_137 = arith.constant 9.99999974E-6 : f32
    %342 = vector.broadcast %cst_137 : f32 to vector<48x1xf32>
    %343 = arith.addf %339, %342 : vector<48x1xf32>
    %344 = math.rsqrt %343 : vector<48x1xf32>
    %345 = vector.broadcast %344 : vector<48x1xf32> to vector<48x32xf32>
    %346 = arith.mulf %341, %345 : vector<48x32xf32>
    %347 = vector.broadcast %326 : vector<1x32xf32> to vector<48x32xf32>
    %348 = arith.mulf %346, %347 : vector<48x32xf32>
    %349 = vector.broadcast %328 : vector<1x32xf32> to vector<48x32xf32>
    %350 = arith.addf %348, %349 : vector<48x32xf32>
    %351 = arith.truncf %350 : vector<48x32xf32> to vector<48x32xbf16>
    %c1_138 = arith.constant 1 : index
    %c0_139 = arith.constant 0 : index
    %c0_140 = arith.constant 0 : index
    %352 = vector.load %arg13[%c1_138, %c0_139, %c0_140] : memref<2x32x128xbf16, #tpu.memory_space<vmem>>, vector<1x32x128xbf16>
    %353 = vector.shape_cast %352 : vector<1x32x128xbf16> to vector<32x128xbf16>
    %cst_141 = arith.constant dense<0.000000e+00> : vector<48x128xf32>
    %354 = tpu.matmul %351, %353, %cst_141 {dimension_numbers = #tpu.dot_dimension_numbers<[1], [0], [0], [1], [0, 0, 1, 1], [], []>} : vector<48x32xbf16>, vector<32x128xbf16>, vector<48x128xf32> -> vector<48x128xf32>
    %c1_142 = arith.constant 1 : index
    %c0_143 = arith.constant 0 : index
    %c0_144 = arith.constant 0 : index
    %355 = vector.load %arg14[%c1_142, %c0_143, %c0_144] : memref<2x1x128xf32, #tpu.memory_space<vmem>>, vector<1x1x128xf32>
    %356 = vector.shape_cast %355 : vector<1x1x128xf32> to vector<1x128xf32>
    %357 = vector.broadcast %356 : vector<1x128xf32> to vector<48x128xf32>
    %358 = arith.addf %354, %357 : vector<48x128xf32>
    %cst_145 = arith.constant 0.000000e+00 : f32
    %359 = vector.broadcast %cst_145 : f32 to vector<48x128xf32>
    %360 = arith.maximumf %358, %359 : vector<48x128xf32>
    %361 = arith.truncf %360 : vector<48x128xf32> to vector<48x128xbf16>
    %c1_146 = arith.constant 1 : index
    %c0_147 = arith.constant 0 : index
    %c0_148 = arith.constant 0 : index
    %362 = vector.load %arg15[%c1_146, %c0_147, %c0_148] : memref<2x128x32xbf16, #tpu.memory_space<vmem>>, vector<1x128x32xbf16>
    %363 = vector.shape_cast %362 : vector<1x128x32xbf16> to vector<128x32xbf16>
    %cst_149 = arith.constant dense<0.000000e+00> : vector<48x32xf32>
    %364 = tpu.matmul %361, %363, %cst_149 {dimension_numbers = #tpu.dot_dimension_numbers<[1], [0], [0], [1], [0, 0, 1, 1], [], []>} : vector<48x128xbf16>, vector<128x32xbf16>, vector<48x32xf32> -> vector<48x32xf32>
    %c1_150 = arith.constant 1 : index
    %c0_151 = arith.constant 0 : index
    %c0_152 = arith.constant 0 : index
    %365 = vector.load %arg16[%c1_150, %c0_151, %c0_152] : memref<2x1x32xf32, #tpu.memory_space<vmem>>, vector<1x1x32xf32>
    %366 = vector.shape_cast %365 : vector<1x1x32xf32> to vector<1x32xf32>
    %367 = vector.broadcast %366 : vector<1x32xf32> to vector<48x32xf32>
    %368 = arith.addf %364, %367 : vector<48x32xf32>
    %369 = arith.addf %324, %368 : vector<48x32xf32>
    %370 = vector.extract_strided_slice %369 {offsets = [16, 0], sizes = [8, 32], strides = [1, 1]} : vector<48x32xf32> to vector<8x32xf32>
    %371 = vector.extract_strided_slice %369 {offsets = [40, 0], sizes = [8, 32], strides = [1, 1]} : vector<48x32xf32> to vector<8x32xf32>
    %372 = tpu.concatenate %370, %371 in 0 : vector<8x32xf32>, vector<8x32xf32> -> vector<16x32xf32>
    %373 = vector.shape_cast %1 : vector<1x4xf32> to vector<1x4xf32>
    %374 = vector.broadcast %373 : vector<1x4xf32> to vector<8x4xf32>
    %375 = vector.shape_cast %2 : vector<1x4xf32> to vector<1x4xf32>
    %376 = vector.broadcast %375 : vector<1x4xf32> to vector<8x4xf32>
    %377 = tpu.concatenate %374, %376 in 0 : vector<8x4xf32>, vector<8x4xf32> -> vector<16x4xf32>
    %378 = arith.truncf %372 : vector<16x32xf32> to vector<16x32xbf16>
    %c0_153 = arith.constant 0 : index
    %c0_154 = arith.constant 0 : index
    %379 = vector.load %arg17[%c0_153, %c0_154] : memref<32x4xbf16, #tpu.memory_space<vmem>>, vector<32x4xbf16>
    %cst_155 = arith.constant dense<0.000000e+00> : vector<16x4xf32>
    %380 = tpu.matmul %378, %379, %cst_155 {dimension_numbers = #tpu.dot_dimension_numbers<[1], [0], [0], [1], [0, 0, 1, 1], [], []>} : vector<16x32xbf16>, vector<32x4xbf16>, vector<16x4xf32> -> vector<16x4xf32>
    %c0_156 = arith.constant 0 : index
    %c0_157 = arith.constant 0 : index
    %381 = vector.load %arg18[%c0_156, %c0_157] : memref<1x4xf32, #tpu.memory_space<vmem>>, vector<1x4xf32>
    %382 = vector.broadcast %381 : vector<1x4xf32> to vector<16x4xf32>
    %383 = arith.addf %380, %382 : vector<16x4xf32>
    %384 = arith.addf %383, %377 : vector<16x4xf32>
    %c0_158 = arith.constant 0 : index
    %c0_159 = arith.constant 0 : index
    %385 = vector.load %arg19[%c0_158, %c0_159] : memref<16x4xf32, #tpu.memory_space<vmem>>, vector<16x4xf32>
    tpu.vector_store %arg19[%c0_158, %c0_159], %384 {strides = array<i32>} : memref<16x4xf32, #tpu.memory_space<vmem>>, vector<16x4xf32>,
    return
  }
}

</mosaic_0001>

<bundles_post_ra>
// kernel: eq.8
= control target key start
LH: loop header
LB: loop body
LE: loop exit
PB: predicated region body
PF: predicated region fallthrough
CT: control target
= control target key end

     0   :  { %vm7_vm0 = vcmask 195584   ;;  %vm13_vm1 = vcmask 392384   ;;  %s39_s0 = inlined_call_operand.vmem [shape: s32[2,24], index: 0, kind: input, shape index: {}]   ;;  %s40_s1 = inlined_call_operand.vmem [shape: s32[48], index: 1, kind: output, shape index: {}]  }
   0x1   :  { %v4_v0 = vld [vmem:[%s39_s0] sm:$0x3]  ;;  %s22_s0 = smov 24  }
   0x2   :  { %5 = vst [vmem:[#allocation1] sm:$0x3] %v4_v0 }
   0x9   :  { %v10_v1 = vld [vmem:[#allocation1 + $0x1] sm:$0x1]   ;;  %v6_v2 = vld [vmem:[#allocation1] sm:$0x1]  }
   0xa   :  { %11 = vrot.lane.b32.xlu0 %v10_v1, %s22_s0  ;;  %8 = vst.msk [vmem:[#allocation0] sm:$0x1] %vm7_vm0, %v6_v2  }
  0x7c   :  { %v12_v3 = vpop.permute.xlu0 %11  }
  0x7d   :  { %14 = vst.msk [vmem:[#allocation0] sm:$0x1] %vm13_vm1, %v12_v3  }
  0x84   :  { %v18_v4 = vld [vmem:[#allocation0] sm:$0x1] }
  0x85   :  { %20 = vst [vmem:[%s40_s1] sm:$0x1] %v18_v4 }

// kernel: forward.1
= control target key start
LH: loop header
LB: loop body
LE: loop exit
PB: predicated region body
PF: predicated region fallthrough
CT: control target
= control target key end

     0   :  { %v69_v0 = vlaneseq  ;;  %v4911_v1 = vmov 3   ;;  %v4912_v2 = vmov 1   ;;  %v4913_v13 = vmov 2   ;;  %s4918_s22 = smov 88   ;;  %s4920_s23 = smov 120   ;;  %s6574_s0 = inlined_call_operand.vmem [shape: f32[48,4], index: 0, kind: input, shape index: {}]   ;;  %s6575_s1 = inlined_call_operand.vmem [shape: f32[48,32], index: 1, kind: input, shape index: {}]   ;;  %s6576_s4 = inlined_call_operand.vmem [shape: f32[1,32], index: 4, kind: input, shape index: {}]   ;;  %s6577_s3 = inlined_call_operand.vmem [shape: f32[4,32], index: 3, kind: input, shape index: {}]   ;;  %s6578_s5 = inlined_call_operand.vmem [shape: bf16[2,32,96], index: 5, kind: input, shape index: {}]   ;;  %s6579_s9 = inlined_call_operand.vmem [shape: f32[2,1,32], index: 9, kind: input, shape index: {}]   ;;  %s6580_s10 = inlined_call_operand.vmem [shape: f32[2,1,32], index: 10, kind: input, shape index: {}]   ;;  %s6581_s6 = inlined_call_operand.vmem [shape: f32[2,1,96], index: 6, kind: input, shape index: {}]   ;;  %s6582_s2 = inlined_call_operand.vmem [shape: f32[48,48], index: 2, kind: input, shape index: {}]   ;;  %s6583_s7 = inlined_call_operand.vmem [shape: bf16[2,32,32], index: 7, kind: input, shape index: {}]   ;;  %s6584_s8 = inlined_call_operand.vmem [shape: f32[2,1,32], index: 8, kind: input, shape index: {}]   ;;  %s6585_s13 = inlined_call_operand.vmem [shape: bf16[2,32,128], index: 13, kind: input, shape index: {}]   ;;  %s6586_s15 = inlined_call_operand.vmem [shape: bf16[2,128,32], index: 15, kind: input, shape index: {}]   ;;  %s6587_s11 = inlined_call_operand.vmem [shape: f32[2,1,32], index: 11, kind: input, shape index: {}]   ;;  %s6588_s12 = inlined_call_operand.vmem [shape: f32[2,1,32], index: 12, kind: input, shape index: {}]   ;;  %s6589_s14 = inlined_call_operand.vmem [shape: f32[2,1,128], index: 14, kind: input, shape index: {}]   ;;  %s6590_s16 = inlined_call_operand.vmem [shape: f32[2,1,32], index: 16, kind: input, shape index: {}]   ;;  %s6591_s17 = inlined_call_operand.vmem [shape: bf16[32,4], index: 17, kind: input, shape index: {}]   ;;  %s6592_s18 = inlined_call_operand.vmem [shape: f32[1,4], index: 18, kind: input, shape index: {}]   ;;  %s6593_s19 = inlined_call_operand.vmem [shape: f32[16,4], index: 19, kind: output, shape index: {}]  }
   0x1   :  { %6611 = sst [smem:[#allocation2_spill]] %s6574_s0  ;;  %4532 = vset.pattern.permute.xlu0 %v4911_v1  ;;  %4529 = vset.pattern.permute.xlu1 %v4912_v2  ;;  %v4914_v16 = vmov 0   ;;  %vm280_vm0 = vcmask 261120   ;;  %vm4916_vm1 = vmmov 0   ;;  %s4921_s24 = smov 72   ;;  %vm488_vm2 = vcmask 64512  }
   0x2   :  { %6612 = sst [smem:[#allocation3_spill]] %s6575_s1  ;;  %v70_v3 = vshrl.u32 %v69_v0, 7  ;;  %s6615_s20 = sld [smem:[#allocation2_spill]]  ;;  %vm576_vm3 = vcmask 392192   ;;  %vm1528_vm4 = vcmask 130048   ;;  %vm1535_vm5 = vcmask 195584  }
   0x3   :  { %6613 = sst [smem:[#allocation4_spill]] %s6576_s4  ;;  %s6616_s0 = sld [smem:[#allocation3_spill]]  ;;  %vm3748_vm6 = vcmask 31744  }
   0x4   :  { %6614 = sst [smem:[#allocation5_spill]] %s6577_s3  ;;  %v71_v5 = vsub.s32 7, %v70_v3  ;;  %s6617_s21 = sld [smem:[#allocation4_spill]] }
   0x5   :  { %s6618_s4 = sld [smem:[#allocation5_spill]]  ;;  %s4917_s1 = smov 96  }
   0x6   :  { %s4923_s25 = smov 104   ;;  %s6609_s3 = smov 64  }
   0x7   :  { %s6607_s26 = smov 56   ;;  %s6605_s27 = smov 48  }
   0x8   :  { %v64_v4 = vld [vmem:[%s6615_s20 + $0x8] sm:$0xff]  ;;  %v63_v6 = vld [vmem:[%s6615_s20] sm:$0xff]  ;;  %v66_v12 = vld [vmem:[%s6615_s20 + $0x18] sm:$0xff]  ;;  %s6597_s30 = smov 40  }
   0x9   :  { %v5037_v7 = vrot.slane %v64_v4, %v71_v5  ;;  %v67_v8 = vld [vmem:[%s6615_s20 + $0x20] sm:$0xff]  ;;  %v65_v15 = vld [vmem:[%s6615_s20 + $0x10] sm:$0xff]  ;;  %v68_v19 = vld [vmem:[%s6615_s20 + $0x28] sm:$0xff]  ;;  %s6603_s20 = smov 8  }
   0xa   :  { %v5044_v11 = vrot.slane %v67_v8, %v71_v5  ;;  %v83_v27 = vld [vmem:[%s6616_s0] sm:$0xff]  ;;  %v84_v34 = vld [vmem:[%s6616_s0 + $0x8] sm:$0xff]  ;;  %v85_v59 = vld [vmem:[%s6616_s0 + $0x10] sm:$0xff] }
   0xb   :  { %v78_v9 = vsub.f32 %v64_v4, %v5037_v7  ;;  %v77_v10 = vsub.f32 %v63_v6, %v5037_v7  ;;  %v79_v17 = vsub.f32 %v65_v15, %v5037_v7  ;;  %v5065_v28 = vld [vmem:[%s6617_s21] ss:$0 sm:$0xff]  ;;  %v5076_v31 = vld [vmem:[%s6618_s4 + $0x1] ss:$0 sm:$0xff]  ;;  %v5085_v36 = vld [vmem:[%s6618_s4 + $0x2] ss:$0 sm:$0xff] }
   0xc   :  { %v80_v14 = vsub.f32 %v66_v12, %v5044_v11  ;;  %v81_v18 = vsub.f32 %v67_v8, %v5044_v11  ;;  %v82_v20 = vsub.f32 %v68_v19, %v5044_v11  ;;  %v5070_v29 = vld [vmem:[%s6618_s4] ss:$0 sm:$0xff]  ;;  %v96_v30 = vadd.f32 %v5065_v28, %v83_v27  ;;  %v5093_v41 = vld [vmem:[%s6618_s4 + $0x3] ss:$0 sm:$0xff]  ;;  %v86_v62 = vld [vmem:[%s6616_s0 + $0x18] sm:$0xff]  ;;  %s4919_s4 = smov 80  }
   0xd   :  { %237 = vperm.xlu0 %4532, %v78_v9   ;;  %151 = vperm.xlu1 %4529, %v77_v10   ;;  %v97_v40 = vadd.f32 %v5065_v28, %v84_v34  ;;  %v98_v0 = vadd.f32 %v5065_v28, %v85_v59  ;;  %v88_v34 = vld [vmem:[%s6616_s0 + $0x28] sm:$0xff]  ;;  %s6599_s21 = smov 24  }
  0x11   :  { %4533 = vset.pattern.permute.xlu0 %v4913_v13  ;;  %155 = vperm.xlu1 %4529, %v78_v9  }
  0x12   :  { %192 = vperm.xlu0 %4533, %v77_v10  }
  0x15   :  { %4530 = vset.pattern.permute.xlu1 %v4913_v13 }
  0x16   :  { %204 = vperm.xlu0 %4533, %v80_v14   ;;  %196 = vperm.xlu1 %4530, %v78_v9  }
  0x1a   :  { %4537 = vset.pattern.permute.xlu0 %v4914_v16  ;;  %4531 = vset.pattern.permute.xlu1 %v4911_v1 }
  0x1b   :  { %105 = vperm.xlu0 %4537, %v77_v10   ;;  %233 = vperm.xlu1 %4531, %v77_v10  }
  0x1f   :  { %110 = vperm.xlu0 %4537, %v78_v9   ;;  %4534 = vset.pattern.permute.xlu1 %v4914_v16 }
  0x20   :  { %115 = vperm.xlu1 %4534, %v79_v17  }
  0x23   :  { %125 = vperm.xlu0 %4537, %v81_v18  }
  0x24   :  { %120 = vperm.xlu1 %4534, %v80_v14  }
  0x27   :  { %4539 = vset.pattern.permute.xlu0 %v4912_v2 }
  0x28   :  { %159 = vperm.xlu0 %4539, %v79_v17   ;;  %4535 = vset.pattern.permute.xlu1 %v4912_v2 }
  0x29   :  { %163 = vperm.xlu1 %4535, %v80_v14  }
  0x2c   :  { %171 = vperm.xlu0 %4539, %v82_v20  }
  0x2d   :  { %4536 = vset.pattern.permute.xlu1 %v4913_v13 }
  0x2e   :  { %200 = vperm.xlu1 %4536, %v79_v17  }
  0x30   :  { %4543 = vset.pattern.permute.xlu0 %v4911_v1 }
  0x31   :  { %249 = vperm.xlu0 %4543, %v81_v18  }
  0x32   :  { %4538 = vset.pattern.permute.xlu1 %v4911_v1 }
  0x33   :  { %241 = vperm.xlu1 %4538, %v79_v17  }
  0x37   :  { %245 = vperm.xlu1 %4538, %v80_v14  }
  0x3b   :  { %4540 = vset.pattern.permute.xlu1 %v4914_v16 }
  0x3c   :  { %130 = vperm.xlu1 %4540, %v82_v20  }
  0x40   :  { %4541 = vset.pattern.permute.xlu1 %v4912_v2  ;;  %v99_v2 = vadd.f32 %v5065_v28, %v86_v62 }
  0x41   :  { %167 = vperm.xlu1 %4541, %v81_v18  }
  0x45   :  { %4542 = vset.pattern.permute.xlu1 %v4913_v13 }
  0x46   :  { %208 = vperm.xlu1 %4542, %v81_v18  }
  0x4a   :  { %212 = vperm.xlu1 %4542, %v82_v20  }
  0x4e   :  { %4544 = vset.pattern.permute.xlu1 %v4911_v1 }
  0x4f   :  { %253 = vperm.xlu1 %4544, %v82_v20  }
  0x8c   :  { %v152_v21 = vpop.permute.xlu1 %151  ;;  %v238_v22 = vpop.permute.xlu0 %237 }
  0x8d   :  { %v178_v37 = vmul.f32 %v5076_v31, %v152_v21  ;;  %v261_v50 = vmul.f32 %v5093_v41, %v238_v22 }
  0x90   :  { %v156_v23 = vpop.permute.xlu1 %155 }
  0x91   :  { %v193_v24 = vpop.permute.xlu0 %192  ;;  %v179_v46 = vmul.f32 %v5076_v31, %v156_v23 }
  0x92   :  { %v219_v38 = vmul.f32 %v5085_v36, %v193_v24 }
  0x95   :  { %v197_v25 = vpop.permute.xlu1 %196  ;;  %v205_v26 = vpop.permute.xlu0 %204 }
  0x96   :  { %v220_v51 = vmul.f32 %v5085_v36, %v197_v25  ;;  %v222_v14 = vmul.f32 %v5085_v36, %v205_v26  ;;  %v87_v26 = vld [vmem:[%s6616_s0 + $0x20] sm:$0xff]  ;;  %s4922_s0 = smov 112  }
  0x9a   :  { %v106_v32 = vpop.permute.xlu0 %105  ;;  %v234_v33 = vpop.permute.xlu1 %233 }
  0x9b   :  { %v137_v35 = vmul.f32 %v5070_v29, %v106_v32  ;;  %v260_v48 = vmul.f32 %v5093_v41, %v234_v33 }
  0x9d   :  { %v143_v39 = vadd.f32 %v137_v35, %v96_v30  ;;  %v100_v30 = vadd.f32 %v5065_v28, %v87_v26 }
  0x9e   :  { %v111_v42 = vpop.permute.xlu0 %110 }
  0x9f   :  { %v184_v43 = vadd.f32 %v178_v37, %v143_v39  ;;  %v138_v44 = vmul.f32 %v5070_v29, %v111_v42  ;;  %v116_v45 = vpop.permute.xlu1 %115  ;;  %v101_v39 = vadd.f32 %v5065_v28, %v88_v34 }
  0xa0   :  { %v139_v1 = vmul.f32 %v5070_v29, %v116_v45 }
  0xa1   :  { %v225_v47 = vadd.f32 %v219_v38, %v184_v43  ;;  %v144_v49 = vadd.f32 %v138_v44, %v97_v40 }
  0xa2   :  { %v126_v55 = vpop.permute.xlu0 %125  ;;  %v145_v6 = vadd.f32 %v139_v1, %v98_v0 }
  0xa3   :  { %v5100_v52 = vadd.f32 %v260_v48, %v225_v47  ;;  %v185_v53 = vadd.f32 %v179_v46, %v144_v49  ;;  %v121_v54 = vpop.permute.xlu1 %120  ;;  %v141_v32 = vmul.f32 %v5070_v29, %v126_v55 }
  0xa4   :  { %v140_v3 = vmul.f32 %v5070_v29, %v121_v54 }
  0xa5   :  { %v281_v56 = vsel %vm280_vm0, %v5100_v52, 0.0  ;;  %v226_v57 = vadd.f32 %v220_v51, %v185_v53  ;;  %v147_v38 = vadd.f32 %v141_v32, %v100_v30 }
  0xa6   :  { %282 = vadd.xlane.f32.xlu1 %v281_v56  ;;  %v146_v10 = vadd.f32 %v140_v3, %v99_v2 }
  0xa7   :  { %v5104_v58 = vadd.f32 %v261_v50, %v226_v57  ;;  %v160_v63 = vpop.permute.xlu0 %159 }
  0xa8   :  { %v164_v60 = vpop.permute.xlu1 %163  ;;  %v180_v4 = vmul.f32 %v5076_v31, %v160_v63 }
  0xa9   :  { %v284_v61 = vsel %vm280_vm0, %v5104_v58, 0.0  ;;  %v181_v8 = vmul.f32 %v5076_v31, %v164_v60 }
  0xaa   :  { %285 = vadd.xlane.f32.xlu0 %v284_v61  ;;  %v186_v12 = vadd.f32 %v180_v4, %v145_v6 }
  0xab   :  { %v187_v15 = vadd.f32 %v181_v8, %v146_v10  ;;  %v172_v27 = vpop.permute.xlu0 %171 }
  0xac   :  { %v183_v48 = vmul.f32 %v5076_v31, %v172_v27 }
  0xad   :  { %v201_v5 = vpop.permute.xlu1 %200  ;;  %v228_v20 = vadd.f32 %v222_v14, %v187_v15 }
  0xae   :  { %v221_v9 = vmul.f32 %v5085_v36, %v201_v5 }
  0xb0   :  { %v227_v16 = vadd.f32 %v221_v9, %v186_v12  ;;  %v250_v37 = vpop.permute.xlu0 %249 }
  0xb1   :  { %v264_v45 = vmul.f32 %v5093_v41, %v250_v37 }
  0xb2   :  { %v242_v13 = vpop.permute.xlu1 %241 }
  0xb3   :  { %v262_v17 = vmul.f32 %v5093_v41, %v242_v13 }
  0xb5   :  { %v5123_v18 = vadd.f32 %v262_v17, %v227_v16  ;;  %v4915_v16 = vmov 0.0   ;;  %v4635_v17 = vld [vmem:[%s6578_s5] sm:$0xff]  }
  0xb6   :  { %v246_v19 = vpop.permute.xlu1 %245  ;;  %4061 = vmatprep.subr.bf16.mxu1 %v4915_v16  ;;  %4095 = vmatprep.subr.bf16.mxu0 %v4915_v16 }
  0xb7   :  { %v263_v21 = vmul.f32 %v5093_v41, %v246_v19  ;;  %v287_v22 = vsel %vm280_vm0, %v5123_v18, 0.0  ;;  %4062 = vmatpush3.bf16.msra.mxu1 %v4635_v17  ;;  %4065 = vmatprep.mubr.msk.bf16.mxu1 %vm4916_vm1, %v4915_v16 }
  0xb8   :  { %288 = vadd.xlane.f32.xlu0 %v287_v22  ;;  %4063 = vmatprep.subr.bf16.mxu1 %v4915_v16 }
  0xb9   :  { %v5128_v23 = vadd.f32 %v263_v21, %v228_v20  ;;  %v4636_v21 = vld [vmem:[%s6578_s5 + $0x8] sm:$0xff]   ;;  %4101 = vmatprep.mubr.msk.bf16.mxu0 %vm4916_vm1, %v4915_v16 }
  0xbb   :  { %v131_v24 = vpop.permute.xlu1 %130  ;;  %v290_v25 = vsel %vm280_vm0, %v5128_v23, 0.0  ;;  %4064 = vmatpush3.bf16.msra.mxu1 %v4636_v21  ;;  %v3762_v21 = vld [vmem:[%s6581_s6] ss:$0 sm:$0xff] }
  0xbc   :  { %291 = vadd.xlane.f32.xlu1 %v290_v25  ;;  %v142_v40 = vmul.f32 %v5070_v29, %v131_v24  ;;  %4077 = vmatprep.subr.bf16.mxu1 %v4915_v16 }
  0xbe   :  { %v148_v47 = vadd.f32 %v142_v40, %v101_v39 }
  0xc0   :  { %v168_v33 = vpop.permute.xlu1 %167  ;;  %v189_v53 = vadd.f32 %v183_v48, %v148_v47 }
  0xc1   :  { %v182_v35 = vmul.f32 %v5076_v31, %v168_v33 }
  0xc3   :  { %v188_v43 = vadd.f32 %v182_v35, %v147_v38 }
  0xc5   :  { %v209_v42 = vpop.permute.xlu1 %208 }
  0xc6   :  { %v223_v44 = vmul.f32 %v5085_v36, %v209_v42  ;;  %v3760_v42 = vld [vmem:[%s6579_s9] ss:$0 sm:$0xff] }
  0xc8   :  { %v229_v46 = vadd.f32 %v223_v44, %v188_v43 }
  0xc9   :  { %v213_v49 = vpop.permute.xlu1 %212 }
  0xca   :  { %v5146_v50 = vadd.f32 %v264_v45, %v229_v46  ;;  %v224_v51 = vmul.f32 %v5085_v36, %v213_v49  ;;  %v3761_v49 = vld [vmem:[%s6580_s10] ss:$0 sm:$0xff] }
  0xcc   :  { %v293_v28 = vsel %vm280_vm0, %v5146_v50, 0.0  ;;  %v230_v54 = vadd.f32 %v224_v51, %v189_v53 }
  0xcd   :  { %294 = vadd.xlane.f32.xlu0 %v293_v28 }
  0xce   :  { %v254_v29 = vpop.permute.xlu1 %253 }
  0xcf   :  { %v265_v55 = vmul.f32 %v5093_v41, %v254_v29 }
  0xd1   :  { %v5152_v56 = vadd.f32 %v265_v55, %v230_v54 }
  0xd3   :  { %v296_v57 = vsel %vm280_vm0, %v5152_v56, 0.0 }
  0xd4   :  { %297 = vadd.xlane.f32.xlu1 %v296_v57 }
 0x133   :  { %v283_v31 = vpop.xlane.xlu1 %282 }
 0x134   :  { %v300_v59 = vmul.f32 0.03125, %v283_v31 }
 0x136   :  { %v306_v60 = vsub.f32 %v5100_v52, %v300_v59 }
 0x137   :  { %v286_v36 = vpop.xlane.xlu0 %285 }
 0x138   :  { %v301_v61 = vmul.f32 0.03125, %v286_v36  ;;  %v312_v62 = vmul.f32 %v306_v60, %v306_v60 }
 0x13a   :  { %v307_v63 = vsub.f32 %v5104_v58, %v301_v61  ;;  %v318_v0 = vsel %vm280_vm0, %v312_v62, 0.0 }
 0x13b   :  { %319 = vadd.xlane.f32.xlu0 %v318_v0 }
 0x13c   :  { %v313_v1 = vmul.f32 %v307_v63, %v307_v63 }
 0x13e   :  { %v321_v41 = vsel %vm280_vm0, %v313_v1, 0.0 }
 0x13f   :  { %322 = vadd.xlane.f32.xlu1 %v321_v41 }
 0x145   :  { %v289_v2 = vpop.xlane.xlu0 %288 }
 0x146   :  { %v302_v3 = vmul.f32 0.03125, %v289_v2 }
 0x148   :  { %v5161_v4 = vsub.f32 %v5123_v18, %v302_v3 }
 0x149   :  { %v292_v5 = vpop.xlane.xlu1 %291 }
 0x14a   :  { %v303_v6 = vmul.f32 0.03125, %v292_v5  ;;  %v314_v8 = vmul.f32 %v5161_v4, %v5161_v4 }
 0x14c   :  { %v5166_v9 = vsub.f32 %v5128_v23, %v303_v6  ;;  %v324_v10 = vsel %vm280_vm0, %v314_v8, 0.0 }
 0x14d   :  { %325 = vadd.xlane.f32.xlu0 %v324_v10 }
 0x14e   :  { %v315_v12 = vmul.f32 %v5166_v9, %v5166_v9 }
 0x150   :  { %v327_v13 = vsel %vm280_vm0, %v315_v12, 0.0 }
 0x151   :  { %328 = vadd.xlane.f32.xlu1 %v327_v13 }
 0x15a   :  { %v295_v14 = vpop.xlane.xlu0 %294 }
 0x15b   :  { %v304_v15 = vmul.f32 0.03125, %v295_v14 }
 0x15d   :  { %v5178_v19 = vsub.f32 %v5146_v50, %v304_v15 }
 0x15f   :  { %v316_v20 = vmul.f32 %v5178_v19, %v5178_v19 }
 0x161   :  { %v298_v22 = vpop.xlane.xlu1 %297  ;;  %v330_v24 = vsel %vm280_vm0, %v316_v20, 0.0 }
 0x162   :  { %v305_v25 = vmul.f32 0.03125, %v298_v22  ;;  %331 = vadd.xlane.f32.xlu0 %v330_v24 }
 0x164   :  { %v311_v26 = vsub.f32 %v5152_v56, %v305_v25 }
 0x166   :  { %v317_v27 = vmul.f32 %v311_v26, %v311_v26 }
 0x168   :  { %v333_v30 = vsel %vm280_vm0, %v317_v27, 0.0 }
 0x169   :  { %334 = vadd.xlane.f32.xlu1 %v333_v30 }
 0x1c8   :  { %v320_v32 = vpop.xlane.xlu0 %319 }
 0x1c9   :  { %v336_v33 = vmul.f32 0.03125, %v320_v32 }
 0x1cb   :  { %v342_v34 = vadd.f32 1e-05, %v336_v33 }
 0x1cc   :  { %v323_v35 = vpop.xlane.xlu1 %322 }
 0x1cd   :  { %4665 = vrsqrt.f32 %v342_v34  ;;  %v337_v37 = vmul.f32 0.03125, %v323_v35 }
 0x1cf   :  { %v343_v38 = vadd.f32 1e-05, %v337_v37 }
 0x1d1   :  { %4667 = vrsqrt.f32 %v343_v38 }
 0x1d7   :  { %v4666_v39 = vpop.eup %4665 }
 0x1d8   :  { %v354_v40 = vmul.f32 %v4666_v39, %v306_v60 }
 0x1da   :  { %v326_v43 = vpop.xlane.xlu0 %325  ;;  %v366_v47 = vmul.f32 %v3760_v42, %v354_v40 }
 0x1db   :  { %v4668_v44 = vpop.eup %4667  ;;  %v338_v45 = vmul.f32 0.03125, %v326_v43 }
 0x1dc   :  { %v355_v46 = vmul.f32 %v4668_v44, %v307_v63  ;;  %v378_v29 = vadd.f32 %v3761_v49, %v366_v47 }
 0x1dd   :  { %v344_v48 = vadd.f32 1e-05, %v338_v45 }
 0x1de   :  { %v329_v51 = vpop.xlane.xlu1 %328  ;;  %v367_v28 = vmul.f32 %v3760_v42, %v355_v46 }
 0x1df   :  { %4669 = vrsqrt.f32 %v344_v48  ;;  %v339_v53 = vmul.f32 0.03125, %v329_v51 }
 0x1e0   :  { %v379_v54 = vadd.f32 %v3761_v49, %v367_v28 }
 0x1e1   :  { %v345_v55 = vadd.f32 1e-05, %v339_v53 }
 0x1e2   :  { %v384_v57 = vpack.c.bf16 %v379_v54, %v378_v29 }
 0x1e3   :  { %4671 = vrsqrt.f32 %v345_v55 }
 0x1e4   :  { %4066 = vmatmul.mubr.msk.bf16.vlgmr.msra.gmra.mrb[0].mxu1 %vm280_vm0, %v384_v57 }
 0x1e5   :  { %4069 = vmatprep.mubr.msk.bf16.mxu1 %vm4916_vm1, %v4915_v16 }
 0x1e9   :  { %v4670_v31 = vpop.eup %4669 }
 0x1ea   :  { %v356_v59 = vmul.f32 %v4670_v31, %v5161_v4 }
 0x1ec   :  { %v368_v61 = vmul.f32 %v3760_v42, %v356_v59 }
 0x1ed   :  { %v4672_v60 = vpop.eup %4671 }
 0x1ee   :  { %v357_v36 = vmul.f32 %v4672_v60, %v5166_v9  ;;  %v380_v41 = vadd.f32 %v3761_v49, %v368_v61 }
 0x1ef   :  { %v332_v62 = vpop.xlane.xlu0 %331 }
 0x1f0   :  { %v340_v63 = vmul.f32 0.03125, %v332_v62  ;;  %v369_v0 = vmul.f32 %v3760_v42, %v357_v36 }
 0x1f2   :  { %v346_v1 = vadd.f32 1e-05, %v340_v63  ;;  %v381_v2 = vadd.f32 %v3761_v49, %v369_v0 }
 0x1f4   :  { %v385_v3 = vpack.c.bf16 %v381_v2, %v380_v41  ;;  %4673 = vrsqrt.f32 %v346_v1 }
 0x1f6   :  { %4070 = vmatmul.mubr.msk.bf16.gmra.mrb[4].mxu1 %vm280_vm0, %v385_v3  ;;  %v335_v5 = vpop.xlane.xlu1 %334 }
 0x1f7   :  { %v341_v6 = vmul.f32 0.03125, %v335_v5  ;;  %4073 = vmatprep.mubr.msk.bf16.mxu1 %vm4916_vm1, %v4915_v16 }
 0x1f9   :  { %v347_v4 = vadd.f32 1e-05, %v341_v6 }
 0x1fb   :  { %4675 = vrsqrt.f32 %v347_v4 }
 0x1fe   :  { %v4674_v8 = vpop.eup %4673 }
 0x1ff   :  { %v358_v9 = vmul.f32 %v4674_v8, %v5178_v19 }
 0x201   :  { %v370_v13 = vmul.f32 %v3760_v42, %v358_v9 }
 0x203   :  { %v382_v15 = vadd.f32 %v3761_v49, %v370_v13 }
 0x205   :  { %v4676_v10 = vpop.eup %4675 }
 0x206   :  { %v359_v12 = vmul.f32 %v4676_v10, %v311_v26 }
 0x208   :  { %v371_v14 = vmul.f32 %v3760_v42, %v359_v12 }
 0x20a   :  { %v383_v17 = vadd.f32 %v3761_v49, %v371_v14 }
 0x20c   :  { %v386_v20 = vpack.c.bf16 %v383_v17, %v382_v15 }
 0x20e   :  { %4074 = vmatmul.mubr.msk.bf16.gmra.mrb[8].mxu1 %vm280_vm0, %v386_v20 }
 0x20f   :  { %4083 = vmatprep.mubr.msk.bf16.mxu1 %vm4916_vm1, %v4915_v16 }
 0x2b7   :  { %v453_v22 = vpop.f32.mrb[0].mxu1 }
 0x2b8   :  { %v4067_v24 = vpop.f32.mrb[1].mxu1  ;;  %v454_v19 = vadd.f32 %v3762_v21, %v453_v22 }
 0x2b9   :  { %v456_v25 = vpop.f32.mrb[2].mxu1 }
 0x2ba   :  { %v457_v27 = vadd.f32 %v3762_v21, %v456_v25  ;;  %v4068_v26 = vpop.f32.mrb[3].mxu1 }
 0x2bc   :  { %v5215_v30 = vpack.c.bf16 %v457_v27, %v454_v19  ;;  %v5350_v27 = vld [vmem:[%s6582_s2] sm:$0xff] }
 0x2be   :  { %482 = vrot.lane.b32.xlu0 %v5215_v30, %s4917_s1 }
 0x2c2   :  { %727 = vrot.lane.b32.xlu0 %v5215_v30, %s4918_s22 }
 0x2c9   :  { %v461_v32 = vpop.f32.mrb[4].mxu1 }
 0x2ca   :  { %v4071_v33 = vpop.f32.mrb[5].mxu1  ;;  %v462_v35 = vadd.f32 %v3762_v21, %v461_v32 }
 0x2cb   :  { %v464_v34 = vpop.f32.mrb[6].mxu1 }
 0x2cc   :  { %v465_v37 = vadd.f32 %v3762_v21, %v464_v34  ;;  %v4072_v38 = vpop.f32.mrb[7].mxu1  ;;  %v5355_v34 = vld [vmem:[%s6582_s2 + $0x8] sm:$0xff] }
 0x2ce   :  { %v5221_v39 = vpack.c.bf16 %v465_v37, %v462_v35 }
 0x2d0   :  { %484 = vrot.lane.b32.xlu1 %v5221_v39, %s4917_s1 }
 0x2e1   :  { %v469_v40 = vpop.f32.mrb[8].mxu1 }
 0x2e2   :  { %v4075_v42 = vpop.f32.mrb[9].mxu1  ;;  %v470_v44 = vadd.f32 %v3762_v21, %v469_v40 }
 0x2e3   :  { %v472_v43 = vpop.f32.mrb[10].mxu1 }
 0x2e4   :  { %v473_v45 = vadd.f32 %v3762_v21, %v472_v43  ;;  %v4076_v46 = vpop.f32.mrb[11].mxu1 }
 0x2e6   :  { %v5225_v47 = vpack.c.bf16 %v473_v45, %v470_v44  ;;  %v5370_v45 = vld [vmem:[%s6582_s2 + $0x10] sm:$0xff] }
 0x2e8   :  { %731 = vrot.lane.b32.xlu0 %v5225_v47, %s4918_s22  ;;  %486 = vrot.lane.b32.xlu1 %v5225_v47, %s4917_s1 }
 0x2ec   :  { %970 = vrot.lane.b32.xlu0 %v5215_v30, %s4919_s4  ;;  %729 = vrot.lane.b32.xlu1 %v5221_v39, %s4918_s22 }
 0x2f0   :  { %972 = vrot.lane.b32.xlu0 %v5221_v39, %s4919_s4  ;;  %721 = vrot.lane.b32.xlu1 %v5215_v30, %s4920_s23 }
 0x2f4   :  { %974 = vrot.lane.b32.xlu0 %v5225_v47, %s4919_s4  ;;  %723 = vrot.lane.b32.xlu1 %v5221_v39, %s4920_s23 }
 0x2f8   :  { %1213 = vrot.lane.b32.xlu0 %v5215_v30, %s4921_s24  ;;  %725 = vrot.lane.b32.xlu1 %v5225_v47, %s4920_s23 }
 0x2fc   :  { %1215 = vrot.lane.b32.xlu0 %v5221_v39, %s4921_s24  ;;  %964 = vrot.lane.b32.xlu1 %v5215_v30, %s4922_s0 }
 0x300   :  { %1217 = vrot.lane.b32.xlu0 %v5225_v47, %s4921_s24  ;;  %966 = vrot.lane.b32.xlu1 %v5221_v39, %s4922_s0 }
 0x304   :  { %1209 = vrot.lane.b32.xlu0 %v5221_v39, %s4923_s25  ;;  %968 = vrot.lane.b32.xlu1 %v5225_v47, %s4922_s0 }
 0x308   :  { %642 = vrot.lane.b32.xlu0 %v5221_v39, %s6609_s3  ;;  %1207 = vrot.lane.b32.xlu1 %v5215_v30, %s4923_s25 }
 0x30c   :  { %885 = vrot.lane.b32.xlu0 %v5221_v39, %s6607_s26  ;;  %1211 = vrot.lane.b32.xlu1 %v5225_v47, %s4923_s25 }
 0x310   :  { %1126 = vrot.lane.b32.xlu0 %v5215_v30, %s6605_s27  ;;  %640 = vrot.lane.b32.xlu1 %v5215_v30, %s6609_s3 }
 0x314   :  { %1128 = vrot.lane.b32.xlu0 %v5221_v39, %s6605_s27  ;;  %883 = vrot.lane.b32.xlu1 %v5215_v30, %s6607_s26 }
 0x318   :  { %644 = vrot.lane.b32.xlu1 %v5225_v47, %s6609_s3 }
 0x31c   :  { %887 = vrot.lane.b32.xlu1 %v5225_v47, %s6607_s26 }
 0x330   :  { %v483_v48 = vpop.permute.xlu0 %482 }
 0x331   :  { %v499_v49 = vsel %vm488_vm2, %v483_v48, 0 }
 0x332   :  { %4078 = vmatpush3.bf16.xpose.msra.mxu1 %v499_v49 }
 0x333   :  { %4079 = vmatprep.subr.bf16.mxu1 %v4915_v16 }
 0x334   :  { %v728_v53 = vpop.permute.xlu0 %727 }
 0x335   :  { %v743_v36 = vsel %vm488_vm2, %v728_v53, 0 }
 0x342   :  { %v485_v51 = vpop.permute.xlu1 %484 }
 0x343   :  { %v502_v28 = vsel %vm488_vm2, %v485_v51, 0  ;;  %v5375_v51 = vld [vmem:[%s6582_s2 + $0x18] sm:$0xff] }
 0x344   :  { %4080 = vmatpush3.bf16.xpose.msra.mxu1 %v502_v28 }
 0x345   :  { %4081 = vmatprep.subr.bf16.mxu1 %v4915_v16 }
 0x35a   :  { %v732_v29 = vpop.permute.xlu0 %731  ;;  %v487_v54 = vpop.permute.xlu1 %486 }
 0x35b   :  { %v505_v55 = vsel %vm488_vm2, %v487_v54, 0  ;;  %v749_v3 = vsel %vm488_vm2, %v732_v29, 0 }
 0x35c   :  { %4082 = vmatpush3.bf16.xpose.msra.mxu1 %v505_v55 }
 0x35d   :  { %4113 = vmatprep.subr.bf16.mxu1 %v4915_v16 }
 0x35e   :  { %v971_v57 = vpop.permute.xlu0 %970  ;;  %v730_v31 = vpop.permute.xlu1 %729 }
 0x35f   :  { %v746_v0 = vsel %vm488_vm2, %v730_v31, 0  ;;  %v986_v9 = vsel %vm488_vm2, %v971_v57, 0  ;;  %v5388_v31 = vld [vmem:[%s6582_s2 + $0x20] sm:$0xff] }
 0x362   :  { %v973_v59 = vpop.permute.xlu0 %972  ;;  %v722_v60 = vpop.permute.xlu1 %721 }
 0x363   :  { %4084 = vmatmul.mubr.msk.bf16.vlgmr.msra.gmra.mrb[12].mxu1 %vm488_vm2, %v5215_v30  ;;  %v989_v14 = vsel %vm488_vm2, %v973_v59, 0 }
 0x364   :  { %4114 = vmatpush3.bf16.xpose.msra.mxu1 %v743_v36  ;;  %4087 = vmatprep.mubr.msk.bf16.mxu1 %vm4916_vm1, %v4915_v16 }
 0x365   :  { %4115 = vmatprep.subr.bf16.mxu1 %v4915_v16 }
 0x366   :  { %v724_v61 = vpop.permute.xlu1 %723  ;;  %v975_v62 = vpop.permute.xlu0 %974 }
 0x367   :  { %v992_v21 = vsel %vm488_vm2, %v975_v62, 0  ;;  %v5395_v62 = vld [vmem:[%s6582_s2 + $0x28] sm:$0xff] }
 0x36a   :  { %v726_v63 = vpop.permute.xlu1 %725  ;;  %v1214_v1 = vpop.permute.xlu0 %1213 }
 0x36b   :  { %4088 = vmatmul.mubr.msk.bf16.gmra.mrb[16].mxu1 %vm488_vm2, %v5221_v39  ;;  %v1229_v22 = vsel %vm488_vm2, %v1214_v1, 0 }
 0x36c   :  { %4116 = vmatpush3.bf16.xpose.msra.mxu1 %v746_v0  ;;  %4091 = vmatprep.mubr.msk.bf16.mxu1 %vm4916_vm1, %v4915_v16 }
 0x36d   :  { %4117 = vmatprep.subr.bf16.mxu1 %v4915_v16 }
 0x36e   :  { %v965_v41 = vpop.permute.xlu1 %964  ;;  %v1216_v5 = vpop.permute.xlu0 %1215 }
 0x36f   :  { %v1232_v24 = vsel %vm488_vm2, %v1216_v5, 0 }
 0x372   :  { %v967_v2 = vpop.permute.xlu1 %966  ;;  %v1218_v4 = vpop.permute.xlu0 %1217 }
 0x373   :  { %4092 = vmatmul.mubr.msk.bf16.gmra.mrb[20].mxu1 %vm488_vm2, %v5225_v47  ;;  %v1235_v25 = vsel %vm488_vm2, %v1218_v4, 0 }
 0x374   :  { %4118 = vmatpush3.bf16.xpose.msra.mxu1 %v749_v3  ;;  %4119 = vmatprep.mubr.msk.bf16.mxu1 %vm4916_vm1, %v4915_v16 }
 0x375   :  { %4149 = vmatprep.subr.bf16.mxu1 %v4915_v16 }
 0x376   :  { %v969_v6 = vpop.permute.xlu1 %968  ;;  %v1210_v12 = vpop.permute.xlu0 %1209 }
 0x37a   :  { %v1208_v8 = vpop.permute.xlu1 %1207  ;;  %v643_v15 = vpop.permute.xlu0 %642 }
 0x37b   :  { %4120 = vmatmul.mubr.msk.bf16.vlgmr.msra.gmra.mrb[24].mxu1 %vm488_vm2, %v722_v60 }
 0x37c   :  { %4150 = vmatpush3.bf16.xpose.msra.mxu1 %v986_v9  ;;  %4123 = vmatprep.mubr.msk.bf16.mxu1 %vm4916_vm1, %v4915_v16 }
 0x37d   :  { %4151 = vmatprep.subr.bf16.mxu1 %v4915_v16 }
 0x37e   :  { %v1212_v10 = vpop.permute.xlu1 %1211 }
 0x382   :  { %v641_v13 = vpop.permute.xlu1 %640 }
 0x383   :  { %4096 = vmatpush3.bf16.msra.mxu0 %v641_v13  ;;  %4124 = vmatmul.mubr.msk.bf16.gmra.mrb[28].mxu1 %vm488_vm2, %v724_v61 }
 0x384   :  { %4152 = vmatpush3.bf16.xpose.msra.mxu1 %v989_v14  ;;  %4097 = vmatprep.subr.bf16.mxu0 %v4915_v16 }
 0x385   :  { %4127 = vmatprep.mubr.msk.bf16.mxu1 %vm4916_vm1, %v4915_v16  ;;  %4153 = vmatprep.subr.bf16.mxu1 %v4915_v16 }
 0x386   :  { %v5314_v17 = vpop.permute.xlu1 %883 }
 0x387   :  { %4098 = vmatpush3.bf16.msra.mxu0 %v643_v15 }
 0x388   :  { %4099 = vmatprep.subr.bf16.mxu0 %v4915_v16 }
 0x38a   :  { %v645_v20 = vpop.permute.xlu1 %644 }
 0x38b   :  { %4100 = vmatpush3.bf16.msra.mxu0 %v645_v20  ;;  %4128 = vmatmul.mubr.msk.bf16.gmra.mrb[32].mxu1 %vm488_vm2, %v726_v63 }
 0x38c   :  { %4154 = vmatpush3.bf16.xpose.msra.mxu1 %v992_v21  ;;  %4155 = vmatprep.mubr.msk.bf16.mxu1 %vm4916_vm1, %v4915_v16 }
 0x38d   :  { %4185 = vmatprep.subr.bf16.mxu1 %v4915_v16  ;;  %4131 = vmatprep.subr.bf16.mxu0 %v4915_v16 }
 0x393   :  { %4156 = vmatmul.mubr.msk.bf16.vlgmr.msra.gmra.mrb[36].mxu1 %vm488_vm2, %v965_v41 }
 0x394   :  { %4186 = vmatpush3.bf16.xpose.msra.mxu1 %v1229_v22  ;;  %4159 = vmatprep.mubr.msk.bf16.mxu1 %vm4916_vm1, %v4915_v16 }
 0x395   :  { %4187 = vmatprep.subr.bf16.mxu1 %v4915_v16 }
 0x39b   :  { %4160 = vmatmul.mubr.msk.bf16.gmra.mrb[40].mxu1 %vm488_vm2, %v967_v2 }
 0x39c   :  { %4188 = vmatpush3.bf16.xpose.msra.mxu1 %v1232_v24  ;;  %4163 = vmatprep.mubr.msk.bf16.mxu1 %vm4916_vm1, %v4915_v16 }
 0x39d   :  { %4189 = vmatprep.subr.bf16.mxu1 %v4915_v16 }
 0x3a3   :  { %4164 = vmatmul.mubr.msk.bf16.gmra.mrb[44].mxu1 %vm488_vm2, %v969_v6 }
 0x3a4   :  { %4190 = vmatpush3.bf16.xpose.msra.mxu1 %v1235_v25  ;;  %4191 = vmatprep.mubr.msk.bf16.mxu1 %vm4916_vm1, %v4915_v16 }
 0x3a5   :  { %4221 = vmatprep.subr.bf16.mxu1 %v4915_v16 }
 0x3ab   :  { %4192 = vmatmul.mubr.msk.bf16.vlgmr.msra.gmra.mrb[48].mxu1 %vm488_vm2, %v1208_v8 }
 0x3ac   :  { %4195 = vmatprep.mubr.msk.bf16.mxu1 %vm4916_vm1, %v4915_v16 }
 0x3b3   :  { %4196 = vmatmul.mubr.msk.bf16.gmra.mrb[52].mxu1 %vm488_vm2, %v1210_v12 }
 0x3b4   :  { %4199 = vmatprep.mubr.msk.bf16.mxu1 %vm4916_vm1, %v4915_v16 }
 0x3bb   :  { %4200 = vmatmul.mubr.msk.bf16.gmra.mrb[56].mxu1 %vm488_vm2, %v1212_v10 }
 0x3bc   :  { %4225 = vmatprep.mubr.msk.bf16.mxu1 %vm4916_vm1, %v4915_v16 }
 0x436   :  { %v541_v19 = vpop.f32.mrb[12].mxu1 }
 0x437   :  { %v564_v26 = vmul.f32 0.35355338, %v541_v19  ;;  %v4085_v32 = vpop.f32.mrb[13].mxu1 }
 0x438   :  { %v544_v33 = vpop.f32.mrb[14].mxu1 }
 0x439   :  { %v565_v35 = vmul.f32 0.35355338, %v544_v33  ;;  %v4086_v37 = vpop.f32.mrb[15].mxu1  ;;  %v5358_v38 = vadd.f32 %v564_v26, %v5350_v27 }
 0x43b   :  { %v577_v40 = vsel %vm576_vm3, %v5358_v38, -inf  ;;  %v5363_v42 = vadd.f32 %v565_v35, %v5355_v34 }
 0x43c   :  { %578 = vmax.xlane.f32.xlu0 %v577_v40 }
 0x43d   :  { %v580_v43 = vsel %vm576_vm3, %v5363_v42, -inf }
 0x43e   :  { %581 = vmax.xlane.f32.xlu1 %v580_v43  ;;  %v549_v44 = vpop.f32.mrb[16].mxu1 }
 0x43f   :  { %v566_v46 = vmul.f32 0.35355338, %v549_v44  ;;  %v4089_v48 = vpop.f32.mrb[17].mxu1 }
 0x440   :  { %v552_v49 = vpop.f32.mrb[18].mxu1 }
 0x441   :  { %v567_v28 = vmul.f32 0.35355338, %v552_v49  ;;  %v4090_v53 = vpop.f32.mrb[19].mxu1  ;;  %v5378_v29 = vadd.f32 %v566_v46, %v5370_v45 }
 0x443   :  { %v583_v54 = vsel %vm576_vm3, %v5378_v29, -inf  ;;  %v5383_v55 = vadd.f32 %v567_v28, %v5375_v51 }
 0x444   :  { %584 = vmax.xlane.f32.xlu0 %v583_v54 }
 0x445   :  { %v586_v36 = vsel %vm576_vm3, %v5383_v55, -inf }
 0x446   :  { %v557_v57 = vpop.f32.mrb[20].mxu1 }
 0x447   :  { %v568_v59 = vmul.f32 0.35355338, %v557_v57  ;;  %v4093_v60 = vpop.f32.mrb[21].mxu1 }
 0x448   :  { %587 = vmax.xlane.f32.xlu0 %v586_v36  ;;  %v560_v61 = vpop.f32.mrb[22].mxu1 }
 0x449   :  { %v569_v63 = vmul.f32 0.35355338, %v560_v61  ;;  %v4094_v0 = vpop.f32.mrb[23].mxu1  ;;  %v5398_v1 = vadd.f32 %v568_v59, %v5388_v31 }
 0x44b   :  { %v589_v41 = vsel %vm576_vm3, %v5398_v1, -inf  ;;  %v5403_v2 = vadd.f32 %v569_v63, %v5395_v62 }
 0x44c   :  { %590 = vmax.xlane.f32.xlu1 %v589_v41 }
 0x44d   :  { %v592_v3 = vsel %vm576_vm3, %v5403_v2, -inf }
 0x44e   :  { %593 = vmax.xlane.f32.xlu0 %v592_v3  ;;  %v785_v5 = vpop.f32.mrb[24].mxu1 }
 0x44f   :  { %v808_v6 = vmul.f32 0.35355338, %v785_v5  ;;  %v4121_v4 = vpop.f32.mrb[25].mxu1 }
 0x450   :  { %v788_v8 = vpop.f32.mrb[26].mxu1 }
 0x451   :  { %v4122_v9 = vpop.f32.mrb[27].mxu1  ;;  %v5408_v10 = vadd.f32 %v808_v6, %v5350_v27  ;;  %v809_v28 = vmul.f32 0.35355338, %v788_v8 }
 0x453   :  { %v820_v12 = vsel %vm576_vm3, %v5408_v10, -inf }
 0x454   :  { %821 = vmax.xlane.f32.xlu1 %v820_v12 }
 0x456   :  { %v793_v13 = vpop.f32.mrb[28].mxu1 }
 0x457   :  { %v4125_v14 = vpop.f32.mrb[29].mxu1  ;;  %v810_v53 = vmul.f32 0.35355338, %v793_v13 }
 0x458   :  { %v796_v15 = vpop.f32.mrb[30].mxu1 }
 0x459   :  { %v4126_v20 = vpop.f32.mrb[31].mxu1  ;;  %v811_v61 = vmul.f32 0.35355338, %v796_v15  ;;  %v5422_v0 = vadd.f32 %v810_v53, %v5370_v45 }
 0x45b   :  { %v826_v4 = vsel %vm576_vm3, %v5422_v0, -inf  ;;  %v5430_v8 = vadd.f32 %v811_v61, %v5375_v51 }
 0x45e   :  { %v801_v21 = vpop.f32.mrb[32].mxu1 }
 0x45f   :  { %v4129_v22 = vpop.f32.mrb[33].mxu1  ;;  %v812_v5 = vmul.f32 0.35355338, %v801_v21 }
 0x460   :  { %v804_v24 = vpop.f32.mrb[34].mxu1  ;;  %v829_v22 = vsel %vm576_vm3, %v5430_v8, -inf }
 0x461   :  { %v4130_v25 = vpop.f32.mrb[35].mxu1  ;;  %v813_v21 = vmul.f32 0.35355338, %v804_v24 }
 0x462   :  { %v5440_v25 = vadd.f32 %v812_v5, %v5388_v31 }
 0x464   :  { %1369 = vrot.lane.b32.xlu0 %v5215_v30, %s6597_s30  ;;  %v5417_v30 = vadd.f32 %v809_v28, %v5355_v34  ;;  %v832_v24 = vsel %vm576_vm3, %v5440_v25, -inf }
 0x465   :  { %1130 = vrot.lane.b32.xlu1 %v5225_v47, %s6605_s27 }
 0x466   :  { %v1028_v19 = vpop.f32.mrb[36].mxu1  ;;  %v823_v63 = vsel %vm576_vm3, %v5417_v30, -inf }
 0x467   :  { %v4157_v26 = vpop.f32.mrb[37].mxu1  ;;  %v1051_v59 = vmul.f32 0.35355338, %v1028_v19 }
 0x468   :  { %v1031_v32 = vpop.f32.mrb[38].mxu1 }
 0x469   :  { %v4158_v33 = vpop.f32.mrb[39].mxu1  ;;  %v5425_v3 = vadd.f32 %v1051_v59, %v5350_v27 }
 0x46b   :  { %v1063_v14 = vsel %vm576_vm3, %v5425_v3, -inf }
 0x46e   :  { %v1036_v35 = vpop.f32.mrb[40].mxu1 }
 0x46f   :  { %v4161_v37 = vpop.f32.mrb[41].mxu1  ;;  %v1053_v59 = vmul.f32 0.35355338, %v1036_v35 }
 0x470   :  { %v1039_v40 = vpop.f32.mrb[42].mxu1  ;;  %v1052_v37 = vmul.f32 0.35355338, %v1031_v32 }
 0x471   :  { %v4162_v43 = vpop.f32.mrb[43].mxu1  ;;  %v1054_v41 = vmul.f32 0.35355338, %v1039_v40 }
 0x472   :  { %v5450_v43 = vadd.f32 %v813_v21, %v5395_v62 }
 0x473   :  { %v5435_v15 = vadd.f32 %v1054_v41, %v5375_v51  ;;  %v5467_v41 = vadd.f32 %v1053_v59, %v5370_v45 }
 0x474   :  { %v835_v32 = vsel %vm576_vm3, %v5450_v43, -inf }
 0x475   :  { %v1072_v26 = vsel %vm576_vm3, %v5435_v15, -inf  ;;  %v1069_v5 = vsel %vm576_vm3, %v5467_v41, -inf }
 0x476   :  { %v1044_v44 = vpop.f32.mrb[44].mxu1 }
 0x477   :  { %v4165_v46 = vpop.f32.mrb[45].mxu1  ;;  %v1055_v61 = vmul.f32 0.35355338, %v1044_v44 }
 0x478   :  { %v1047_v48 = vpop.f32.mrb[46].mxu1 }
 0x479   :  { %v4166_v49 = vpop.f32.mrb[47].mxu1  ;;  %v1056_v35 = vmul.f32 0.35355338, %v1047_v48 }
 0x47b   :  { %v5477_v44 = vadd.f32 %v1056_v35, %v5395_v62 }
 0x47e   :  { %v1271_v54 = vpop.f32.mrb[48].mxu1 }
 0x47f   :  { %v4193_v57 = vpop.f32.mrb[49].mxu1 }
 0x480   :  { %v1274_v60 = vpop.f32.mrb[50].mxu1 }
 0x481   :  { %v4194_v36 = vpop.f32.mrb[51].mxu1  ;;  %v1295_v12 = vmul.f32 0.35355338, %v1274_v60  ;;  %v5460_v60 = vadd.f32 %v1052_v37, %v5355_v34  ;;  %v888_v37 = vpop.permute.xlu1 %887 }
 0x483   :  { %824 = vmax.xlane.f32.xlu0 %v823_v63  ;;  %v5445_v33 = vadd.f32 %v1295_v12, %v5355_v34  ;;  %v1066_v63 = vsel %vm576_vm3, %v5460_v60, -inf  ;;  %v5472_v34 = vadd.f32 %v1055_v61, %v5388_v31 }
 0x485   :  { %v1309_v28 = vsel %vm576_vm3, %v5445_v33, -inf }
 0x486   :  { %v1279_v6 = vpop.f32.mrb[52].mxu1 }
 0x487   :  { %827 = vmax.xlane.f32.xlu0 %v826_v4  ;;  %v4197_v9 = vpop.f32.mrb[53].mxu1  ;;  %v1296_v19 = vmul.f32 0.35355338, %v1279_v6  ;;  %v1294_v6 = vmul.f32 0.35355338, %v1271_v54  ;;  %v1075_v4 = vsel %vm576_vm3, %v5472_v34, -inf }
 0x488   :  { %v1282_v13 = vpop.f32.mrb[54].mxu1 }
 0x489   :  { %1064 = vmax.xlane.f32.xlu1 %v1063_v14  ;;  %v4198_v20 = vpop.f32.mrb[55].mxu1  ;;  %v5455_v53 = vadd.f32 %v1296_v19, %v5370_v45  ;;  %v1297_v9 = vmul.f32 0.35355338, %v1282_v13  ;;  %v1078_v45 = vsel %vm576_vm3, %v5477_v44, -inf  ;;  %v5482_v48 = vadd.f32 %v1294_v6, %v5350_v27 }
 0x48b   :  { %830 = vmax.xlane.f32.xlu0 %v829_v22  ;;  %v1312_v36 = vsel %vm576_vm3, %v5455_v53, -inf  ;;  %v1306_v54 = vsel %vm576_vm3, %v5482_v48, -inf  ;;  %v5489_v14 = vadd.f32 %v1297_v9, %v5375_v51  ;;  %v886_v22 = vpop.permute.xlu0 %885 }
 0x48d   :  { %1073 = vmax.xlane.f32.xlu1 %v1072_v26  ;;  %v1315_v13 = vsel %vm576_vm3, %v5489_v14, -inf }
 0x48e   :  { %v1287_v40 = vpop.f32.mrb[56].mxu1 }
 0x48f   :  { %833 = vmax.xlane.f32.xlu0 %v832_v24  ;;  %v4201_v46 = vpop.f32.mrb[57].mxu1  ;;  %v1298_v12 = vmul.f32 0.35355338, %v1287_v40  ;;  %v5503_v19 = vpop.permute.xlu0 %1126 }
 0x490   :  { %v1290_v49 = vpop.f32.mrb[58].mxu1 }
 0x491   :  { %1310 = vmax.xlane.f32.xlu1 %v1309_v28  ;;  %v4202_v57 = vpop.f32.mrb[59].mxu1  ;;  %v1299_v20 = vmul.f32 0.35355338, %v1290_v49  ;;  %v5494_v21 = vadd.f32 %v1298_v12, %v5388_v31 }
 0x493   :  { %836 = vmax.xlane.f32.xlu0 %v835_v32  ;;  %v1318_v27 = vsel %vm576_vm3, %v5494_v21, -inf  ;;  %v5505_v26 = vpop.permute.xlu0 %1128 }
 0x495   :  { %1313 = vmax.xlane.f32.xlu1 %v1312_v36 }
 0x497   :  { %1067 = vmax.xlane.f32.xlu0 %v1066_v63 }
 0x49b   :  { %1070 = vmax.xlane.f32.xlu0 %v1069_v5 }
 0x49f   :  { %1076 = vmax.xlane.f32.xlu0 %v1075_v4 }
 0x4a3   :  { %1079 = vmax.xlane.f32.xlu0 %v1078_v45 }
 0x4a6   :  { %1371 = vrot.lane.b32.xlu1 %v5221_v39, %s6597_s30  ;;  %v5499_v39 = vadd.f32 %v1299_v20, %v5395_v62 }
 0x4a7   :  { %1307 = vmax.xlane.f32.xlu0 %v1306_v54 }
 0x4a8   :  { %v1321_v51 = vsel %vm576_vm3, %v5499_v39, -inf }
 0x4ab   :  { %1316 = vmax.xlane.f32.xlu0 %v1315_v13 }
 0x4af   :  { %1319 = vmax.xlane.f32.xlu0 %v1318_v27 }
 0x4b3   :  { %1322 = vmax.xlane.f32.xlu0 %v1321_v51 }
 0x4c9   :  { %v579_v31 = vpop.xlane.xlu0 %578  ;;  %1373 = vrot.lane.b32.xlu0 %v5225_v47, %s6597_s30  ;;  %s6601_s30 = smov 16  }
 0x4ca   :  { %v595_v40 = vsub.f32 %v5358_v38, %v579_v31 }
 0x4cb   :  { %v582_v24 = vpop.xlane.xlu1 %581 }
 0x4cc   :  { %v601_v62 = vmul.f32 1.442695, %v595_v40  ;;  %v596_v46 = vsub.f32 %v5363_v42, %v582_v24 }
 0x4ce   :  { %v603_v49 = vmul.f32 1.442695, %v596_v46  ;;  %4677 = vpow2.f32 %v601_v62 }
 0x4d0   :  { %4679 = vpow2.f32 %v603_v49 }
 0x4d1   :  { %v585_v28 = vpop.xlane.xlu0 %584 }
 0x4d2   :  { %v597_v57 = vsub.f32 %v5378_v29, %v585_v28 }
 0x4d4   :  { %v605_v59 = vmul.f32 1.442695, %v597_v57 }
 0x4d5   :  { %v588_v32 = vpop.xlane.xlu0 %587 }
 0x4d6   :  { %v598_v36 = vsub.f32 %v5383_v55, %v588_v32  ;;  %4681 = vpow2.f32 %v605_v59 }
 0x4d8   :  { %v607_v61 = vmul.f32 1.442695, %v598_v36  ;;  %v5513_v63 = vpop.eup %4677 }
 0x4d9   :  { %v591_v47 = vpop.xlane.xlu1 %590 }
 0x4da   :  { %v5515_v38 = vpop.eup %4679  ;;  %4683 = vpow2.f32 %v607_v61  ;;  %v599_v42 = vsub.f32 %v5398_v1, %v591_v47 }
 0x4db   :  { %v594_v35 = vpop.xlane.xlu0 %593  ;;  %v637_v5 = vpack.c.bf16 %v5515_v38, %v5513_v63 }
 0x4dc   :  { %v600_v29 = vsub.f32 %v5403_v2, %v594_v35  ;;  %v609_v6 = vmul.f32 1.442695, %v599_v42 }
 0x4dd   :  { %4102 = vmatmul.mubr.msk.bf16.vlgmr.msra.gmra.mrb[0].mxu0 %vm576_vm3, %v637_v5 }
 0x4de   :  { %v611_v55 = vmul.f32 1.442695, %v600_v29  ;;  %4132 = vmatpush3.bf16.msra.mxu0 %v5314_v17  ;;  %4105 = vmatprep.mubr.msk.bf16.mxu0 %vm4916_vm1, %v4915_v16 }
 0x4df   :  { %4133 = vmatprep.subr.bf16.mxu0 %v4915_v16  ;;  %v5548_v27 = vpop.permute.xlu0 %1369 }
 0x4e0   :  { %4685 = vpow2.f32 %v611_v55  ;;  %v5527_v9 = vpop.eup %4681 }
 0x4e1   :  { %v822_v4 = vpop.xlane.xlu1 %821  ;;  %4687 = vpow2.f32 %v609_v6 }
 0x4e2   :  { %4134 = vmatpush3.bf16.msra.mxu0 %v886_v22  ;;  %v838_v1 = vsub.f32 %v5408_v10, %v822_v4 }
 0x4e3   :  { %4135 = vmatprep.subr.bf16.mxu0 %v4915_v16 }
 0x4e4   :  { %v5530_v2 = vpop.eup %4683  ;;  %v844_v45 = vmul.f32 1.442695, %v838_v1 }
 0x4e5   :  { %v638_v17 = vpack.c.bf16 %v5530_v2, %v5527_v9 }
 0x4e6   :  { %4689 = vpow2.f32 %v844_v45  ;;  %4136 = vmatpush3.bf16.msra.mxu0 %v888_v37  ;;  %v1131_v37 = vpop.permute.xlu1 %1130 }
 0x4e7   :  { %4106 = vmatmul.mubr.msk.bf16.gmra.mrb[4].mxu0 %vm576_vm3, %v638_v17  ;;  %4167 = vmatprep.subr.bf16.mxu0 %v4915_v16 }
 0x4e8   :  { %4109 = vmatprep.mubr.msk.bf16.mxu0 %vm4916_vm1, %v4915_v16 }
 0x4ea   :  { %v5538_v10 = vpop.eup %4685 }
 0x4eb   :  { %v5540_v12 = vpop.eup %4687 }
 0x4ec   :  { %v639_v54 = vpack.c.bf16 %v5538_v10, %v5540_v12 }
 0x4ef   :  { %4110 = vmatmul.mubr.msk.bf16.gmra.mrb[8].mxu0 %vm576_vm3, %v639_v54 }
 0x4f0   :  { %v4690_v20 = vpop.eup %4689  ;;  %4137 = vmatprep.mubr.msk.bf16.mxu0 %vm4916_vm1, %v4915_v16 }
 0x4f1   :  { %v856_v13 = vsel %vm576_vm3, %v4690_v20, 0.0 }
 0x4f2   :  { %857 = vadd.xlane.f32.xlu0 %v856_v13 }
 0x510   :  { %v825_v51 = vpop.xlane.xlu0 %824 }
 0x511   :  { %v839_v22 = vsub.f32 %v5417_v30, %v825_v51 }
 0x513   :  { %v846_v31 = vmul.f32 1.442695, %v839_v22 }
 0x514   :  { %v828_v40 = vpop.xlane.xlu0 %827 }
 0x515   :  { %4691 = vpow2.f32 %v846_v31  ;;  %v840_v24 = vsub.f32 %v5422_v0, %v828_v40 }
 0x516   :  { %v1065_v62 = vpop.xlane.xlu1 %1064 }
 0x517   :  { %v848_v46 = vmul.f32 1.442695, %v840_v24  ;;  %v1081_v49 = vsub.f32 %v5425_v3, %v1065_v62 }
 0x518   :  { %v831_v28 = vpop.xlane.xlu0 %830 }
 0x519   :  { %4693 = vpow2.f32 %v848_v46  ;;  %v1087_v57 = vmul.f32 1.442695, %v1081_v49  ;;  %v841_v59 = vsub.f32 %v5430_v8, %v831_v28 }
 0x51a   :  { %v1074_v32 = vpop.xlane.xlu1 %1073 }
 0x51b   :  { %4695 = vpow2.f32 %v1087_v57  ;;  %v850_v36 = vmul.f32 1.442695, %v841_v59  ;;  %v1084_v30 = vsub.f32 %v5435_v15, %v1074_v32 }
 0x51c   :  { %v834_v61 = vpop.xlane.xlu0 %833 }
 0x51d   :  { %4697 = vpow2.f32 %v850_v36  ;;  %v1093_v47 = vmul.f32 1.442695, %v1084_v30  ;;  %v842_v42 = vsub.f32 %v5440_v25, %v834_v61 }
 0x51e   :  { %v1311_v0 = vpop.xlane.xlu1 %1310 }
 0x51f   :  { %v4692_v35 = vpop.eup %4691  ;;  %4699 = vpow2.f32 %v1093_v47  ;;  %v1325_v3 = vsub.f32 %v5445_v33, %v1311_v0  ;;  %v852_v29 = vmul.f32 1.442695, %v842_v42 }
 0x520   :  { %v880_v5 = vpack.c.bf16 %v4692_v35, %v4690_v20  ;;  %v837_v6 = vpop.xlane.xlu0 %836  ;;  %v859_v8 = vsel %vm576_vm3, %v4692_v35, 0.0 }
 0x521   :  { %v1332_v55 = vmul.f32 1.442695, %v1325_v3  ;;  %v843_v4 = vsub.f32 %v5450_v43, %v837_v6  ;;  %860 = vadd.xlane.f32.xlu1 %v859_v8 }
 0x522   :  { %4138 = vmatmul.mubr.msk.bf16.vlgmr.msra.gmra.mrb[12].mxu0 %vm576_vm3, %v880_v5  ;;  %v1314_v59 = vpop.xlane.xlu1 %1313 }
 0x523   :  { %v4694_v15 = vpop.eup %4693  ;;  %4701 = vpow2.f32 %v1332_v55  ;;  %v854_v1 = vmul.f32 1.442695, %v843_v4  ;;  %4168 = vmatpush3.bf16.msra.mxu0 %v5503_v19  ;;  %4141 = vmatprep.mubr.msk.bf16.mxu0 %vm4916_vm1, %v4915_v16  ;;  %v1326_v0 = vsub.f32 %v5455_v53, %v1314_v59 }
 0x524   :  { %4703 = vpow2.f32 %v852_v29  ;;  %v1068_v25 = vpop.xlane.xlu0 %1067  ;;  %4169 = vmatprep.subr.bf16.mxu0 %v4915_v16  ;;  %v862_v33 = vsel %vm576_vm3, %v4694_v15, 0.0 }
 0x525   :  { %v4696_v45 = vpop.eup %4695  ;;  %4705 = vpow2.f32 %v854_v1  ;;  %v1082_v43 = vsub.f32 %v5460_v60, %v1068_v25  ;;  %863 = vadd.xlane.f32.xlu0 %v862_v33  ;;  %v1334_v8 = vmul.f32 1.442695, %v1326_v0 }
 0x526   :  { %v1099_v13 = vsel %vm576_vm3, %v4696_v45, 0.0  ;;  %v1372_v55 = vpop.permute.xlu1 %1371 }
 0x527   :  { %v4698_v17 = vpop.eup %4697  ;;  %v1089_v54 = vmul.f32 1.442695, %v1082_v43  ;;  %4170 = vmatpush3.bf16.msra.mxu0 %v5505_v26 }
 0x528   :  { %v1071_v20 = vpop.xlane.xlu0 %1070  ;;  %v865_v19 = vsel %vm576_vm3, %v4698_v17, 0.0  ;;  %4171 = vmatprep.subr.bf16.mxu0 %v4915_v16  ;;  %v881_v51 = vpack.c.bf16 %v4698_v17, %v4694_v15 }
 0x529   :  { %v5570_v22 = vpop.eup %4699  ;;  %4707 = vpow2.f32 %v1089_v54  ;;  %v1083_v31 = vsub.f32 %v5467_v41, %v1071_v20  ;;  %866 = vadd.xlane.f32.xlu1 %v865_v19  ;;  %1100 = vadd.xlane.f32.xlu0 %v1099_v13 }
 0x52a   :  { %4142 = vmatmul.mubr.msk.bf16.gmra.mrb[16].mxu0 %vm576_vm3, %v881_v51  ;;  %v1108_v40 = vsel %vm576_vm3, %v5570_v22, 0.0 }
 0x52b   :  { %v1091_v60 = vmul.f32 1.442695, %v1083_v31  ;;  %4172 = vmatpush3.bf16.msra.mxu0 %v1131_v37  ;;  %4145 = vmatprep.mubr.msk.bf16.mxu0 %vm4916_vm1, %v4915_v16 }
 0x52c   :  { %v1077_v26 = vpop.xlane.xlu0 %1076  ;;  %4203 = vmatprep.subr.bf16.mxu0 %v4915_v16 }
 0x52d   :  { %v5579_v24 = vpop.eup %4701  ;;  %4709 = vpow2.f32 %v1091_v60  ;;  %1109 = vadd.xlane.f32.xlu1 %v1108_v40  ;;  %v1085_v32 = vsub.f32 %v5472_v34, %v1077_v26 }
 0x52e   :  { %v4704_v41 = vpop.eup %4703  ;;  %v1345_v49 = vsel %vm576_vm3, %v5579_v24, 0.0 }
 0x52f   :  { %v4706_v62 = vpop.eup %4705  ;;  %v1095_v5 = vmul.f32 1.442695, %v1085_v32 }
 0x530   :  { %v1080_v46 = vpop.xlane.xlu0 %1079  ;;  %v882_v37 = vpack.c.bf16 %v4706_v62, %v4704_v41  ;;  %v871_v61 = vsel %vm576_vm3, %v4706_v62, 0.0  ;;  %v616_v62 = vsel %vm576_vm3, %v5515_v38, 0.0  ;;  %v628_v38 = vsel %vm576_vm3, %v5538_v10, 0.0 }
 0x531   :  { %1346 = vadd.xlane.f32.xlu1 %v1345_v49  ;;  %v1086_v57 = vsub.f32 %v5477_v44, %v1080_v46  ;;  %v613_v49 = vsel %vm576_vm3, %v5513_v63, 0.0 }
 0x532   :  { %4146 = vmatmul.mubr.msk.bf16.gmra.mrb[20].mxu0 %vm576_vm3, %v882_v37 }
 0x533   :  { %v4708_v28 = vpop.eup %4707  ;;  %4173 = vmatprep.mubr.msk.bf16.mxu0 %vm4916_vm1, %v4915_v16  ;;  %v1097_v35 = vmul.f32 1.442695, %v1086_v57 }
 0x534   :  { %v1308_v36 = vpop.xlane.xlu0 %1307  ;;  %v1102_v30 = vsel %vm576_vm3, %v4708_v28, 0.0  ;;  %v1123_v3 = vpack.c.bf16 %v4708_v28, %v4696_v45  ;;  %v619_v28 = vsel %vm576_vm3, %v5527_v9, 0.0 }
 0x535   :  { %v1324_v47 = vsub.f32 %v5482_v48, %v1308_v36  ;;  %1103 = vadd.xlane.f32.xlu0 %v1102_v30  ;;  %872 = vadd.xlane.f32.xlu1 %v871_v61 }
 0x537   :  { %v4710_v42 = vpop.eup %4709  ;;  %v1330_v44 = vmul.f32 1.442695, %v1324_v47 }
 0x538   :  { %v1317_v29 = vpop.xlane.xlu0 %1316  ;;  %v1105_v6 = vsel %vm576_vm3, %v4710_v42, 0.0  ;;  %v1124_v15 = vpack.c.bf16 %v5570_v22, %v4710_v42 }
 0x539   :  { %4711 = vpow2.f32 %v1330_v44  ;;  %v1327_v34 = vsub.f32 %v5489_v14, %v1317_v29  ;;  %1106 = vadd.xlane.f32.xlu0 %v1105_v6 }
 0x53a   :  { %4174 = vmatmul.mubr.msk.bf16.vlgmr.msra.gmra.mrb[24].mxu0 %vm576_vm3, %v1123_v3  ;;  %4713 = vpow2.f32 %v1097_v35 }
 0x53b   :  { %v1336_v48 = vmul.f32 1.442695, %v1327_v34  ;;  %4204 = vmatpush3.bf16.msra.mxu0 %v5548_v27  ;;  %4177 = vmatprep.mubr.msk.bf16.mxu0 %vm4916_vm1, %v4915_v16  ;;  %4715 = vpow2.f32 %v1095_v5 }
 0x53c   :  { %v1320_v53 = vpop.xlane.xlu0 %1319  ;;  %4205 = vmatprep.subr.bf16.mxu0 %v4915_v16 }
 0x53d   :  { %4717 = vpow2.f32 %v1336_v48  ;;  %v1328_v14 = vsub.f32 %v5494_v21, %v1320_v53 }
 0x53e   :  { %4719 = vpow2.f32 %v1334_v8 }
 0x53f   :  { %4206 = vmatpush3.bf16.msra.mxu0 %v1372_v55  ;;  %v1338_v25 = vmul.f32 1.442695, %v1328_v14 }
 0x540   :  { %v1323_v4 = vpop.xlane.xlu0 %1322  ;;  %4207 = vmatprep.subr.bf16.mxu0 %v4915_v16 }
 0x541   :  { %v1329_v27 = vsub.f32 %v5499_v39, %v1323_v4  ;;  %v868_v39 = vsel %vm576_vm3, %v4704_v41, 0.0 }
 0x542   :  { %4178 = vmatmul.mubr.msk.bf16.gmra.mrb[28].mxu0 %vm576_vm3, %v1124_v15 }
 0x543   :  { %v4712_v1 = vpop.eup %4711  ;;  %v1340_v33 = vmul.f32 1.442695, %v1329_v27  ;;  %4181 = vmatprep.mubr.msk.bf16.mxu0 %vm4916_vm1, %v4915_v16 }
 0x544   :  { %v1374_v45 = vpop.permute.xlu0 %1373  ;;  %v1342_v43 = vsel %vm576_vm3, %v4712_v1, 0.0  ;;  %v4714_v21 = vpop.eup %4713  ;;  %v1366_v60 = vpack.c.bf16 %v5579_v24, %v4712_v1  ;;  %v622_v24 = vsel %vm576_vm3, %v5530_v2, 0.0  ;;  %v625_v2 = vsel %vm576_vm3, %v5540_v12, 0.0 }
 0x545   :  { %4721 = vpow2.f32 %v1340_v33  ;;  %1343 = vadd.xlane.f32.xlu0 %v1342_v43  ;;  %4208 = vmatpush3.bf16.msra.mxu0 %v1374_v45  ;;  %v4716_v17 = vpop.eup %4715  ;;  %v1114_v51 = vsel %vm576_vm3, %v4714_v21, 0.0 }
 0x546   :  { %4237 = vmatprep.subr.bf16.mxu0 %v4915_v16  ;;  %4723 = vpow2.f32 %v1338_v25  ;;  %v1125_v19 = vpack.c.bf16 %v4714_v21, %v4716_v17  ;;  %v1111_v40 = vsel %vm576_vm3, %v4716_v17, 0.0 }
 0x547   :  { %v4718_v54 = vpop.eup %4717 }
 0x548   :  { %v1351_v20 = vsel %vm576_vm3, %v4718_v54, 0.0  ;;  %v4720_v13 = vpop.eup %4719 }
 0x549   :  { %869 = vadd.xlane.f32.xlu0 %v868_v39  ;;  %1352 = vadd.xlane.f32.xlu1 %v1351_v20  ;;  %v1348_v22 = vsel %vm576_vm3, %v4720_v13, 0.0  ;;  %v1367_v37 = vpack.c.bf16 %v4718_v54, %v4720_v13 }
 0x54a   :  { %4182 = vmatmul.mubr.msk.bf16.gmra.mrb[32].mxu0 %vm576_vm3, %v1125_v19 }
 0x54b   :  { %4209 = vmatprep.mubr.msk.bf16.mxu0 %vm4916_vm1, %v4915_v16 }
 0x54d   :  { %1115 = vadd.xlane.f32.xlu1 %v1114_v51  ;;  %1349 = vadd.xlane.f32.xlu0 %v1348_v22 }
 0x54f   :  { %v4722_v31 = vpop.eup %4721 }
 0x550   :  { %v1357_v26 = vsel %vm576_vm3, %v4722_v31, 0.0  ;;  %v4724_v41 = vpop.eup %4723 }
 0x551   :  { %1358 = vadd.xlane.f32.xlu1 %v1357_v26  ;;  %1112 = vadd.xlane.f32.xlu0 %v1111_v40  ;;  %v1354_v46 = vsel %vm576_vm3, %v4724_v41, 0.0  ;;  %v1368_v63 = vpack.c.bf16 %v4722_v31, %v4724_v41 }
 0x552   :  { %4210 = vmatmul.mubr.msk.bf16.vlgmr.msra.gmra.mrb[36].mxu0 %vm576_vm3, %v1366_v60 }
 0x553   :  { %4213 = vmatprep.mubr.msk.bf16.mxu0 %vm4916_vm1, %v4915_v16 }
 0x555   :  { %617 = vadd.xlane.f32.xlu1 %v616_v62  ;;  %1355 = vadd.xlane.f32.xlu0 %v1354_v46 }
 0x559   :  { %623 = vadd.xlane.f32.xlu1 %v622_v24  ;;  %614 = vadd.xlane.f32.xlu0 %v613_v49 }
 0x55a   :  { %4214 = vmatmul.mubr.msk.bf16.gmra.mrb[40].mxu0 %vm576_vm3, %v1367_v37 }
 0x55b   :  { %4217 = vmatprep.mubr.msk.bf16.mxu0 %vm4916_vm1, %v4915_v16 }
 0x55d   :  { %629 = vadd.xlane.f32.xlu1 %v628_v38  ;;  %620 = vadd.xlane.f32.xlu0 %v619_v28  ;;  %v4637_v38 = vld [vmem:[%s6583_s7] sm:$0xff]  }
 0x55e   :  { %4222 = vmatpush3.bf16.msra.mxu1 %v4637_v38 }
 0x55f   :  { %4223 = vmatprep.subr.bf16.mxu1 %v4915_v16 }
 0x561   :  { %626 = vadd.xlane.f32.xlu0 %v625_v2  ;;  %v4638_v2 = vld [vmem:[%s6583_s7 + $0x8] sm:$0xff]  }
 0x562   :  { %4218 = vmatmul.mubr.msk.bf16.gmra.mrb[44].mxu0 %vm576_vm3, %v1368_v63  ;;  %4224 = vmatpush3.bf16.msra.mxu1 %v4638_v2 }
 0x563   :  { %4241 = vmatprep.mubr.msk.bf16.mxu0 %vm4916_vm1, %v4915_v16  ;;  %4253 = vmatprep.subr.bf16.mxu1 %v4915_v16 }
 0x57f   :  { %v858_v35 = vpop.xlane.xlu0 %857 }
 0x580   :  { %4725 = vrcp.f32 %v858_v35 }
 0x58a   :  { %v4726_v14 = vpop.eup %4725 }
 0x5ae   :  { %v861_v3 = vpop.xlane.xlu1 %860 }
 0x5af   :  { %4727 = vrcp.f32 %v861_v3 }
 0x5b0   :  { %v5640_v57 = vpop.f32.mrb[0].mxu0 }
 0x5b1   :  { %v4103_v59 = vpop.f32.mrb[1].mxu0 }
 0x5b2   :  { %v5642_v32 = vpop.f32.mrb[2].mxu0  ;;  %v864_v44 = vpop.xlane.xlu0 %863 }
 0x5b3   :  { %v4104_v10 = vpop.f32.mrb[3].mxu0  ;;  %4729 = vrcp.f32 %v864_v44 }
 0x5b6   :  { %v1101_v5 = vpop.xlane.xlu0 %1100  ;;  %v867_v29 = vpop.xlane.xlu1 %866 }
 0x5b7   :  { %4731 = vrcp.f32 %v867_v29 }
 0x5b9   :  { %v4728_v15 = vpop.eup %4727 }
 0x5ba   :  { %v5644_v36 = vpop.f32.mrb[4].mxu0  ;;  %v1110_v34 = vpop.xlane.xlu1 %1109 }
 0x5bb   :  { %v4107_v9 = vpop.f32.mrb[5].mxu0 }
 0x5bc   :  { %v5646_v30 = vpop.f32.mrb[6].mxu0 }
 0x5bd   :  { %v4108_v61 = vpop.f32.mrb[7].mxu0  ;;  %v4730_v54 = vpop.eup %4729 }
 0x5be   :  { %v5652_v48 = vpop.xlane.xlu1 %1346 }
 0x5c1   :  { %v4732_v20 = vpop.eup %4731 }
 0x5c2   :  { %v5648_v12 = vpop.f32.mrb[8].mxu0  ;;  %v1104_v6 = vpop.xlane.xlu0 %1103 }
 0x5c3   :  { %v4111_v47 = vpop.f32.mrb[9].mxu0  ;;  %v873_v45 = vpop.xlane.xlu1 %872 }
 0x5c4   :  { %v5650_v42 = vpop.f32.mrb[10].mxu0  ;;  %4733 = vrcp.f32 %v873_v45 }
 0x5c5   :  { %v4112_v0 = vpop.f32.mrb[11].mxu0 }
 0x5c6   :  { %v1107_v8 = vpop.xlane.xlu0 %1106 }
 0x5ce   :  { %v4734_v26 = vpop.eup %4733 }
 0x5d2   :  { %v5654_v53 = vpop.xlane.xlu0 %1343 }
 0x5d6   :  { %v870_v43 = vpop.xlane.xlu0 %869  ;;  %v1353_v28 = vpop.xlane.xlu1 %1352 }
 0x5d7   :  { %4735 = vrcp.f32 %v870_v43 }
 0x5d8   :  { %4737 = vrcp.f32 %v1101_v5 }
 0x5d9   :  { %4739 = vrcp.f32 %v1104_v6 }
 0x5da   :  { %4741 = vrcp.f32 %v1110_v34  ;;  %v1350_v63 = vpop.xlane.xlu0 %1349  ;;  %v1116_v3 = vpop.xlane.xlu1 %1115 }
 0x5db   :  { %4743 = vrcp.f32 %v1107_v8 }
 0x5dc   :  { %4745 = vrcp.f32 %v1116_v3 }
 0x5de   :  { %v1113_v5 = vpop.xlane.xlu0 %1112 }
 0x5df   :  { %4747 = vrcp.f32 %v1113_v5 }
 0x5e0   :  { %4749 = vrcp.f32 %v5652_v48 }
 0x5e1   :  { %v4736_v41 = vpop.eup %4735  ;;  %4751 = vrcp.f32 %v5654_v53  ;;  %v1359_v53 = vpop.xlane.xlu1 %1358 }
 0x5e2   :  { %v4738_v10 = vpop.eup %4737  ;;  %4753 = vrcp.f32 %v1353_v28 }
 0x5e3   :  { %v4740_v61 = vpop.eup %4739  ;;  %4755 = vrcp.f32 %v1350_v63 }
 0x5e4   :  { %v4742_v34 = vpop.eup %4741  ;;  %4757 = vrcp.f32 %v1359_v53 }
 0x5f5   :  { %v935_v55 = vpop.f32.mrb[12].mxu0 }
 0x5f6   :  { %v4139_v4 = vpop.f32.mrb[13].mxu0  ;;  %v958_v1 = vmul.f32 %v4726_v14, %v935_v55  ;;  %v4744_v55 = vpop.eup %4743 }
 0x5f7   :  { %v938_v27 = vpop.f32.mrb[14].mxu0 }
 0x5f8   :  { %v959_v25 = vmul.f32 %v4728_v15, %v938_v27  ;;  %v4140_v33 = vpop.f32.mrb[15].mxu0 }
 0x5f9   :  { %v4746_v33 = vpop.eup %4745 }
 0x5fa   :  { %v4545_v21 = vpack.i.bf16 %v959_v25, %v958_v1  ;;  %v4748_v43 = vpop.eup %4747 }
 0x5fc   :  { %4546 = vrot.lane.b32.xlu0 %v4545_v21, %s6603_s20 }
 0x5fd   :  { %v943_v17 = vpop.f32.mrb[16].mxu0 }
 0x5fe   :  { %v4143_v39 = vpop.f32.mrb[17].mxu0  ;;  %v960_v13 = vmul.f32 %v4730_v54, %v943_v17 }
 0x5ff   :  { %v946_v19 = vpop.f32.mrb[18].mxu0 }
 0x600   :  { %v961_v51 = vmul.f32 %v4732_v20, %v946_v19  ;;  %v4144_v22 = vpop.f32.mrb[19].mxu0 }
 0x602   :  { %v4560_v31 = vpack.i.bf16 %v961_v51, %v960_v13  ;;  %v4750_v13 = vpop.eup %4749 }
 0x603   :  { %v4752_v22 = vpop.eup %4751 }
 0x604   :  { %4561 = vrot.lane.b32.xlu0 %v4560_v31, %s6603_s20 }
 0x605   :  { %v951_v60 = vpop.f32.mrb[20].mxu0 }
 0x606   :  { %v4147_v40 = vpop.f32.mrb[21].mxu0  ;;  %v5658_v46 = vmul.f32 %v4736_v41, %v951_v60 }
 0x607   :  { %v954_v62 = vpop.f32.mrb[22].mxu0  ;;  %v1356_v40 = vpop.xlane.xlu0 %1355 }
 0x608   :  { %v5660_v24 = vmul.f32 %v4734_v26, %v954_v62  ;;  %v4148_v49 = vpop.f32.mrb[23].mxu0  ;;  %4759 = vrcp.f32 %v1356_v40 }
 0x609   :  { %v4754_v49 = vpop.eup %4753 }
 0x60a   :  { %v4575_v37 = vpack.i.bf16 %v5660_v24, %v5658_v46  ;;  %v4756_v28 = vpop.eup %4755 }
 0x60d   :  { %v1178_v59 = vpop.f32.mrb[24].mxu0 }
 0x60e   :  { %v4175_v9 = vpop.f32.mrb[25].mxu0  ;;  %v1201_v0 = vmul.f32 %v4738_v10, %v1178_v59 }
 0x60f   :  { %v1181_v47 = vpop.f32.mrb[26].mxu0 }
 0x610   :  { %v1202_v35 = vmul.f32 %v4740_v61, %v1181_v47  ;;  %v4176_v44 = vpop.f32.mrb[27].mxu0  ;;  %v4758_v47 = vpop.eup %4757 }
 0x612   :  { %v4550_v29 = vpack.i.bf16 %v1202_v35, %v1201_v0  ;;  %v4760_v35 = vpop.eup %4759 }
 0x614   :  { %4551 = vrot.lane.b32.xlu1 %v4550_v29, %s6601_s30 }
 0x615   :  { %v1186_v6 = vpop.f32.mrb[28].mxu0 }
 0x616   :  { %v4179_v8 = vpop.f32.mrb[29].mxu0  ;;  %v1203_v4 = vmul.f32 %v4744_v55, %v1186_v6 }
 0x617   :  { %v1189_v14 = vpop.f32.mrb[30].mxu0  ;;  %v618_v8 = vpop.xlane.xlu1 %617 }
 0x618   :  { %v1204_v15 = vmul.f32 %v4742_v34, %v1189_v14  ;;  %v4180_v27 = vpop.f32.mrb[31].mxu0  ;;  %v615_v34 = vpop.xlane.xlu0 %614  ;;  %4761 = vrcp.f32 %v618_v8 }
 0x619   :  { %4763 = vrcp.f32 %v615_v34 }
 0x61a   :  { %v4565_v1 = vpack.i.bf16 %v1204_v15, %v1203_v4 }
 0x61b   :  { %v624_v46 = vpop.xlane.xlu1 %623 }
 0x61c   :  { %v621_v55 = vpop.xlane.xlu0 %620  ;;  %4765 = vrcp.f32 %v624_v46 }
 0x61d   :  { %v1194_v25 = vpop.f32.mrb[32].mxu0  ;;  %4767 = vrcp.f32 %v621_v55 }
 0x61e   :  { %v4183_v45 = vpop.f32.mrb[33].mxu0  ;;  %v1205_v17 = vmul.f32 %v4748_v43, %v1194_v25 }
 0x61f   :  { %v1197_v21 = vpop.f32.mrb[34].mxu0 }
 0x620   :  { %v1206_v54 = vmul.f32 %v4746_v33, %v1197_v21  ;;  %v4184_v39 = vpop.f32.mrb[35].mxu0  ;;  %v627_v24 = vpop.xlane.xlu0 %626 }
 0x622   :  { %v4580_v20 = vpack.i.bf16 %v1206_v54, %v1205_v17  ;;  %v4762_v4 = vpop.eup %4761 }
 0x623   :  { %v4764_v27 = vpop.eup %4763  ;;  %v716_v21 = vmul.f32 %v4762_v4, %v5642_v32 }
 0x624   :  { %v715_v43 = vmul.f32 %v4764_v27, %v5640_v57 }
 0x625   :  { %v1421_v19 = vpop.f32.mrb[36].mxu0 }
 0x626   :  { %v4211_v51 = vpop.f32.mrb[37].mxu0  ;;  %v1444_v60 = vmul.f32 %v4752_v22, %v1421_v19 }
 0x627   :  { %v1424_v31 = vpop.f32.mrb[38].mxu0 }
 0x628   :  { %v1445_v48 = vmul.f32 %v4750_v13, %v1424_v31  ;;  %v4212_v26 = vpop.f32.mrb[39].mxu0  ;;  %v4766_v31 = vpop.eup %4765 }
 0x62a   :  { %v4555_v41 = vpack.i.bf16 %v1445_v48, %v1444_v60  ;;  %v4768_v60 = vpop.eup %4767 }
 0x62c   :  { %4556 = vrot.lane.b32.xlu1 %v4555_v41, %s6599_s21 }
 0x62d   :  { %v1429_v62 = vpop.f32.mrb[40].mxu0 }
 0x62e   :  { %v4215_v38 = vpop.f32.mrb[41].mxu0  ;;  %v1446_v63 = vmul.f32 %v4756_v28, %v1429_v62 }
 0x62f   :  { %v1432_v2 = vpop.f32.mrb[42].mxu0  ;;  %v718_v38 = vmul.f32 %v4766_v31, %v5646_v30 }
 0x630   :  { %v1447_v59 = vmul.f32 %v4754_v49, %v1432_v2  ;;  %v4216_v10 = vpop.f32.mrb[43].mxu0  ;;  %4566 = vrot.lane.b32.xlu1 %v4565_v1, %s6601_s30  ;;  %v717_v49 = vmul.f32 %v4768_v60, %v5644_v36 }
 0x632   :  { %v4570_v9 = vpack.i.bf16 %v1447_v59, %v1446_v63 }
 0x634   :  { %4576 = vrot.lane.b32.xlu1 %v4575_v37, %s6603_s20  ;;  %4571 = vrot.lane.b32.xlu0 %v4570_v9, %s6599_s21  ;;  %v630_v37 = vpop.xlane.xlu1 %629 }
 0x635   :  { %v1437_v61 = vpop.f32.mrb[44].mxu0  ;;  %4769 = vrcp.f32 %v630_v37 }
 0x636   :  { %v4219_v0 = vpop.f32.mrb[45].mxu0  ;;  %v1448_v3 = vmul.f32 %v4760_v35, %v1437_v61  ;;  %4771 = vrcp.f32 %v627_v24 }
 0x637   :  { %v1440_v44 = vpop.f32.mrb[46].mxu0 }
 0x638   :  { %v1449_v5 = vmul.f32 %v4758_v47, %v1440_v44  ;;  %v4220_v29 = vpop.f32.mrb[47].mxu0  ;;  %4581 = vrot.lane.b32.xlu0 %v4580_v20, %s6601_s30 }
 0x63a   :  { %v4585_v6 = vpack.i.bf16 %v1449_v5, %v1448_v3 }
 0x63c   :  { %4586 = vrot.lane.b32.xlu1 %v4585_v6, %s6599_s21 }
 0x63f   :  { %v4770_v9 = vpop.eup %4769 }
 0x640   :  { %v4772_v35 = vpop.eup %4771  ;;  %v720_v55 = vmul.f32 %v4770_v9, %v5650_v42  ;;  %v3792_v42 = vld [vmem:[%s6584_s8] ss:$0 sm:$0xff] }
 0x641   :  { %v719_v8 = vmul.f32 %v4772_v35, %v5648_v12 }
 0x66e   :  { %v4547_v14 = vpop.permute.xlu0 %4546 }
 0x66f   :  { %v4549_v1 = vunpack.i.h.bf16 %v4547_v14  ;;  %v4548_v25 = vunpack.i.l.bf16 %v4547_v14 }
 0x671   :  { %v1522_v54 = vsel %vm488_vm2, %v715_v43, %v4548_v25  ;;  %v1523_v39 = vsel %vm488_vm2, %v716_v21, %v4549_v1 }
 0x676   :  { %v4562_v13 = vpop.permute.xlu0 %4561 }
 0x677   :  { %v4564_v53 = vunpack.i.h.bf16 %v4562_v13  ;;  %v4563_v40 = vunpack.i.l.bf16 %v4562_v13 }
 0x679   :  { %v1524_v2 = vsel %vm488_vm2, %v717_v49, %v4563_v40  ;;  %v1525_v63 = vsel %vm488_vm2, %v718_v38, %v4564_v53 }
 0x686   :  { %v4552_v15 = vpop.permute.xlu1 %4551 }
 0x687   :  { %v4554_v33 = vunpack.i.h.bf16 %v4552_v15  ;;  %v4553_v45 = vunpack.i.l.bf16 %v4552_v15 }
 0x689   :  { %v1530_v51 = vsel %vm1528_vm4, %v1523_v39, %v4554_v33  ;;  %v1529_v22 = vsel %vm1528_vm4, %v1522_v54, %v4553_v45 }
 0x69e   :  { %v4557_v17 = vpop.permute.xlu1 %4556 }
 0x69f   :  { %v4559_v20 = vunpack.i.h.bf16 %v4557_v17  ;;  %v4558_v19 = vunpack.i.l.bf16 %v4557_v17 }
 0x6a1   :  { %v1536_v57 = vsel %vm1535_vm5, %v1529_v22, %v4558_v19  ;;  %v1537_v32 = vsel %vm1535_vm5, %v1530_v51, %v4559_v20 }
 0x6a2   :  { %v1542_v48 = vpack.c.bf16 %v1537_v32, %v1536_v57  ;;  %v4567_v26 = vpop.permute.xlu1 %4566 }
 0x6a3   :  { %v4569_v41 = vunpack.i.h.bf16 %v4567_v26  ;;  %v4568_v62 = vunpack.i.l.bf16 %v4567_v26 }
 0x6a4   :  { %4226 = vmatmul.mubr.msk.bf16.vlgmr.msra.gmra.mrb[60].mxu1 %vm280_vm0, %v1542_v48 }
 0x6a5   :  { %4229 = vmatprep.mubr.msk.bf16.mxu1 %vm4916_vm1, %v4915_v16  ;;  %v1532_v61 = vsel %vm1528_vm4, %v1525_v63, %v4569_v41  ;;  %v1531_v47 = vsel %vm1528_vm4, %v1524_v2, %v4568_v62 }
 0x6a6   :  { %v4572_v28 = vpop.permute.xlu0 %4571  ;;  %v4577_v0 = vpop.permute.xlu1 %4576 }
 0x6a7   :  { %v4574_v59 = vunpack.i.h.bf16 %v4572_v28  ;;  %v4573_v10 = vunpack.i.l.bf16 %v4572_v28  ;;  %v4579_v5 = vunpack.i.h.bf16 %v4577_v0  ;;  %v4578_v29 = vunpack.i.l.bf16 %v4577_v0 }
 0x6a9   :  { %v1538_v36 = vsel %vm1535_vm5, %v1531_v47, %v4573_v10  ;;  %v1539_v30 = vsel %vm1535_vm5, %v1532_v61, %v4574_v59  ;;  %v1527_v24 = vsel %vm488_vm2, %v720_v55, %v4579_v5  ;;  %v1526_v37 = vsel %vm488_vm2, %v719_v8, %v4578_v29 }
 0x6aa   :  { %v4582_v44 = vpop.permute.xlu0 %4581  ;;  %v1543_v3 = vpack.c.bf16 %v1539_v30, %v1538_v36 }
 0x6ab   :  { %v4584_v6 = vunpack.i.h.bf16 %v4582_v44  ;;  %v4583_v34 = vunpack.i.l.bf16 %v4582_v44 }
 0x6ac   :  { %4230 = vmatmul.mubr.msk.bf16.gmra.mrb[64].mxu1 %vm280_vm0, %v1543_v3 }
 0x6ad   :  { %4233 = vmatprep.mubr.msk.bf16.mxu1 %vm4916_vm1, %v4915_v16  ;;  %v1533_v15 = vsel %vm1528_vm4, %v1526_v37, %v4583_v34  ;;  %v1534_v27 = vsel %vm1528_vm4, %v1527_v24, %v4584_v6 }
 0x6ae   :  { %v4587_v46 = vpop.permute.xlu1 %4586 }
 0x6af   :  { %v4589_v14 = vunpack.i.h.bf16 %v4587_v46  ;;  %v4588_v4 = vunpack.i.l.bf16 %v4587_v46 }
 0x6b1   :  { %v1540_v1 = vsel %vm1535_vm5, %v1533_v15, %v4588_v4  ;;  %v1541_v12 = vsel %vm1535_vm5, %v1534_v27, %v4589_v14 }
 0x6b2   :  { %v1544_v25 = vpack.c.bf16 %v1541_v12, %v1540_v1 }
 0x6b4   :  { %4234 = vmatmul.mubr.msk.bf16.gmra.mrb[68].mxu1 %vm280_vm0, %v1544_v25 }
 0x6b5   :  { %4269 = vmatprep.mubr.msk.bf16.mxu1 %vm4916_vm1, %v4915_v16 }
 0x777   :  { %v1611_v33 = vpop.f32.mrb[60].mxu1 }
 0x778   :  { %v1612_v45 = vadd.f32 %v3792_v42, %v1611_v33  ;;  %v4227_v43 = vpop.f32.mrb[61].mxu1  ;;  %v4640_v33 = vld [vmem:[%s6585_s13 + $0x8] sm:$0xff]  }
 0x779   :  { %v1614_v21 = vpop.f32.mrb[62].mxu1  ;;  %v4642_v43 = vld [vmem:[%s6586_s15 + $0x8] sm:$0xff]  }
 0x77a   :  { %v5721_v17 = vadd.f32 %v1612_v45, %v5100_v52  ;;  %v1615_v54 = vadd.f32 %v3792_v42, %v1614_v21  ;;  %v4228_v39 = vpop.f32.mrb[63].mxu1  ;;  %v4641_v45 = vld [vmem:[%s6586_s15] sm:$0xff]   ;;  %v4643_v21 = vld [vmem:[%s6586_s15 + $0x10] sm:$0xff]  }
 0x77b   :  { %4254 = vmatpush3.bf16.msra.mxu1 %v4641_v45  ;;  %v4645_v39 = vld [vmem:[%s6586_s15 + $0x20] sm:$0xff]  }
 0x77c   :  { %v5724_v20 = vadd.f32 %v1615_v54, %v5104_v58  ;;  %v1642_v19 = vsel %vm280_vm0, %v5721_v17, 0.0  ;;  %4255 = vmatprep.subr.bf16.mxu1 %v4915_v16  ;;  %v4644_v54 = vld [vmem:[%s6586_s15 + $0x18] sm:$0xff]   ;;  %v3800_v45 = vld [vmem:[%s6589_s14] ss:$0 sm:$0xff] }
 0x77d   :  { %1643 = vadd.xlane.f32.xlu0 %v1642_v19  ;;  %v4646_v19 = vld [vmem:[%s6586_s15 + $0x28] sm:$0xff]  }
 0x77e   :  { %v1645_v13 = vsel %vm280_vm0, %v5724_v20, 0.0 }
 0x77f   :  { %1646 = vadd.xlane.f32.xlu1 %v1645_v13  ;;  %v1619_v51 = vpop.f32.mrb[64].mxu1  ;;  %4256 = vmatpush3.bf16.msra.mxu1 %v4642_v43 }
 0x780   :  { %v1620_v22 = vadd.f32 %v3792_v42, %v1619_v51  ;;  %v4231_v31 = vpop.f32.mrb[65].mxu1  ;;  %4257 = vmatprep.subr.bf16.mxu1 %v4915_v16 }
 0x781   :  { %v1622_v57 = vpop.f32.mrb[66].mxu1 }
 0x782   :  { %v5731_v52 = vadd.f32 %v1620_v22, %v5123_v18  ;;  %v1623_v32 = vadd.f32 %v3792_v42, %v1622_v57  ;;  %v4232_v60 = vpop.f32.mrb[67].mxu1 }
 0x783   :  { %4258 = vmatpush3.bf16.msra.mxu1 %v4643_v21 }
 0x784   :  { %v5734_v58 = vadd.f32 %v1623_v32, %v5128_v23  ;;  %v1648_v48 = vsel %vm280_vm0, %v5731_v52, 0.0  ;;  %4259 = vmatprep.subr.bf16.mxu1 %v4915_v16 }
 0x785   :  { %1649 = vadd.xlane.f32.xlu0 %v1648_v48 }
 0x786   :  { %v1651_v41 = vsel %vm280_vm0, %v5734_v58, 0.0 }
 0x787   :  { %v1627_v26 = vpop.f32.mrb[68].mxu1  ;;  %4260 = vmatpush3.bf16.msra.mxu1 %v4644_v54 }
 0x788   :  { %v1628_v53 = vadd.f32 %v3792_v42, %v1627_v26  ;;  %v4235_v40 = vpop.f32.mrb[69].mxu1  ;;  %4261 = vmatprep.subr.bf16.mxu1 %v4915_v16 }
 0x789   :  { %1652 = vadd.xlane.f32.xlu0 %v1651_v41  ;;  %v1630_v62 = vpop.f32.mrb[70].mxu1 }
 0x78a   :  { %v5741_v18 = vadd.f32 %v1628_v53, %v5146_v50  ;;  %v1631_v49 = vadd.f32 %v3792_v42, %v1630_v62  ;;  %v4236_v38 = vpop.f32.mrb[71].mxu1  ;;  %v4639_v42 = vld [vmem:[%s6585_s13] sm:$0xff]  }
 0x78b   :  { %4238 = vmatpush3.bf16.msra.mxu0 %v4639_v42  ;;  %4262 = vmatpush3.bf16.msra.mxu1 %v4645_v39  ;;  %v3798_v62 = vld [vmem:[%s6587_s11] ss:$0 sm:$0xff] }
 0x78c   :  { %v5744_v23 = vadd.f32 %v1631_v49, %v5152_v56  ;;  %v1654_v28 = vsel %vm280_vm0, %v5741_v18, 0.0  ;;  %4239 = vmatprep.subr.bf16.mxu0 %v4915_v16  ;;  %4263 = vmatprep.subr.bf16.mxu1 %v4915_v16 }
 0x78d   :  { %1655 = vadd.xlane.f32.xlu1 %v1654_v28 }
 0x78e   :  { %v1657_v2 = vsel %vm280_vm0, %v5744_v23, 0.0 }
 0x78f   :  { %1658 = vadd.xlane.f32.xlu0 %v1657_v2  ;;  %4240 = vmatpush3.bf16.msra.mxu0 %v4640_v33 }
 0x790   :  { %4281 = vmatprep.subr.bf16.mxu0 %v4915_v16  ;;  %4264 = vmatpush3.bf16.msra.mxu1 %v4646_v19 }
 0x791   :  { %4265 = vmatprep.subr.bf16.mxu1 %v4915_v16 }
 0x80a   :  { %v1644_v63 = vpop.xlane.xlu0 %1643 }
 0x80b   :  { %v1660_v59 = vmul.f32 0.03125, %v1644_v63 }
 0x80c   :  { %v1647_v10 = vpop.xlane.xlu1 %1646 }
 0x80d   :  { %v5751_v9 = vsub.f32 %v5721_v17, %v1660_v59  ;;  %v1661_v50 = vmul.f32 0.03125, %v1647_v10 }
 0x80f   :  { %v5754_v61 = vsub.f32 %v5724_v20, %v1661_v50  ;;  %v1672_v56 = vmul.f32 %v5751_v9, %v5751_v9 }
 0x811   :  { %v1678_v47 = vsel %vm280_vm0, %v1672_v56, 0.0  ;;  %v1673_v0 = vmul.f32 %v5754_v61, %v5754_v61  ;;  %v3799_v56 = vld [vmem:[%s6588_s12] ss:$0 sm:$0xff] }
 0x812   :  { %v1650_v36 = vpop.xlane.xlu0 %1649  ;;  %1679 = vadd.xlane.f32.xlu1 %v1678_v47 }
 0x813   :  { %v1662_v30 = vmul.f32 0.03125, %v1650_v36  ;;  %v1681_v35 = vsel %vm280_vm0, %v1673_v0, 0.0 }
 0x814   :  { %1682 = vadd.xlane.f32.xlu0 %v1681_v35 }
 0x815   :  { %v5763_v44 = vsub.f32 %v5731_v52, %v1662_v30 }
 0x816   :  { %v1653_v3 = vpop.xlane.xlu0 %1652 }
 0x817   :  { %v1663_v5 = vmul.f32 0.03125, %v1653_v3  ;;  %v1674_v29 = vmul.f32 %v5763_v44, %v5763_v44 }
 0x819   :  { %v5768_v6 = vsub.f32 %v5734_v58, %v1663_v5  ;;  %v1684_v34 = vsel %vm280_vm0, %v1674_v29, 0.0 }
 0x81a   :  { %1685 = vadd.xlane.f32.xlu1 %v1684_v34  ;;  %v1656_v8 = vpop.xlane.xlu1 %1655 }
 0x81b   :  { %v1664_v55 = vmul.f32 0.03125, %v1656_v8  ;;  %v1675_v46 = vmul.f32 %v5768_v6, %v5768_v6 }
 0x81c   :  { %v1659_v24 = vpop.xlane.xlu0 %1658 }
 0x81d   :  { %v5774_v37 = vsub.f32 %v5741_v18, %v1664_v55  ;;  %v1665_v14 = vmul.f32 0.03125, %v1659_v24  ;;  %v1687_v4 = vsel %vm280_vm0, %v1675_v46, 0.0 }
 0x81e   :  { %1688 = vadd.xlane.f32.xlu0 %v1687_v4 }
 0x81f   :  { %v5778_v15 = vsub.f32 %v5744_v23, %v1665_v14  ;;  %v1676_v27 = vmul.f32 %v5774_v37, %v5774_v37 }
 0x821   :  { %v1690_v1 = vsel %vm280_vm0, %v1676_v27, 0.0  ;;  %v1677_v12 = vmul.f32 %v5778_v15, %v5778_v15 }
 0x822   :  { %1691 = vadd.xlane.f32.xlu1 %v1690_v1 }
 0x823   :  { %v1693_v25 = vsel %vm280_vm0, %v1677_v12, 0.0 }
 0x824   :  { %1694 = vadd.xlane.f32.xlu0 %v1693_v25 }
 0x89f   :  { %v1680_v13 = vpop.xlane.xlu1 %1679 }
 0x8a0   :  { %v1696_v51 = vmul.f32 0.03125, %v1680_v13 }
 0x8a1   :  { %v1683_v22 = vpop.xlane.xlu0 %1682 }
 0x8a2   :  { %v1702_v31 = vadd.f32 1e-05, %v1696_v51  ;;  %v1697_v57 = vmul.f32 0.03125, %v1683_v22 }
 0x8a4   :  { %4773 = vrsqrt.f32 %v1702_v31  ;;  %v1703_v32 = vadd.f32 1e-05, %v1697_v57 }
 0x8a6   :  { %4775 = vrsqrt.f32 %v1703_v32 }
 0x8a7   :  { %v1686_v60 = vpop.xlane.xlu1 %1685 }
 0x8a8   :  { %v1698_v48 = vmul.f32 0.03125, %v1686_v60 }
 0x8aa   :  { %v1704_v26 = vadd.f32 1e-05, %v1698_v48 }
 0x8ab   :  { %v1689_v53 = vpop.xlane.xlu0 %1688 }
 0x8ac   :  { %4777 = vrsqrt.f32 %v1704_v26  ;;  %v1699_v40 = vmul.f32 0.03125, %v1689_v53 }
 0x8ae   :  { %v4774_v41 = vpop.eup %4773  ;;  %v1705_v49 = vadd.f32 1e-05, %v1699_v40 }
 0x8af   :  { %v1714_v38 = vmul.f32 %v4774_v41, %v5751_v9  ;;  %v1692_v28 = vpop.xlane.xlu1 %1691 }
 0x8b0   :  { %v4776_v2 = vpop.eup %4775  ;;  %4779 = vrsqrt.f32 %v1705_v49  ;;  %v1700_v63 = vmul.f32 0.03125, %v1692_v28 }
 0x8b1   :  { %v1726_v59 = vmul.f32 %v3798_v62, %v1714_v38  ;;  %v1715_v10 = vmul.f32 %v4776_v2, %v5754_v61  ;;  %v1695_v50 = vpop.xlane.xlu0 %1694 }
 0x8b2   :  { %v1706_v47 = vadd.f32 1e-05, %v1700_v63  ;;  %v1701_v0 = vmul.f32 0.03125, %v1695_v50 }
 0x8b3   :  { %v1727_v36 = vmul.f32 %v3798_v62, %v1715_v10  ;;  %v1738_v35 = vadd.f32 %v3799_v56, %v1726_v59 }
 0x8b4   :  { %4781 = vrsqrt.f32 %v1706_v47  ;;  %v1707_v30 = vadd.f32 1e-05, %v1701_v0  ;;  %v3806_v47 = vld [vmem:[%s6590_s16] ss:$0 sm:$0xff] }
 0x8b5   :  { %v1739_v3 = vadd.f32 %v3799_v56, %v1727_v36 }
 0x8b6   :  { %v4778_v9 = vpop.eup %4777  ;;  %4783 = vrsqrt.f32 %v1707_v30 }
 0x8b7   :  { %v1744_v5 = vpack.c.bf16 %v1739_v3, %v1738_v35  ;;  %v1716_v29 = vmul.f32 %v4778_v9, %v5763_v44 }
 0x8b9   :  { %4242 = vmatmul.mubr.msk.bf16.vlgmr.msra.gmra.mrb[48].mxu0 %vm280_vm0, %v1744_v5  ;;  %v1728_v8 = vmul.f32 %v3798_v62, %v1716_v29 }
 0x8ba   :  { %v4780_v61 = vpop.eup %4779  ;;  %4245 = vmatprep.mubr.msk.bf16.mxu0 %vm4916_vm1, %v4915_v16 }
 0x8bb   :  { %v1717_v34 = vmul.f32 %v4780_v61, %v5768_v6  ;;  %v1740_v24 = vadd.f32 %v3799_v56, %v1728_v8 }
 0x8bd   :  { %v1729_v55 = vmul.f32 %v3798_v62, %v1717_v34 }
 0x8be   :  { %v4782_v46 = vpop.eup %4781 }
 0x8bf   :  { %v1741_v14 = vadd.f32 %v3799_v56, %v1729_v55  ;;  %v1718_v4 = vmul.f32 %v4782_v46, %v5774_v37  ;;  %v4647_v37 = vld [vmem:[%s6586_s15 + $0x30] sm:$0xff]  }
 0x8c0   :  { %v4784_v27 = vpop.eup %4783  ;;  %4266 = vmatpush3.bf16.msra.mxu1 %v4647_v37 }
 0x8c1   :  { %v1745_v1 = vpack.c.bf16 %v1741_v14, %v1740_v24  ;;  %v1719_v12 = vmul.f32 %v4784_v27, %v5778_v15  ;;  %v1730_v44 = vmul.f32 %v3798_v62, %v1718_v4  ;;  %4267 = vmatprep.subr.bf16.mxu1 %v4915_v16  ;;  %v4648_v15 = vld [vmem:[%s6586_s15 + $0x38] sm:$0xff]  }
 0x8c3   :  { %4246 = vmatmul.mubr.msk.bf16.gmra.mrb[52].mxu0 %vm280_vm0, %v1745_v1  ;;  %v1731_v25 = vmul.f32 %v3798_v62, %v1719_v12  ;;  %v1742_v6 = vadd.f32 %v3799_v56, %v1730_v44 }
 0x8c4   :  { %4249 = vmatprep.mubr.msk.bf16.mxu0 %vm4916_vm1, %v4915_v16  ;;  %4268 = vmatpush3.bf16.msra.mxu1 %v4648_v15 }
 0x8c5   :  { %v1743_v42 = vadd.f32 %v3799_v56, %v1731_v25  ;;  %4315 = vmatprep.subr.bf16.mxu1 %v4915_v16 }
 0x8c7   :  { %v1746_v33 = vpack.c.bf16 %v1743_v42, %v1742_v6 }
 0x8cb   :  { %4250 = vmatmul.mubr.msk.bf16.gmra.mrb[56].mxu0 %vm280_vm0, %v1746_v33 }
 0x8cc   :  { %4285 = vmatprep.mubr.msk.bf16.mxu0 %vm4916_vm1, %v4915_v16 }
 0x98c   :  { %v1813_v43 = vpop.f32.mrb[48].mxu0 }
 0x98d   :  { %v1814_v21 = vadd.f32 %v3800_v45, %v1813_v43  ;;  %v4243_v54 = vpop.f32.mrb[49].mxu0 }
 0x98e   :  { %v1816_v39 = vpop.f32.mrb[50].mxu0 }
 0x98f   :  { %v1817_v19 = vadd.f32 %v3800_v45, %v1816_v39  ;;  %v4244_v13 = vpop.f32.mrb[51].mxu0  ;;  %v1836_v51 = vmax.f32 %v1814_v21, 0.0 }
 0x991   :  { %v1837_v22 = vmax.f32 %v1817_v19, 0.0 }
 0x993   :  { %v1842_v31 = vpack.c.bf16 %v1837_v22, %v1836_v51 }
 0x995   :  { %4270 = vmatmul.mubr.bf16.vlgmr.msra.gmra.mrb[72].mxu1 %v1842_v31 }
 0x996   :  { %v1821_v57 = vpop.f32.mrb[52].mxu0  ;;  %4273 = vmatprep.mubr.msk.bf16.mxu1 %vm4916_vm1, %v4915_v16 }
 0x997   :  { %v1822_v32 = vadd.f32 %v3800_v45, %v1821_v57  ;;  %v4247_v60 = vpop.f32.mrb[53].mxu0 }
 0x998   :  { %v1824_v48 = vpop.f32.mrb[54].mxu0 }
 0x999   :  { %v1825_v26 = vadd.f32 %v3800_v45, %v1824_v48  ;;  %v4248_v53 = vpop.f32.mrb[55].mxu0  ;;  %v1838_v40 = vmax.f32 %v1822_v32, 0.0 }
 0x99b   :  { %v1839_v41 = vmax.f32 %v1825_v26, 0.0 }
 0x99d   :  { %v1843_v62 = vpack.c.bf16 %v1839_v41, %v1838_v40 }
 0x99e   :  { %v1829_v49 = vpop.f32.mrb[56].mxu0 }
 0x99f   :  { %v1830_v38 = vadd.f32 %v3800_v45, %v1829_v49  ;;  %v4251_v28 = vpop.f32.mrb[57].mxu0  ;;  %4274 = vmatmul.mubr.bf16.gmra.mrb[76].mxu1 %v1843_v62 }
 0x9a0   :  { %v1832_v2 = vpop.f32.mrb[58].mxu0  ;;  %4277 = vmatprep.mubr.msk.bf16.mxu1 %vm4916_vm1, %v4915_v16 }
 0x9a1   :  { %v1833_v63 = vadd.f32 %v3800_v45, %v1832_v2  ;;  %v4252_v59 = vpop.f32.mrb[59].mxu0  ;;  %v1840_v10 = vmax.f32 %v1830_v38, 0.0 }
 0x9a3   :  { %v1841_v50 = vmax.f32 %v1833_v63, 0.0 }
 0x9a5   :  { %v1844_v56 = vpack.c.bf16 %v1841_v50, %v1840_v10 }
 0x9a7   :  { %4278 = vmatmul.mubr.bf16.gmra.mrb[80].mxu1 %v1844_v56 }
 0x9a8   :  { %4321 = vmatprep.mubr.msk.bf16.mxu1 %vm4916_vm1, %v4915_v16 }
 0xa68   :  { %v1950_v0 = vpop.f32.mrb[72].mxu1 }
 0xa69   :  { %v1951_v36 = vadd.f32 %v3806_v47, %v1950_v0  ;;  %v4271_v30 = vpop.f32.mrb[73].mxu1  ;;  %v4650_v0 = vld [vmem:[%s6578_s5 + $0x18] sm:$0xff]  }
 0xa6a   :  { %v1953_v35 = vpop.f32.mrb[74].mxu1 }
 0xa6b   :  { %v5860_v3 = vadd.f32 %v1951_v36, %v5721_v17  ;;  %v1954_v9 = vadd.f32 %v3806_v47, %v1953_v35  ;;  %v4272_v5 = vpop.f32.mrb[75].mxu1 }
 0xa6d   :  { %v5863_v29 = vadd.f32 %v1954_v9, %v5724_v20  ;;  %v1983_v61 = vsel %vm280_vm0, %v5860_v3, 0.0 }
 0xa6e   :  { %1984 = vadd.xlane.f32.xlu1 %v1983_v61 }
 0xa6f   :  { %v1986_v34 = vsel %vm280_vm0, %v5863_v29, 0.0 }
 0xa70   :  { %1987 = vadd.xlane.f32.xlu0 %v1986_v34 }
 0xa72   :  { %v1958_v8 = vpop.f32.mrb[76].mxu1 }
 0xa73   :  { %v1959_v55 = vadd.f32 %v3806_v47, %v1958_v8  ;;  %v4275_v46 = vpop.f32.mrb[77].mxu1 }
 0xa74   :  { %v1961_v24 = vpop.f32.mrb[78].mxu1 }
 0xa75   :  { %v5870_v17 = vadd.f32 %v1959_v55, %v5731_v52  ;;  %v1962_v14 = vadd.f32 %v3806_v47, %v1961_v24  ;;  %v4276_v4 = vpop.f32.mrb[79].mxu1 }
 0xa76   :  { %v3817_v4 = vld [vmem:[%s6579_s9 + $0x1] ss:$0 sm:$0xff] }
 0xa77   :  { %v5873_v20 = vadd.f32 %v1962_v14, %v5734_v58  ;;  %v1989_v27 = vsel %vm280_vm0, %v5870_v17, 0.0 }
 0xa78   :  { %1990 = vadd.xlane.f32.xlu1 %v1989_v27 }
 0xa79   :  { %v1992_v1 = vsel %vm280_vm0, %v5873_v20, 0.0 }
 0xa7a   :  { %1993 = vadd.xlane.f32.xlu0 %v1992_v1  ;;  %v1966_v12 = vpop.f32.mrb[80].mxu1 }
 0xa7b   :  { %v1967_v44 = vadd.f32 %v3806_v47, %v1966_v12  ;;  %v4279_v25 = vpop.f32.mrb[81].mxu1 }
 0xa7c   :  { %v1969_v42 = vpop.f32.mrb[82].mxu1 }
 0xa7d   :  { %v5880_v52 = vadd.f32 %v1967_v44, %v5741_v18  ;;  %v1970_v6 = vadd.f32 %v3806_v47, %v1969_v42  ;;  %v4280_v33 = vpop.f32.mrb[83].mxu1  ;;  %v4649_v47 = vld [vmem:[%s6578_s5 + $0x10] sm:$0xff]   ;;  %v3818_v44 = vld [vmem:[%s6580_s10 + $0x1] ss:$0 sm:$0xff]  ;;  %s6623_s5 = smov 8   ;;  %s6624_s10 = smov 16  }
 0xa7e   :  { %4282 = vmatpush3.bf16.msra.mxu0 %v4649_v47 }
 0xa7f   :  { %v5883_v58 = vadd.f32 %v1970_v6, %v5744_v23  ;;  %v1995_v37 = vsel %vm280_vm0, %v5880_v52, 0.0  ;;  %4283 = vmatprep.subr.bf16.mxu0 %v4915_v16 }
 0xa80   :  { %1996 = vadd.xlane.f32.xlu1 %v1995_v37 }
 0xa81   :  { %v1998_v15 = vsel %vm280_vm0, %v5883_v58, 0.0 }
 0xa82   :  { %1999 = vadd.xlane.f32.xlu0 %v1998_v15  ;;  %4284 = vmatpush3.bf16.msra.mxu0 %v4650_v0 }
 0xa83   :  { %4297 = vmatprep.subr.bf16.mxu0 %v4915_v16 }
 0xafb   :  { %v1985_v45 = vpop.xlane.xlu1 %1984 }
 0xafc   :  { %v2001_v43 = vmul.f32 0.03125, %v1985_v45 }
 0xafd   :  { %v1988_v21 = vpop.xlane.xlu0 %1987 }
 0xafe   :  { %v2007_v54 = vsub.f32 %v5860_v3, %v2001_v43  ;;  %v2002_v18 = vmul.f32 0.03125, %v1988_v21 }
 0xb00   :  { %v2008_v39 = vsub.f32 %v5863_v29, %v2002_v18  ;;  %v2013_v19 = vmul.f32 %v2007_v54, %v2007_v54 }
 0xb02   :  { %v2019_v23 = vsel %vm280_vm0, %v2013_v19, 0.0  ;;  %v2014_v13 = vmul.f32 %v2008_v39, %v2008_v39 }
 0xb03   :  { %2020 = vadd.xlane.f32.xlu1 %v2019_v23 }
 0xb04   :  { %v2022_v51 = vsel %vm280_vm0, %v2014_v13, 0.0 }
 0xb05   :  { %v1991_v22 = vpop.xlane.xlu1 %1990  ;;  %2023 = vadd.xlane.f32.xlu0 %v2022_v51 }
 0xb06   :  { %v2003_v31 = vmul.f32 0.03125, %v1991_v22 }
 0xb07   :  { %v1994_v57 = vpop.xlane.xlu0 %1993 }
 0xb08   :  { %v5894_v32 = vsub.f32 %v5870_v17, %v2003_v31  ;;  %v2004_v60 = vmul.f32 0.03125, %v1994_v57 }
 0xb0a   :  { %v5897_v48 = vsub.f32 %v5873_v20, %v2004_v60  ;;  %v2015_v26 = vmul.f32 %v5894_v32, %v5894_v32 }
 0xb0c   :  { %v2025_v53 = vsel %vm280_vm0, %v2015_v26, 0.0  ;;  %v2016_v40 = vmul.f32 %v5897_v48, %v5897_v48 }
 0xb0d   :  { %2026 = vadd.xlane.f32.xlu1 %v2025_v53  ;;  %v1997_v41 = vpop.xlane.xlu1 %1996 }
 0xb0e   :  { %v2005_v62 = vmul.f32 0.03125, %v1997_v41  ;;  %v2028_v49 = vsel %vm280_vm0, %v2016_v40, 0.0 }
 0xb0f   :  { %2029 = vadd.xlane.f32.xlu0 %v2028_v49  ;;  %v2000_v38 = vpop.xlane.xlu0 %1999 }
 0xb10   :  { %v2011_v28 = vsub.f32 %v5880_v52, %v2005_v62  ;;  %v2006_v2 = vmul.f32 0.03125, %v2000_v38 }
 0xb12   :  { %v2012_v63 = vsub.f32 %v5883_v58, %v2006_v2  ;;  %v2017_v59 = vmul.f32 %v2011_v28, %v2011_v28 }
 0xb14   :  { %v2031_v10 = vsel %vm280_vm0, %v2017_v59, 0.0  ;;  %v2018_v50 = vmul.f32 %v2012_v63, %v2012_v63 }
 0xb15   :  { %2032 = vadd.xlane.f32.xlu1 %v2031_v10 }
 0xb16   :  { %v2034_v56 = vsel %vm280_vm0, %v2018_v50, 0.0 }
 0xb17   :  { %2035 = vadd.xlane.f32.xlu0 %v2034_v56 }
 0xb90   :  { %v2021_v36 = vpop.xlane.xlu1 %2020 }
 0xb91   :  { %v2037_v30 = vmul.f32 0.03125, %v2021_v36 }
 0xb92   :  { %v2024_v35 = vpop.xlane.xlu0 %2023 }
 0xb93   :  { %v2043_v9 = vadd.f32 1e-05, %v2037_v30  ;;  %v2038_v5 = vmul.f32 0.03125, %v2024_v35 }
 0xb95   :  { %4785 = vrsqrt.f32 %v2043_v9  ;;  %v2044_v61 = vadd.f32 1e-05, %v2038_v5 }
 0xb97   :  { %4787 = vrsqrt.f32 %v2044_v61 }
 0xb9a   :  { %v2027_v34 = vpop.xlane.xlu1 %2026 }
 0xb9b   :  { %v2039_v8 = vmul.f32 0.03125, %v2027_v34 }
 0xb9c   :  { %v2030_v55 = vpop.xlane.xlu0 %2029 }
 0xb9d   :  { %v2045_v46 = vadd.f32 1e-05, %v2039_v8  ;;  %v2040_v24 = vmul.f32 0.03125, %v2030_v55 }
 0xb9f   :  { %v4786_v14 = vpop.eup %4785  ;;  %4789 = vrsqrt.f32 %v2045_v46  ;;  %v2046_v27 = vadd.f32 1e-05, %v2040_v24 }
 0xba0   :  { %v2055_v1 = vmul.f32 %v4786_v14, %v2007_v54 }
 0xba1   :  { %v4788_v12 = vpop.eup %4787  ;;  %4791 = vrsqrt.f32 %v2046_v27 }
 0xba2   :  { %v2067_v25 = vmul.f32 %v3817_v4, %v2055_v1  ;;  %v2056_v42 = vmul.f32 %v4788_v12, %v2008_v39  ;;  %v2033_v6 = vpop.xlane.xlu1 %2032 }
 0xba3   :  { %v2041_v33 = vmul.f32 0.03125, %v2033_v6 }
 0xba4   :  { %v2079_v37 = vadd.f32 %v3818_v44, %v2067_v25  ;;  %v2068_v15 = vmul.f32 %v3817_v4, %v2056_v42  ;;  %v2036_v45 = vpop.xlane.xlu0 %2035 }
 0xba5   :  { %v2047_v43 = vadd.f32 1e-05, %v2041_v33  ;;  %v2042_v21 = vmul.f32 0.03125, %v2036_v45 }
 0xba6   :  { %v2080_v18 = vadd.f32 %v3818_v44, %v2068_v15 }
 0xba7   :  { %4793 = vrsqrt.f32 %v2047_v43  ;;  %v2048_v19 = vadd.f32 1e-05, %v2042_v21 }
 0xba8   :  { %v2085_v23 = vpack.c.bf16 %v2080_v18, %v2079_v37 }
 0xba9   :  { %v4790_v54 = vpop.eup %4789  ;;  %4795 = vrsqrt.f32 %v2048_v19 }
 0xbaa   :  { %4286 = vmatmul.mubr.msk.bf16.vlgmr.msra.gmra.mrb[60].mxu0 %vm280_vm0, %v2085_v23  ;;  %v2057_v13 = vmul.f32 %v4790_v54, %v5894_v32 }
 0xbab   :  { %v4792_v51 = vpop.eup %4791  ;;  %4289 = vmatprep.mubr.msk.bf16.mxu0 %vm4916_vm1, %v4915_v16 }
 0xbac   :  { %v2058_v39 = vmul.f32 %v4792_v51, %v5897_v48  ;;  %v2069_v22 = vmul.f32 %v3817_v4, %v2057_v13  ;;  %v3824_v48 = vld [vmem:[%s6581_s6 + $0x1] ss:$0 sm:$0xff]  ;;  %s6619_s6 = smov 64  }
 0xbae   :  { %v2070_v31 = vmul.f32 %v3817_v4, %v2058_v39  ;;  %v2081_v57 = vadd.f32 %v3818_v44, %v2069_v22 }
 0xbb0   :  { %v2082_v60 = vadd.f32 %v3818_v44, %v2070_v31 }
 0xbb1   :  { %v4794_v26 = vpop.eup %4793 }
 0xbb2   :  { %v2086_v53 = vpack.c.bf16 %v2082_v60, %v2081_v57  ;;  %v2059_v40 = vmul.f32 %v4794_v26, %v2011_v28 }
 0xbb3   :  { %v4796_v41 = vpop.eup %4795 }
 0xbb4   :  { %v2060_v62 = vmul.f32 %v4796_v41, %v2012_v63  ;;  %4290 = vmatmul.mubr.msk.bf16.gmra.mrb[64].mxu0 %vm280_vm0, %v2086_v53  ;;  %v2071_v49 = vmul.f32 %v3817_v4, %v2059_v40 }
 0xbb5   :  { %4293 = vmatprep.mubr.msk.bf16.mxu0 %vm4916_vm1, %v4915_v16 }
 0xbb6   :  { %v2072_v32 = vmul.f32 %v3817_v4, %v2060_v62  ;;  %v2083_v38 = vadd.f32 %v3818_v44, %v2071_v49 }
 0xbb8   :  { %v2084_v2 = vadd.f32 %v3818_v44, %v2072_v32 }
 0xbba   :  { %v2087_v59 = vpack.c.bf16 %v2084_v2, %v2083_v38 }
 0xbbc   :  { %4294 = vmatmul.mubr.msk.bf16.gmra.mrb[68].mxu0 %vm280_vm0, %v2087_v59 }
 0xbbd   :  { %4303 = vmatprep.mubr.msk.bf16.mxu0 %vm4916_vm1, %v4915_v16 }
 0xc7d   :  { %v2156_v28 = vpop.f32.mrb[60].mxu0 }
 0xc7e   :  { %v4287_v63 = vpop.f32.mrb[61].mxu0  ;;  %v2157_v50 = vadd.f32 %v3824_v48, %v2156_v28 }
 0xc7f   :  { %v2159_v10 = vpop.f32.mrb[62].mxu0 }
 0xc80   :  { %v2160_v56 = vadd.f32 %v3824_v48, %v2159_v10  ;;  %v4288_v47 = vpop.f32.mrb[63].mxu0 }
 0xc82   :  { %v5937_v0 = vpack.c.bf16 %v2160_v56, %v2157_v50 }
 0xc84   :  { %2185 = vrot.lane.b32.xlu1 %v5937_v0, %s4917_s1 }
 0xc87   :  { %v2164_v36 = vpop.f32.mrb[64].mxu0 }
 0xc88   :  { %v4291_v30 = vpop.f32.mrb[65].mxu0  ;;  %v2165_v9 = vadd.f32 %v3824_v48, %v2164_v36 }
 0xc89   :  { %v2167_v35 = vpop.f32.mrb[66].mxu0  ;;  %v6072_v30 = vld [vmem:[%s6582_s2] sm:$0xff] }
 0xc8a   :  { %v2168_v5 = vadd.f32 %v3824_v48, %v2167_v35  ;;  %v4292_v61 = vpop.f32.mrb[67].mxu0 }
 0xc8b   :  { %v6080_v61 = vld [vmem:[%s6582_s2 + $0x8] sm:$0xff] }
 0xc8c   :  { %v5941_v34 = vpack.c.bf16 %v2168_v5, %v2165_v9 }
 0xc8e   :  { %2187 = vrot.lane.b32.xlu0 %v5941_v34, %s4917_s1 }
 0xc8f   :  { %v2172_v8 = vpop.f32.mrb[68].mxu0 }
 0xc90   :  { %v4295_v55 = vpop.f32.mrb[69].mxu0  ;;  %v2173_v24 = vadd.f32 %v3824_v48, %v2172_v8 }
 0xc91   :  { %v2175_v46 = vpop.f32.mrb[70].mxu0 }
 0xc92   :  { %v2176_v14 = vadd.f32 %v3824_v48, %v2175_v46  ;;  %2430 = vrot.lane.b32.xlu0 %v5941_v34, %s4918_s22  ;;  %v4296_v4 = vpop.f32.mrb[71].mxu0 }
 0xc94   :  { %v5947_v27 = vpack.c.bf16 %v2176_v14, %v2173_v24 }
 0xc96   :  { %2422 = vrot.lane.b32.xlu0 %v5937_v0, %s4920_s23  ;;  %2189 = vrot.lane.b32.xlu1 %v5947_v27, %s4917_s1  ;;  %s6620_s1 = smov 56  }
 0xc9a   :  { %2424 = vrot.lane.b32.xlu0 %v5941_v34, %s4920_s23  ;;  %2428 = vrot.lane.b32.xlu1 %v5937_v0, %s4918_s22 }
 0xc9e   :  { %2426 = vrot.lane.b32.xlu0 %v5947_v27, %s4920_s23  ;;  %2432 = vrot.lane.b32.xlu1 %v5947_v27, %s4918_s22  ;;  %s6621_s22 = smov 48  }
 0xca2   :  { %2665 = vrot.lane.b32.xlu0 %v5937_v0, %s4922_s0  ;;  %2671 = vrot.lane.b32.xlu1 %v5937_v0, %s4919_s4 }
 0xca6   :  { %2667 = vrot.lane.b32.xlu0 %v5941_v34, %s4922_s0  ;;  %2673 = vrot.lane.b32.xlu1 %v5941_v34, %s4919_s4 }
 0xcaa   :  { %2669 = vrot.lane.b32.xlu0 %v5947_v27, %s4922_s0  ;;  %2675 = vrot.lane.b32.xlu1 %v5947_v27, %s4919_s4 }
 0xcae   :  { %2908 = vrot.lane.b32.xlu0 %v5937_v0, %s4923_s25  ;;  %2914 = vrot.lane.b32.xlu1 %v5937_v0, %s4921_s24 }
 0xcb2   :  { %2912 = vrot.lane.b32.xlu0 %v5947_v27, %s4923_s25  ;;  %2916 = vrot.lane.b32.xlu1 %v5941_v34, %s4921_s24 }
 0xcb6   :  { %2341 = vrot.lane.b32.xlu0 %v5937_v0, %s6619_s6  ;;  %2918 = vrot.lane.b32.xlu1 %v5947_v27, %s4921_s24 }
 0xcba   :  { %2586 = vrot.lane.b32.xlu0 %v5941_v34, %s6620_s1  ;;  %2910 = vrot.lane.b32.xlu1 %v5941_v34, %s4923_s25 }
 0xcbe   :  { %2345 = vrot.lane.b32.xlu0 %v5947_v27, %s6619_s6  ;;  %2343 = vrot.lane.b32.xlu1 %v5941_v34, %s6619_s6 }
 0xcc2   :  { %2588 = vrot.lane.b32.xlu0 %v5947_v27, %s6620_s1  ;;  %2584 = vrot.lane.b32.xlu1 %v5937_v0, %s6620_s1 }
 0xcc6   :  { %2827 = vrot.lane.b32.xlu1 %v5937_v0, %s6621_s22 }
 0xcca   :  { %2829 = vrot.lane.b32.xlu1 %v5941_v34, %s6621_s22 }
 0xcf6   :  { %v2186_v1 = vpop.permute.xlu1 %2185 }
 0xcf7   :  { %v2201_v12 = vsel %vm488_vm2, %v2186_v1, 0 }
 0xcf8   :  { %4298 = vmatpush3.bf16.xpose.msra.mxu0 %v2201_v12  ;;  %v6092_v12 = vld [vmem:[%s6582_s2 + $0x10] sm:$0xff] }
 0xcf9   :  { %4299 = vmatprep.subr.bf16.mxu0 %v4915_v16 }
 0xd00   :  { %v2188_v44 = vpop.permute.xlu0 %2187 }
 0xd01   :  { %v2204_v25 = vsel %vm488_vm2, %v2188_v44, 0 }
 0xd02   :  { %4300 = vmatpush3.bf16.xpose.msra.mxu0 %v2204_v25 }
 0xd03   :  { %4301 = vmatprep.subr.bf16.mxu0 %v4915_v16 }
 0xd04   :  { %v2431_v42 = vpop.permute.xlu0 %2430 }
 0xd05   :  { %v2447_v51 = vsel %vm488_vm2, %v2431_v42, 0 }
 0xd08   :  { %v2190_v6 = vpop.permute.xlu1 %2189  ;;  %v2423_v33 = vpop.permute.xlu0 %2422 }
 0xd09   :  { %v2207_v37 = vsel %vm488_vm2, %v2190_v6, 0  ;;  %v6100_v6 = vld [vmem:[%s6582_s2 + $0x18] sm:$0xff] }
 0xd0a   :  { %4302 = vmatpush3.bf16.xpose.msra.mxu0 %v2207_v37 }
 0xd0b   :  { %4333 = vmatprep.subr.bf16.mxu0 %v4915_v16 }
 0xd0c   :  { %v2429_v15 = vpop.permute.xlu1 %2428  ;;  %v2425_v45 = vpop.permute.xlu0 %2424 }
 0xd0d   :  { %v2444_v18 = vsel %vm488_vm2, %v2429_v15, 0 }
 0xd10   :  { %v2433_v43 = vpop.permute.xlu1 %2432  ;;  %v2427_v21 = vpop.permute.xlu0 %2426 }
 0xd11   :  { %4304 = vmatmul.mubr.msk.bf16.vlgmr.msra.gmra.mrb[72].mxu0 %vm488_vm2, %v5937_v0  ;;  %v2450_v60 = vsel %vm488_vm2, %v2433_v43, 0 }
 0xd12   :  { %4334 = vmatpush3.bf16.xpose.msra.mxu0 %v2444_v18  ;;  %4307 = vmatprep.mubr.msk.bf16.mxu0 %vm4916_vm1, %v4915_v16 }
 0xd13   :  { %4335 = vmatprep.subr.bf16.mxu0 %v4915_v16 }
 0xd14   :  { %v2672_v19 = vpop.permute.xlu1 %2671  ;;  %v2666_v23 = vpop.permute.xlu0 %2665 }
 0xd15   :  { %v2687_v62 = vsel %vm488_vm2, %v2672_v19, 0  ;;  %v6112_v19 = vld [vmem:[%s6582_s2 + $0x20] sm:$0xff] }
 0xd18   :  { %v2674_v54 = vpop.permute.xlu1 %2673  ;;  %v2668_v13 = vpop.permute.xlu0 %2667 }
 0xd19   :  { %4308 = vmatmul.mubr.msk.bf16.gmra.mrb[76].mxu0 %vm488_vm2, %v5941_v34  ;;  %v2690_v2 = vsel %vm488_vm2, %v2674_v54, 0 }
 0xd1a   :  { %4336 = vmatpush3.bf16.xpose.msra.mxu0 %v2447_v51  ;;  %4311 = vmatprep.mubr.msk.bf16.mxu0 %vm4916_vm1, %v4915_v16  ;;  %v6120_v51 = vld [vmem:[%s6582_s2 + $0x28] sm:$0xff]  ;;  %s6622_s2 = smov 40  }
 0xd1b   :  { %4337 = vmatprep.subr.bf16.mxu0 %v4915_v16 }
 0xd1c   :  { %v2676_v39 = vpop.permute.xlu1 %2675  ;;  %v2670_v22 = vpop.permute.xlu0 %2669 }
 0xd1d   :  { %v2693_v48 = vsel %vm488_vm2, %v2676_v39, 0 }
 0xd20   :  { %v2915_v31 = vpop.permute.xlu1 %2914  ;;  %v2909_v57 = vpop.permute.xlu0 %2908 }
 0xd21   :  { %4312 = vmatmul.mubr.msk.bf16.gmra.mrb[80].mxu0 %vm488_vm2, %v5947_v27  ;;  %v2930_v28 = vsel %vm488_vm2, %v2915_v31, 0 }
 0xd22   :  { %4338 = vmatpush3.bf16.xpose.msra.mxu0 %v2450_v60  ;;  %4339 = vmatprep.mubr.msk.bf16.mxu0 %vm4916_vm1, %v4915_v16 }
 0xd23   :  { %4369 = vmatprep.subr.bf16.mxu0 %v4915_v16 }
 0xd24   :  { %v2917_v26 = vpop.permute.xlu1 %2916  ;;  %v2913_v53 = vpop.permute.xlu0 %2912 }
 0xd25   :  { %v2933_v63 = vsel %vm488_vm2, %v2917_v26, 0 }
 0xd28   :  { %v2919_v40 = vpop.permute.xlu1 %2918  ;;  %v2342_v41 = vpop.permute.xlu0 %2341 }
 0xd29   :  { %4316 = vmatpush3.bf16.msra.mxu1 %v2342_v41  ;;  %4340 = vmatmul.mubr.msk.bf16.vlgmr.msra.gmra.mrb[84].mxu0 %vm488_vm2, %v2423_v33  ;;  %v2936_v10 = vsel %vm488_vm2, %v2919_v40, 0 }
 0xd2a   :  { %4370 = vmatpush3.bf16.xpose.msra.mxu0 %v2687_v62  ;;  %4317 = vmatprep.subr.bf16.mxu1 %v4915_v16 }
 0xd2b   :  { %4343 = vmatprep.mubr.msk.bf16.mxu0 %vm4916_vm1, %v4915_v16  ;;  %4371 = vmatprep.subr.bf16.mxu0 %v4915_v16 }
 0xd2c   :  { %v2911_v49 = vpop.permute.xlu1 %2910  ;;  %v6031_v32 = vpop.permute.xlu0 %2586 }
 0xd30   :  { %v2344_v38 = vpop.permute.xlu1 %2343  ;;  %v2346_v59 = vpop.permute.xlu0 %2345 }
 0xd31   :  { %4318 = vmatpush3.bf16.msra.mxu1 %v2344_v38  ;;  %4344 = vmatmul.mubr.msk.bf16.gmra.mrb[88].mxu0 %vm488_vm2, %v2425_v45 }
 0xd32   :  { %4372 = vmatpush3.bf16.xpose.msra.mxu0 %v2690_v2  ;;  %4319 = vmatprep.subr.bf16.mxu1 %v4915_v16 }
 0xd33   :  { %4347 = vmatprep.mubr.msk.bf16.mxu0 %vm4916_vm1, %v4915_v16  ;;  %4373 = vmatprep.subr.bf16.mxu0 %v4915_v16 }
 0xd35   :  { %4320 = vmatpush3.bf16.msra.mxu1 %v2346_v59 }
 0xd36   :  { %4351 = vmatprep.subr.bf16.mxu1 %v4915_v16 }
 0xd39   :  { %4348 = vmatmul.mubr.msk.bf16.gmra.mrb[92].mxu0 %vm488_vm2, %v2427_v21 }
 0xd3a   :  { %4374 = vmatpush3.bf16.xpose.msra.mxu0 %v2693_v48  ;;  %4375 = vmatprep.mubr.msk.bf16.mxu0 %vm4916_vm1, %v4915_v16 }
 0xd3b   :  { %4405 = vmatprep.subr.bf16.mxu0 %v4915_v16 }
 0xd41   :  { %4376 = vmatmul.mubr.msk.bf16.vlgmr.msra.gmra.mrb[96].mxu0 %vm488_vm2, %v2666_v23 }
 0xd42   :  { %4406 = vmatpush3.bf16.xpose.msra.mxu0 %v2930_v28  ;;  %4379 = vmatprep.mubr.msk.bf16.mxu0 %vm4916_vm1, %v4915_v16 }
 0xd43   :  { %4407 = vmatprep.subr.bf16.mxu0 %v4915_v16 }
 0xd49   :  { %4380 = vmatmul.mubr.msk.bf16.gmra.mrb[100].mxu0 %vm488_vm2, %v2668_v13 }
 0xd4a   :  { %4408 = vmatpush3.bf16.xpose.msra.mxu0 %v2933_v63  ;;  %4383 = vmatprep.mubr.msk.bf16.mxu0 %vm4916_vm1, %v4915_v16 }
 0xd4b   :  { %4409 = vmatprep.subr.bf16.mxu0 %v4915_v16 }
 0xd51   :  { %4384 = vmatmul.mubr.msk.bf16.gmra.mrb[104].mxu0 %vm488_vm2, %v2670_v22 }
 0xd52   :  { %4410 = vmatpush3.bf16.xpose.msra.mxu0 %v2936_v10  ;;  %4411 = vmatprep.mubr.msk.bf16.mxu0 %vm4916_vm1, %v4915_v16 }
 0xd53   :  { %4441 = vmatprep.subr.bf16.mxu0 %v4915_v16 }
 0xd59   :  { %4412 = vmatmul.mubr.msk.bf16.vlgmr.msra.gmra.mrb[108].mxu0 %vm488_vm2, %v2909_v57 }
 0xd5a   :  { %4415 = vmatprep.mubr.msk.bf16.mxu0 %vm4916_vm1, %v4915_v16 }
 0xd61   :  { %4416 = vmatmul.mubr.msk.bf16.gmra.mrb[112].mxu0 %vm488_vm2, %v2911_v49 }
 0xd62   :  { %4419 = vmatprep.mubr.msk.bf16.mxu0 %vm4916_vm1, %v4915_v16 }
 0xd69   :  { %4420 = vmatmul.mubr.msk.bf16.gmra.mrb[116].mxu0 %vm488_vm2, %v2913_v53 }
 0xd6a   :  { %4445 = vmatprep.mubr.msk.bf16.mxu0 %vm4916_vm1, %v4915_v16 }
 0xde4   :  { %v2243_v50 = vpop.f32.mrb[72].mxu0 }
 0xde5   :  { %v2266_v56 = vmul.f32 0.35355338, %v2243_v50  ;;  %v4305_v47 = vpop.f32.mrb[73].mxu0 }
 0xde6   :  { %v2246_v36 = vpop.f32.mrb[74].mxu0 }
 0xde7   :  { %v6075_v35 = vadd.f32 %v6072_v30, %v2266_v56  ;;  %v2267_v9 = vmul.f32 0.35355338, %v2246_v36  ;;  %v4306_v5 = vpop.f32.mrb[75].mxu0 }
 0xde9   :  { %v6083_v8 = vadd.f32 %v6080_v61, %v2267_v9  ;;  %v2278_v55 = vsel %vm576_vm3, %v6075_v35, -inf }
 0xdea   :  { %2279 = vmax.xlane.f32.xlu1 %v2278_v55 }
 0xdeb   :  { %v2281_v46 = vsel %vm576_vm3, %v6083_v8, -inf }
 0xdec   :  { %2282 = vmax.xlane.f32.xlu0 %v2281_v46  ;;  %v2251_v24 = vpop.f32.mrb[76].mxu0 }
 0xded   :  { %v2268_v14 = vmul.f32 0.35355338, %v2251_v24  ;;  %v4309_v4 = vpop.f32.mrb[77].mxu0 }
 0xdee   :  { %v2254_v1 = vpop.f32.mrb[78].mxu0 }
 0xdef   :  { %v6095_v44 = vadd.f32 %v6092_v12, %v2268_v14  ;;  %v2269_v25 = vmul.f32 0.35355338, %v2254_v1  ;;  %v4310_v42 = vpop.f32.mrb[79].mxu0 }
 0xdf1   :  { %v6103_v33 = vadd.f32 %v6100_v6, %v2269_v25  ;;  %v2284_v37 = vsel %vm576_vm3, %v6095_v44, -inf }
 0xdf2   :  { %2285 = vmax.xlane.f32.xlu0 %v2284_v37 }
 0xdf3   :  { %v2287_v15 = vsel %vm576_vm3, %v6103_v33, -inf }
 0xdf4   :  { %2288 = vmax.xlane.f32.xlu1 %v2287_v15  ;;  %v2259_v45 = vpop.f32.mrb[80].mxu0 }
 0xdf5   :  { %v2270_v43 = vmul.f32 0.35355338, %v2259_v45  ;;  %v4313_v21 = vpop.f32.mrb[81].mxu0 }
 0xdf6   :  { %v2262_v18 = vpop.f32.mrb[82].mxu0 }
 0xdf7   :  { %v6115_v23 = vadd.f32 %v6112_v19, %v2270_v43  ;;  %v2271_v54 = vmul.f32 0.35355338, %v2262_v18  ;;  %v4314_v13 = vpop.f32.mrb[83].mxu0 }
 0xdf9   :  { %v6123_v39 = vadd.f32 %v6120_v51, %v2271_v54  ;;  %v2290_v22 = vsel %vm576_vm3, %v6115_v23, -inf }
 0xdfa   :  { %2291 = vmax.xlane.f32.xlu0 %v2290_v22 }
 0xdfb   :  { %v2293_v31 = vsel %vm576_vm3, %v6123_v39, -inf }
 0xdfc   :  { %2294 = vmax.xlane.f32.xlu1 %v2293_v31  ;;  %v2486_v57 = vpop.f32.mrb[84].mxu0 }
 0xdfd   :  { %v2509_v60 = vmul.f32 0.35355338, %v2486_v57  ;;  %v4341_v26 = vpop.f32.mrb[85].mxu0 }
 0xdfe   :  { %v2489_v53 = vpop.f32.mrb[86].mxu0 }
 0xdff   :  { %v6130_v40 = vadd.f32 %v6072_v30, %v2509_v60  ;;  %v2510_v41 = vmul.f32 0.35355338, %v2489_v53  ;;  %v4342_v62 = vpop.f32.mrb[87].mxu0 }
 0xe01   :  { %v6133_v49 = vadd.f32 %v6080_v61, %v2510_v41  ;;  %v2521_v38 = vsel %vm576_vm3, %v6130_v40, -inf }
 0xe02   :  { %2522 = vmax.xlane.f32.xlu1 %v2521_v38 }
 0xe03   :  { %v2524_v2 = vsel %vm576_vm3, %v6133_v49, -inf }
 0xe04   :  { %2525 = vmax.xlane.f32.xlu0 %v2524_v2  ;;  %v2494_v59 = vpop.f32.mrb[88].mxu0 }
 0xe05   :  { %v2511_v48 = vmul.f32 0.35355338, %v2494_v59  ;;  %v4345_v28 = vpop.f32.mrb[89].mxu0 }
 0xe06   :  { %v2497_v63 = vpop.f32.mrb[90].mxu0 }
 0xe07   :  { %v6140_v10 = vadd.f32 %v6092_v12, %v2511_v48  ;;  %v2512_v50 = vmul.f32 0.35355338, %v2497_v63  ;;  %v4346_v56 = vpop.f32.mrb[91].mxu0 }
 0xe09   :  { %v6143_v47 = vadd.f32 %v6100_v6, %v2512_v50  ;;  %v2527_v36 = vsel %vm576_vm3, %v6140_v10, -inf }
 0xe0a   :  { %2528 = vmax.xlane.f32.xlu1 %v2527_v36 }
 0xe0b   :  { %v2530_v46 = vsel %vm576_vm3, %v6143_v47, -inf }
 0xe0c   :  { %v2502_v9 = vpop.f32.mrb[92].mxu0 }
 0xe0d   :  { %v2513_v5 = vmul.f32 0.35355338, %v2502_v9  ;;  %v4349_v55 = vpop.f32.mrb[93].mxu0 }
 0xe0e   :  { %2531 = vmax.xlane.f32.xlu1 %v2530_v46  ;;  %v2505_v24 = vpop.f32.mrb[94].mxu0 }
 0xe0f   :  { %v6150_v14 = vadd.f32 %v6112_v19, %v2513_v5  ;;  %v2514_v4 = vmul.f32 0.35355338, %v2505_v24  ;;  %v4350_v1 = vpop.f32.mrb[95].mxu0 }
 0xe11   :  { %v6153_v25 = vadd.f32 %v6120_v51, %v2514_v4  ;;  %v2533_v42 = vsel %vm576_vm3, %v6150_v14, -inf }
 0xe12   :  { %2534 = vmax.xlane.f32.xlu1 %v2533_v42 }
 0xe13   :  { %v2536_v43 = vsel %vm576_vm3, %v6153_v25, -inf }
 0xe14   :  { %v2729_v37 = vpop.f32.mrb[96].mxu0 }
 0xe15   :  { %v2752_v15 = vmul.f32 0.35355338, %v2729_v37  ;;  %v4377_v45 = vpop.f32.mrb[97].mxu0 }
 0xe16   :  { %2537 = vmax.xlane.f32.xlu1 %v2536_v43  ;;  %v2732_v21 = vpop.f32.mrb[98].mxu0 }
 0xe17   :  { %v6160_v18 = vadd.f32 %v6072_v30, %v2752_v15  ;;  %v4378_v54 = vpop.f32.mrb[99].mxu0  ;;  %v2753_v46 = vmul.f32 0.35355338, %v2732_v21 }
 0xe19   :  { %v2764_v13 = vsel %vm576_vm3, %v6160_v18, -inf }
 0xe1a   :  { %2765 = vmax.xlane.f32.xlu0 %v2764_v13 }
 0xe1c   :  { %v2737_v22 = vpop.f32.mrb[100].mxu0 }
 0xe1d   :  { %v4381_v31 = vpop.f32.mrb[101].mxu0  ;;  %v2754_v24 = vmul.f32 0.35355338, %v2737_v22 }
 0xe1e   :  { %v2740_v57 = vpop.f32.mrb[102].mxu0 }
 0xe1f   :  { %v4382_v60 = vpop.f32.mrb[103].mxu0  ;;  %v6172_v1 = vadd.f32 %v6092_v12, %v2754_v24  ;;  %v2755_v42 = vmul.f32 0.35355338, %v2740_v57 }
 0xe21   :  { %v6180_v43 = vadd.f32 %v6100_v6, %v2755_v42  ;;  %v2770_v21 = vsel %vm576_vm3, %v6172_v1, -inf }
 0xe23   :  { %v2773_v57 = vsel %vm576_vm3, %v6180_v43, -inf }
 0xe24   :  { %v2745_v26 = vpop.f32.mrb[104].mxu0 }
 0xe25   :  { %v4385_v53 = vpop.f32.mrb[105].mxu0  ;;  %v2756_v4 = vmul.f32 0.35355338, %v2745_v26 }
 0xe26   :  { %v2748_v41 = vpop.f32.mrb[106].mxu0 }
 0xe27   :  { %3070 = vrot.lane.b32.xlu1 %v5937_v0, %s6622_s2  ;;  %v4386_v62 = vpop.f32.mrb[107].mxu0  ;;  %v6169_v0 = vadd.f32 %v6080_v61, %v2753_v46  ;;  %v6175_v37 = vadd.f32 %v6112_v19, %v2756_v4  ;;  %v2757_v54 = vmul.f32 0.35355338, %v2748_v41 }
 0xe29   :  { %v2767_v45 = vsel %vm576_vm3, %v6169_v0, -inf  ;;  %v2776_v31 = vsel %vm576_vm3, %v6175_v37, -inf  ;;  %v6192_v60 = vadd.f32 %v6120_v51, %v2757_v54 }
 0xe2c   :  { %v2972_v38 = vpop.f32.mrb[108].mxu0 }
 0xe2d   :  { %v4413_v2 = vpop.f32.mrb[109].mxu0  ;;  %v2995_v26 = vmul.f32 0.35355338, %v2972_v38 }
 0xe2e   :  { %v2975_v59 = vpop.f32.mrb[110].mxu0  ;;  %v2779_v2 = vsel %vm576_vm3, %v6192_v60, -inf }
 0xe2f   :  { %v4414_v48 = vpop.f32.mrb[111].mxu0  ;;  %v2996_v15 = vmul.f32 0.35355338, %v2975_v59  ;;  %v6200_v41 = vadd.f32 %v6072_v30, %v2995_v26 }
 0xe30   :  { %2831 = vrot.lane.b32.xlu0 %v5947_v27, %s6621_s22 }
 0xe31   :  { %v6185_v13 = vadd.f32 %v6080_v61, %v2996_v15  ;;  %v3007_v48 = vsel %vm576_vm3, %v6200_v41, -inf }
 0xe33   :  { %v3010_v61 = vsel %vm576_vm3, %v6185_v13, -inf }
 0xe34   :  { %v2980_v28 = vpop.f32.mrb[112].mxu0 }
 0xe35   :  { %v4417_v63 = vpop.f32.mrb[113].mxu0  ;;  %v2997_v22 = vmul.f32 0.35355338, %v2980_v28 }
 0xe36   :  { %v2983_v50 = vpop.f32.mrb[114].mxu0 }
 0xe37   :  { %v4418_v56 = vpop.f32.mrb[115].mxu0  ;;  %v6195_v53 = vadd.f32 %v6092_v12, %v2997_v22  ;;  %v2998_v62 = vmul.f32 0.35355338, %v2983_v50 }
 0xe39   :  { %v3013_v59 = vsel %vm576_vm3, %v6195_v53, -inf  ;;  %v6207_v12 = vadd.f32 %v6100_v6, %v2998_v62 }
 0xe3b   :  { %v3016_v63 = vsel %vm576_vm3, %v6207_v12, -inf }
 0xe3c   :  { %v2988_v36 = vpop.f32.mrb[116].mxu0 }
 0xe3d   :  { %v4421_v9 = vpop.f32.mrb[117].mxu0  ;;  %v2999_v38 = vmul.f32 0.35355338, %v2988_v36  ;;  %v2585_v36 = vpop.permute.xlu1 %2584 }
 0xe3e   :  { %v2991_v5 = vpop.f32.mrb[118].mxu0 }
 0xe3f   :  { %v4422_v55 = vpop.f32.mrb[119].mxu0  ;;  %v6212_v30 = vadd.f32 %v6112_v19, %v2999_v38  ;;  %v3000_v28 = vmul.f32 0.35355338, %v2991_v5  ;;  %v2589_v5 = vpop.permute.xlu0 %2588 }
 0xe41   :  { %v6217_v50 = vadd.f32 %v6120_v51, %v3000_v28  ;;  %v3019_v6 = vsel %vm576_vm3, %v6212_v30, -inf  ;;  %v6223_v9 = vpop.permute.xlu1 %2827 }
 0xe43   :  { %v3022_v56 = vsel %vm576_vm3, %v6217_v50, -inf }
 0xe45   :  { %v6227_v19 = vpop.permute.xlu1 %2829 }
 0xe4b   :  { %2768 = vmax.xlane.f32.xlu1 %v2767_v45 }
 0xe4f   :  { %2771 = vmax.xlane.f32.xlu1 %v2770_v21  ;;  %2777 = vmax.xlane.f32.xlu0 %v2776_v31 }
 0xe53   :  { %2774 = vmax.xlane.f32.xlu1 %v2773_v57  ;;  %3011 = vmax.xlane.f32.xlu0 %v3010_v61 }
 0xe57   :  { %2780 = vmax.xlane.f32.xlu1 %v2779_v2  ;;  %3014 = vmax.xlane.f32.xlu0 %v3013_v59 }
 0xe5b   :  { %3008 = vmax.xlane.f32.xlu1 %v3007_v48 }
 0xe5f   :  { %3017 = vmax.xlane.f32.xlu1 %v3016_v63 }
 0xe63   :  { %3020 = vmax.xlane.f32.xlu1 %v3019_v6 }
 0xe67   :  { %3023 = vmax.xlane.f32.xlu1 %v3022_v56 }
 0xe6d   :  { %3072 = vrot.lane.b32.xlu0 %v5941_v34, %s6622_s2 }
 0xe77   :  { %v2280_v55 = vpop.xlane.xlu1 %2279 }
 0xe78   :  { %v2296_v51 = vsub.f32 %v6075_v35, %v2280_v55  ;;  %3074 = vrot.lane.b32.xlu1 %v5947_v27, %s6622_s2 }
 0xe79   :  { %v2283_v46 = vpop.xlane.xlu0 %2282 }
 0xe7a   :  { %v2302_v24 = vmul.f32 1.442695, %v2296_v51  ;;  %v2297_v4 = vsub.f32 %v6083_v8, %v2283_v46 }
 0xe7c   :  { %v2304_v42 = vmul.f32 1.442695, %v2297_v4  ;;  %4797 = vpow2.f32 %v2302_v24 }
 0xe7e   :  { %4799 = vpow2.f32 %v2304_v42 }
 0xe7f   :  { %v2286_v15 = vpop.xlane.xlu0 %2285 }
 0xe80   :  { %v2298_v45 = vsub.f32 %v6095_v44, %v2286_v15 }
 0xe81   :  { %v2289_v34 = vpop.xlane.xlu1 %2288 }
 0xe82   :  { %v2306_v21 = vmul.f32 1.442695, %v2298_v45  ;;  %v2299_v54 = vsub.f32 %v6103_v33, %v2289_v34 }
 0xe84   :  { %v2308_v22 = vmul.f32 1.442695, %v2299_v54  ;;  %4801 = vpow2.f32 %v2306_v21 }
 0xe86   :  { %4803 = vpow2.f32 %v2308_v22  ;;  %v6235_v35 = vpop.eup %4797 }
 0xe87   :  { %v2292_v27 = vpop.xlane.xlu0 %2291 }
 0xe88   :  { %v6237_v31 = vpop.eup %4799  ;;  %v2300_v8 = vsub.f32 %v6115_v23, %v2292_v27 }
 0xe89   :  { %v2338_v57 = vpack.c.bf16 %v6237_v31, %v6235_v35  ;;  %v2295_v26 = vpop.xlane.xlu1 %2294 }
 0xe8a   :  { %v2310_v61 = vmul.f32 1.442695, %v2300_v8  ;;  %v2301_v44 = vsub.f32 %v6123_v39, %v2295_v26 }
 0xe8b   :  { %4322 = vmatmul.mubr.msk.bf16.vlgmr.msra.gmra.mrb[84].mxu1 %vm576_vm3, %v2338_v57 }
 0xe8c   :  { %v2312_v33 = vmul.f32 1.442695, %v2301_v44  ;;  %4352 = vmatpush3.bf16.msra.mxu1 %v2585_v36  ;;  %4325 = vmatprep.mubr.msk.bf16.mxu1 %vm4916_vm1, %v4915_v16  ;;  %4805 = vpow2.f32 %v2310_v61 }
 0xe8d   :  { %4353 = vmatprep.subr.bf16.mxu1 %v4915_v16 }
 0xe8e   :  { %4807 = vpow2.f32 %v2312_v33  ;;  %v6247_v62 = vpop.eup %4801 }
 0xe8f   :  { %v2523_v23 = vpop.xlane.xlu1 %2522 }
 0xe90   :  { %v6249_v2 = vpop.eup %4803  ;;  %v2539_v59 = vsub.f32 %v6130_v40, %v2523_v23  ;;  %4354 = vmatpush3.bf16.msra.mxu1 %v6031_v32 }
 0xe91   :  { %v2526_v39 = vpop.xlane.xlu0 %2525  ;;  %4355 = vmatprep.subr.bf16.mxu1 %v4915_v16  ;;  %v2339_v38 = vpack.c.bf16 %v6249_v2, %v6247_v62 }
 0xe92   :  { %v2545_v48 = vmul.f32 1.442695, %v2539_v59  ;;  %v2540_v28 = vsub.f32 %v6133_v49, %v2526_v39 }
 0xe93   :  { %4326 = vmatmul.mubr.msk.bf16.gmra.mrb[88].mxu1 %vm576_vm3, %v2339_v38 }
 0xe94   :  { %4809 = vpow2.f32 %v2545_v48  ;;  %v2547_v63 = vmul.f32 1.442695, %v2540_v28  ;;  %4356 = vmatpush3.bf16.msra.mxu1 %v2589_v5  ;;  %4329 = vmatprep.mubr.msk.bf16.mxu1 %vm4916_vm1, %v4915_v16 }
 0xe95   :  { %4387 = vmatprep.subr.bf16.mxu1 %v4915_v16 }
 0xe96   :  { %4811 = vpow2.f32 %v2547_v63  ;;  %v6261_v32 = vpop.eup %4805 }
 0xe97   :  { %v2529_v40 = vpop.xlane.xlu1 %2528 }
 0xe98   :  { %v6263_v6 = vpop.eup %4807  ;;  %v2541_v56 = vsub.f32 %v6140_v10, %v2529_v40 }
 0xe99   :  { %v2340_v49 = vpack.c.bf16 %v6263_v6, %v6261_v32 }
 0xe9a   :  { %v2549_v36 = vmul.f32 1.442695, %v2541_v56 }
 0xe9b   :  { %v2532_v55 = vpop.xlane.xlu1 %2531  ;;  %4330 = vmatmul.mubr.msk.bf16.gmra.mrb[92].mxu1 %vm576_vm3, %v2340_v49 }
 0xe9c   :  { %4813 = vpow2.f32 %v2549_v36  ;;  %v2542_v5 = vsub.f32 %v6143_v47, %v2532_v55  ;;  %4357 = vmatprep.mubr.msk.bf16.mxu1 %vm4916_vm1, %v4915_v16 }
 0xe9e   :  { %v4810_v51 = vpop.eup %4809  ;;  %v2551_v46 = vmul.f32 1.442695, %v2542_v5 }
 0xe9f   :  { %v2535_v24 = vpop.xlane.xlu1 %2534  ;;  %v2557_v4 = vsel %vm576_vm3, %v4810_v51, 0.0 }
 0xea0   :  { %v4812_v42 = vpop.eup %4811  ;;  %4815 = vpow2.f32 %v2551_v46  ;;  %v2543_v10 = vsub.f32 %v6150_v14, %v2535_v24  ;;  %2558 = vadd.xlane.f32.xlu1 %v2557_v4 }
 0xea1   :  { %v2581_v15 = vpack.c.bf16 %v4812_v42, %v4810_v51  ;;  %v2560_v45 = vsel %vm576_vm3, %v4812_v42, 0.0 }
 0xea2   :  { %2561 = vadd.xlane.f32.xlu0 %v2560_v45  ;;  %v2553_v34 = vmul.f32 1.442695, %v2543_v10 }
 0xea3   :  { %v2538_v21 = vpop.xlane.xlu1 %2537  ;;  %4358 = vmatmul.mubr.msk.bf16.vlgmr.msra.gmra.mrb[96].mxu1 %vm576_vm3, %v2581_v15 }
 0xea4   :  { %v2544_v47 = vsub.f32 %v6153_v25, %v2538_v21  ;;  %4388 = vmatpush3.bf16.msra.mxu1 %v6223_v9  ;;  %4361 = vmatprep.mubr.msk.bf16.mxu1 %vm4916_vm1, %v4915_v16  ;;  %4817 = vpow2.f32 %v2553_v34 }
 0xea5   :  { %4389 = vmatprep.subr.bf16.mxu1 %v4915_v16 }
 0xea6   :  { %v4814_v54 = vpop.eup %4813  ;;  %v2555_v14 = vmul.f32 1.442695, %v2544_v47 }
 0xea7   :  { %v2766_v22 = vpop.xlane.xlu0 %2765  ;;  %v2563_v27 = vsel %vm576_vm3, %v4814_v54, 0.0  ;;  %v3071_v59 = vpop.permute.xlu1 %3070 }
 0xea8   :  { %4819 = vpow2.f32 %v2555_v14  ;;  %4390 = vmatpush3.bf16.msra.mxu1 %v6227_v19  ;;  %v2782_v8 = vsub.f32 %v6160_v18, %v2766_v22  ;;  %2564 = vadd.xlane.f32.xlu1 %v2563_v27 }
 0xea9   :  { %4391 = vmatprep.subr.bf16.mxu1 %v4915_v16 }
 0xeaa   :  { %v4816_v25 = vpop.eup %4815  ;;  %v2788_v9 = vmul.f32 1.442695, %v2782_v8 }
 0xeab   :  { %v2832_v57 = vpop.permute.xlu0 %2831  ;;  %v2566_v26 = vsel %vm576_vm3, %v4816_v25, 0.0  ;;  %v2582_v61 = vpack.c.bf16 %v4816_v25, %v4814_v54 }
 0xeac   :  { %4821 = vpow2.f32 %v2788_v9  ;;  %2567 = vadd.xlane.f32.xlu0 %v2566_v26  ;;  %4392 = vmatpush3.bf16.msra.mxu1 %v2832_v57 }
 0xead   :  { %4362 = vmatmul.mubr.msk.bf16.gmra.mrb[100].mxu1 %vm576_vm3, %v2582_v61  ;;  %4423 = vmatprep.subr.bf16.mxu1 %v4915_v16 }
 0xeae   :  { %4365 = vmatprep.mubr.msk.bf16.mxu1 %vm4916_vm1, %v4915_v16  ;;  %v6290_v18 = vpop.eup %4817 }
 0xeb2   :  { %v6292_v19 = vpop.eup %4819 }
 0xeb3   :  { %v2583_v44 = vpack.c.bf16 %v6292_v19, %v6290_v18 }
 0xeb5   :  { %4366 = vmatmul.mubr.msk.bf16.gmra.mrb[104].mxu1 %vm576_vm3, %v2583_v44 }
 0xeb6   :  { %v4822_v33 = vpop.eup %4821  ;;  %4393 = vmatprep.mubr.msk.bf16.mxu1 %vm4916_vm1, %v4915_v16 }
 0xeb7   :  { %v2800_v23 = vsel %vm576_vm3, %v4822_v33, 0.0 }
 0xeb8   :  { %2801 = vadd.xlane.f32.xlu1 %v2800_v23 }
 0xed8   :  { %v2769_v39 = vpop.xlane.xlu1 %2768 }
 0xed9   :  { %v2783_v38 = vsub.f32 %v6169_v0, %v2769_v39 }
 0xedb   :  { %v2790_v48 = vmul.f32 1.442695, %v2783_v38 }
 0xedc   :  { %v2772_v28 = vpop.xlane.xlu1 %2771  ;;  %v2778_v63 = vpop.xlane.xlu0 %2777 }
 0xedd   :  { %4823 = vpow2.f32 %v2790_v48  ;;  %v2784_v40 = vsub.f32 %v6172_v1, %v2772_v28  ;;  %v2786_v4 = vsub.f32 %v6175_v37, %v2778_v63 }
 0xedf   :  { %v2792_v56 = vmul.f32 1.442695, %v2784_v40 }
 0xee0   :  { %v2775_v49 = vpop.xlane.xlu1 %2774  ;;  %v3012_v36 = vpop.xlane.xlu0 %3011 }
 0xee1   :  { %4825 = vpow2.f32 %v2792_v56  ;;  %v2785_v55 = vsub.f32 %v6180_v43, %v2775_v49  ;;  %v3026_v5 = vsub.f32 %v6185_v13, %v3012_v36  ;;  %v2796_v13 = vmul.f32 1.442695, %v2786_v4 }
 0xee3   :  { %v2794_v51 = vmul.f32 1.442695, %v2785_v55  ;;  %v3033_v46 = vmul.f32 1.442695, %v3026_v5 }
 0xee4   :  { %v2781_v24 = vpop.xlane.xlu1 %2780  ;;  %v3015_v15 = vpop.xlane.xlu0 %3014 }
 0xee5   :  { %4827 = vpow2.f32 %v2794_v51  ;;  %v2787_v0 = vsub.f32 %v6192_v60, %v2781_v24  ;;  %v3027_v47 = vsub.f32 %v6195_v53, %v3015_v15  ;;  %v2317_v24 = vsel %vm576_vm3, %v6237_v31, 0.0 }
 0xee6   :  { %4829 = vpow2.f32 %v3033_v46  ;;  %v2329_v31 = vsel %vm576_vm3, %v6263_v6, 0.0 }
 0xee7   :  { %v4824_v42 = vpop.eup %4823  ;;  %v2798_v1 = vmul.f32 1.442695, %v2787_v0  ;;  %v3035_v27 = vmul.f32 1.442695, %v3027_v47 }
 0xee8   :  { %v2824_v10 = vpack.c.bf16 %v4824_v42, %v4822_v33  ;;  %v3009_v45 = vpop.xlane.xlu1 %3008  ;;  %v2803_v34 = vsel %vm576_vm3, %v4824_v42, 0.0  ;;  %v3073_v14 = vpop.permute.xlu0 %3072  ;;  %v2323_v42 = vsel %vm576_vm3, %v6249_v2, 0.0  ;;  %v2326_v2 = vsel %vm576_vm3, %v6261_v32, 0.0 }
 0xee9   :  { %v3025_v43 = vsub.f32 %v6200_v41, %v3009_v45  ;;  %2804 = vadd.xlane.f32.xlu1 %v2803_v34  ;;  %4831 = vpow2.f32 %v2798_v1  ;;  %v2320_v1 = vsel %vm576_vm3, %v6247_v62, 0.0 }
 0xeea   :  { %4394 = vmatmul.mubr.msk.bf16.vlgmr.msra.gmra.mrb[108].mxu1 %vm576_vm3, %v2824_v10  ;;  %v2314_v10 = vsel %vm576_vm3, %v6235_v35, 0.0 }
 0xeeb   :  { %v4826_v21 = vpop.eup %4825  ;;  %v3031_v60 = vmul.f32 1.442695, %v3025_v43  ;;  %4424 = vmatpush3.bf16.msra.mxu1 %v3071_v59  ;;  %4397 = vmatprep.mubr.msk.bf16.mxu1 %vm4916_vm1, %v4915_v16 }
 0xeec   :  { %v3018_v37 = vpop.xlane.xlu1 %3017  ;;  %v2806_v54 = vsel %vm576_vm3, %v4826_v21, 0.0  ;;  %4425 = vmatprep.subr.bf16.mxu1 %v4915_v16 }
 0xeed   :  { %4833 = vpow2.f32 %v3031_v60  ;;  %v3028_v41 = vsub.f32 %v6207_v12, %v3018_v37  ;;  %2807 = vadd.xlane.f32.xlu1 %v2806_v54 }
 0xeee   :  { %4835 = vpow2.f32 %v2796_v13 }
 0xeef   :  { %v4828_v22 = vpop.eup %4827  ;;  %v3037_v53 = vmul.f32 1.442695, %v3028_v41  ;;  %4426 = vmatpush3.bf16.msra.mxu1 %v3073_v14 }
 0xef0   :  { %v3021_v8 = vpop.xlane.xlu1 %3020  ;;  %v2809_v25 = vsel %vm576_vm3, %v4828_v22, 0.0  ;;  %v2825_v9 = vpack.c.bf16 %v4828_v22, %v4826_v21  ;;  %4427 = vmatprep.subr.bf16.mxu1 %v4915_v16  ;;  %v4830_v57 = vpop.eup %4829 }
 0xef1   :  { %4837 = vpow2.f32 %v3037_v53  ;;  %2810 = vadd.xlane.f32.xlu0 %v2809_v25  ;;  %v3029_v12 = vsub.f32 %v6212_v30, %v3021_v8  ;;  %v3046_v61 = vsel %vm576_vm3, %v4830_v57, 0.0  ;;  %v2572_v30 = vsel %vm576_vm3, %v6292_v19, 0.0 }
 0xef2   :  { %4398 = vmatmul.mubr.msk.bf16.gmra.mrb[112].mxu1 %vm576_vm3, %v2825_v9  ;;  %4839 = vpow2.f32 %v3035_v27 }
 0xef3   :  { %4401 = vmatprep.mubr.msk.bf16.mxu1 %vm4916_vm1, %v4915_v16  ;;  %v4832_v33 = vpop.eup %4831  ;;  %v3039_v59 = vmul.f32 1.442695, %v3029_v12 }
 0xef4   :  { %v3024_v26 = vpop.xlane.xlu1 %3023  ;;  %v2815_v49 = vsel %vm576_vm3, %v4832_v33, 0.0 }
 0xef5   :  { %v3030_v44 = vsub.f32 %v6217_v50, %v3024_v26  ;;  %3047 = vadd.xlane.f32.xlu0 %v3046_v61  ;;  %v2569_v50 = vsel %vm576_vm3, %v6290_v18, 0.0 }
 0xef7   :  { %v4834_v23 = vpop.eup %4833  ;;  %v3041_v39 = vmul.f32 1.442695, %v3030_v44 }
 0xef8   :  { %v4836_v38 = vpop.eup %4835  ;;  %v3075_v48 = vpop.permute.xlu1 %3074  ;;  %v3043_v28 = vsel %vm576_vm3, %v4834_v23, 0.0  ;;  %v3067_v55 = vpack.c.bf16 %v4830_v57, %v4834_v23 }
 0xef9   :  { %4841 = vpow2.f32 %v3041_v39  ;;  %3044 = vadd.xlane.f32.xlu1 %v3043_v28  ;;  %2573 = vadd.xlane.f32.xlu0 %v2572_v30  ;;  %v2826_v63 = vpack.c.bf16 %v4832_v33, %v4836_v38  ;;  %v2812_v51 = vsel %vm576_vm3, %v4836_v38, 0.0 }
 0xefa   :  { %4428 = vmatpush3.bf16.msra.mxu1 %v3075_v48  ;;  %4843 = vpow2.f32 %v3039_v59 }
 0xefb   :  { %v4838_v40 = vpop.eup %4837  ;;  %4402 = vmatmul.mubr.msk.bf16.gmra.mrb[116].mxu1 %vm576_vm3, %v2826_v63  ;;  %4457 = vmatprep.subr.bf16.mxu1 %v4915_v16 }
 0xefc   :  { %v3052_v56 = vsel %vm576_vm3, %v4838_v40, 0.0  ;;  %4429 = vmatprep.mubr.msk.bf16.mxu1 %vm4916_vm1, %v4915_v16  ;;  %v4840_v19 = vpop.eup %4839 }
 0xefd   :  { %2570 = vadd.xlane.f32.xlu1 %v2569_v50  ;;  %3053 = vadd.xlane.f32.xlu0 %v3052_v56  ;;  %v3049_v36 = vsel %vm576_vm3, %v4840_v19, 0.0  ;;  %v3068_v4 = vpack.c.bf16 %v4838_v40, %v4840_v19 }
 0xf01   :  { %2816 = vadd.xlane.f32.xlu0 %v2815_v49  ;;  %3050 = vadd.xlane.f32.xlu1 %v3049_v36 }
 0xf03   :  { %v4842_v5 = vpop.eup %4841  ;;  %4430 = vmatmul.mubr.msk.bf16.vlgmr.msra.gmra.mrb[120].mxu1 %vm576_vm3, %v3067_v55 }
 0xf04   :  { %v3058_v18 = vsel %vm576_vm3, %v4842_v5, 0.0  ;;  %4433 = vmatprep.mubr.msk.bf16.mxu1 %vm4916_vm1, %v4915_v16  ;;  %v4844_v46 = vpop.eup %4843 }
 0xf05   :  { %3059 = vadd.xlane.f32.xlu0 %v3058_v18  ;;  %2813 = vadd.xlane.f32.xlu1 %v2812_v51  ;;  %v3055_v0 = vsel %vm576_vm3, %v4844_v46, 0.0  ;;  %v3069_v15 = vpack.c.bf16 %v4842_v5, %v4844_v46 }
 0xf09   :  { %2318 = vadd.xlane.f32.xlu0 %v2317_v24  ;;  %3056 = vadd.xlane.f32.xlu1 %v3055_v0 }
 0xf0b   :  { %4434 = vmatmul.mubr.msk.bf16.gmra.mrb[124].mxu1 %vm576_vm3, %v3068_v4 }
 0xf0c   :  { %4437 = vmatprep.mubr.msk.bf16.mxu1 %vm4916_vm1, %v4915_v16 }
 0xf0d   :  { %2324 = vadd.xlane.f32.xlu0 %v2323_v42  ;;  %2315 = vadd.xlane.f32.xlu1 %v2314_v10 }
 0xf11   :  { %2330 = vadd.xlane.f32.xlu0 %v2329_v31  ;;  %2321 = vadd.xlane.f32.xlu1 %v2320_v1  ;;  %v4651_v31 = vld [vmem:[%s6583_s7 + $0x10] sm:$0xff]  }
 0xf12   :  { %4442 = vmatpush3.bf16.msra.mxu0 %v4651_v31 }
 0xf13   :  { %4438 = vmatmul.mubr.msk.bf16.gmra.mrb[128].mxu1 %vm576_vm3, %v3069_v15  ;;  %4443 = vmatprep.subr.bf16.mxu0 %v4915_v16 }
 0xf14   :  { %4461 = vmatprep.mubr.msk.bf16.mxu1 %vm4916_vm1, %v4915_v16 }
 0xf15   :  { %2327 = vadd.xlane.f32.xlu1 %v2326_v2 }
 0xf2d   :  { %v2559_v47 = vpop.xlane.xlu1 %2558 }
 0xf2e   :  { %4845 = vrcp.f32 %v2559_v47 }
 0xf2f   :  { %v2562_v60 = vpop.xlane.xlu0 %2561 }
 0xf30   :  { %4847 = vrcp.f32 %v2562_v60 }
 0xf35   :  { %v2565_v14 = vpop.xlane.xlu1 %2564 }
 0xf36   :  { %4849 = vrcp.f32 %v2565_v14 }
 0xf38   :  { %v4846_v53 = vpop.eup %4845 }
 0xf39   :  { %v2568_v22 = vpop.xlane.xlu0 %2567 }
 0xf3a   :  { %v4848_v9 = vpop.eup %4847  ;;  %4851 = vrcp.f32 %v2568_v22 }
 0xf40   :  { %v4850_v39 = vpop.eup %4849 }
 0xf44   :  { %v4852_v28 = vpop.eup %4851 }
 0xf45   :  { %v2802_v8 = vpop.xlane.xlu1 %2801 }
 0xf5e   :  { %v6359_v35 = vpop.f32.mrb[84].mxu1 }
 0xf5f   :  { %v4323_v45 = vpop.f32.mrb[85].mxu1 }
 0xf60   :  { %v6361_v34 = vpop.f32.mrb[86].mxu1 }
 0xf61   :  { %v4324_v6 = vpop.f32.mrb[87].mxu1 }
 0xf66   :  { %v6363_v43 = vpop.f32.mrb[88].mxu1 }
 0xf67   :  { %v4327_v62 = vpop.f32.mrb[89].mxu1 }
 0xf68   :  { %v6365_v13 = vpop.f32.mrb[90].mxu1 }
 0xf69   :  { %v4328_v21 = vpop.f32.mrb[91].mxu1 }
 0xf6e   :  { %v6367_v32 = vpop.f32.mrb[92].mxu1 }
 0xf6f   :  { %v4331_v37 = vpop.f32.mrb[93].mxu1 }
 0xf70   :  { %v6369_v54 = vpop.f32.mrb[94].mxu1 }
 0xf71   :  { %v4332_v41 = vpop.f32.mrb[95].mxu1 }
 0xf76   :  { %v2636_v27 = vpop.f32.mrb[96].mxu1  ;;  %v2805_v44 = vpop.xlane.xlu1 %2804 }
 0xf77   :  { %v4359_v25 = vpop.f32.mrb[97].mxu1  ;;  %v2659_v12 = vmul.f32 %v4846_v53, %v2636_v27  ;;  %v4652_v53 = vld [vmem:[%s6583_s7 + $0x18] sm:$0xff]   ;;  %s6625_s7 = smov 24  }
 0xf78   :  { %v2639_v57 = vpop.f32.mrb[98].mxu1  ;;  %4444 = vmatpush3.bf16.msra.mxu0 %v4652_v53 }
 0xf79   :  { %v2660_v26 = vmul.f32 %v4848_v9, %v2639_v57  ;;  %v4360_v61 = vpop.f32.mrb[99].mxu1  ;;  %4473 = vmatprep.subr.bf16.mxu0 %v4915_v16 }
 0xf7a   :  { %v2808_v38 = vpop.xlane.xlu1 %2807 }
 0xf7b   :  { %v4590_v33 = vpack.i.bf16 %v2660_v26, %v2659_v12 }
 0xf7d   :  { %4591 = vrot.lane.b32.xlu1 %v4590_v33, %s6623_s5 }
 0xf7e   :  { %v2811_v23 = vpop.xlane.xlu0 %2810 }
 0xf80   :  { %v2644_v59 = vpop.f32.mrb[100].mxu1 }
 0xf81   :  { %v4363_v48 = vpop.f32.mrb[101].mxu1  ;;  %v6372_v40 = vmul.f32 %v4850_v39, %v2644_v59 }
 0xf82   :  { %v3048_v30 = vpop.xlane.xlu0 %3047  ;;  %v2647_v63 = vpop.f32.mrb[102].mxu1 }
 0xf83   :  { %v6374_v50 = vmul.f32 %v4852_v28, %v2647_v63  ;;  %v4364_v56 = vpop.f32.mrb[103].mxu1 }
 0xf85   :  { %v4605_v19 = vpack.i.bf16 %v6374_v50, %v6372_v40 }
 0xf86   :  { %v3045_v49 = vpop.xlane.xlu1 %3044  ;;  %v2574_v36 = vpop.xlane.xlu0 %2573 }
 0xf87   :  { %4853 = vrcp.f32 %v2574_v36 }
 0xf88   :  { %v2652_v55 = vpop.f32.mrb[104].mxu1 }
 0xf89   :  { %v4367_v5 = vpop.f32.mrb[105].mxu1 }
 0xf8a   :  { %v2571_v18 = vpop.xlane.xlu1 %2570  ;;  %v2655_v51 = vpop.f32.mrb[106].mxu1 }
 0xf8b   :  { %4855 = vrcp.f32 %v2571_v18  ;;  %v4368_v46 = vpop.f32.mrb[107].mxu1  ;;  %v3054_v1 = vpop.xlane.xlu0 %3053 }
 0xf8c   :  { %4857 = vrcp.f32 %v2802_v8 }
 0xf8d   :  { %4859 = vrcp.f32 %v2805_v44 }
 0xf8e   :  { %4861 = vrcp.f32 %v2808_v38  ;;  %v3051_v15 = vpop.xlane.xlu1 %3050 }
 0xf8f   :  { %4863 = vrcp.f32 %v2811_v23  ;;  %v2817_v41 = vpop.xlane.xlu0 %2816 }
 0xf90   :  { %4865 = vrcp.f32 %v2817_v41 }
 0xf91   :  { %v4854_v24 = vpop.eup %4853 }
 0xf92   :  { %v2664_v42 = vmul.f32 %v4854_v24, %v2655_v51  ;;  %v2814_v22 = vpop.xlane.xlu1 %2813 }
 0xf93   :  { %4867 = vrcp.f32 %v2814_v22  ;;  %v3060_v24 = vpop.xlane.xlu0 %3059 }
 0xf94   :  { %4869 = vrcp.f32 %v3048_v30 }
 0xf95   :  { %v4856_v0 = vpop.eup %4855  ;;  %4871 = vrcp.f32 %v3045_v49 }
 0xf96   :  { %v2663_v4 = vmul.f32 %v4856_v0, %v2652_v55  ;;  %v4858_v45 = vpop.eup %4857  ;;  %4873 = vrcp.f32 %v3054_v1  ;;  %v3057_v0 = vpop.xlane.xlu1 %3056 }
 0xf97   :  { %v4860_v62 = vpop.eup %4859  ;;  %4875 = vrcp.f32 %v3051_v15  ;;  %v2319_v40 = vpop.xlane.xlu0 %2318 }
 0xf98   :  { %v4620_v10 = vpack.i.bf16 %v2664_v42, %v2663_v4  ;;  %v4862_v8 = vpop.eup %4861  ;;  %4877 = vrcp.f32 %v3060_v24 }
 0xf99   :  { %v4864_v9 = vpop.eup %4863  ;;  %4879 = vrcp.f32 %v3057_v0 }
 0xf9a   :  { %v4866_v23 = vpop.eup %4865  ;;  %4881 = vrcp.f32 %v2319_v40 }
 0xf9d   :  { %v4868_v39 = vpop.eup %4867 }
 0xf9e   :  { %v4870_v55 = vpop.eup %4869 }
 0xf9f   :  { %v4872_v18 = vpop.eup %4871 }
 0xfbd   :  { %v2879_v2 = vpop.f32.mrb[108].mxu1 }
 0xfbe   :  { %v4395_v6 = vpop.f32.mrb[109].mxu1  ;;  %v2902_v47 = vmul.f32 %v4858_v45, %v2879_v2 }
 0xfbf   :  { %v2882_v21 = vpop.f32.mrb[110].mxu1 }
 0xfc0   :  { %v2903_v60 = vmul.f32 %v4860_v62, %v2882_v21  ;;  %v4396_v37 = vpop.f32.mrb[111].mxu1 }
 0xfc2   :  { %v4595_v14 = vpack.i.bf16 %v2903_v60, %v2902_v47 }
 0xfc4   :  { %4596 = vrot.lane.b32.xlu0 %v4595_v14, %s6624_s10 }
 0xfc5   :  { %v2887_v27 = vpop.f32.mrb[112].mxu1 }
 0xfc6   :  { %v4399_v25 = vpop.f32.mrb[113].mxu1  ;;  %v2904_v12 = vmul.f32 %v4862_v8, %v2887_v27  ;;  %v2316_v8 = vpop.xlane.xlu1 %2315 }
 0xfc7   :  { %v2890_v57 = vpop.f32.mrb[114].mxu1  ;;  %4883 = vrcp.f32 %v2316_v8 }
 0xfc8   :  { %v2905_v26 = vmul.f32 %v4864_v9, %v2890_v57  ;;  %v4400_v61 = vpop.f32.mrb[115].mxu1 }
 0xfca   :  { %v4610_v44 = vpack.i.bf16 %v2905_v26, %v2904_v12  ;;  %v2322_v50 = vpop.xlane.xlu1 %2321 }
 0xfcc   :  { %4611 = vrot.lane.b32.xlu0 %v4610_v44, %s6624_s10 }
 0xfce   :  { %v2895_v33 = vpop.f32.mrb[116].mxu1  ;;  %v2328_v25 = vpop.xlane.xlu1 %2327 }
 0xfcf   :  { %v4403_v59 = vpop.f32.mrb[117].mxu1  ;;  %v2906_v48 = vmul.f32 %v4868_v39, %v2895_v33 }
 0xfd0   :  { %v2898_v38 = vpop.f32.mrb[118].mxu1  ;;  %4621 = vrot.lane.b32.xlu0 %v4620_v10, %s6623_s5  ;;  %v4874_v10 = vpop.eup %4873 }
 0xfd1   :  { %v2907_v28 = vmul.f32 %v4866_v23, %v2898_v38  ;;  %v4404_v63 = vpop.f32.mrb[119].mxu1  ;;  %v4876_v1 = vpop.eup %4875 }
 0xfd2   :  { %v4878_v47 = vpop.eup %4877 }
 0xfd3   :  { %v4625_v56 = vpack.i.bf16 %v2907_v28, %v2906_v48  ;;  %v4880_v37 = vpop.eup %4879 }
 0xfd4   :  { %v4882_v12 = vpop.eup %4881 }
 0xfd5   :  { %v4884_v61 = vpop.eup %4883  ;;  %v2417_v38 = vmul.f32 %v4882_v12, %v6361_v34 }
 0xfd6   :  { %v3122_v36 = vpop.f32.mrb[120].mxu1  ;;  %v2416_v39 = vmul.f32 %v4884_v61, %v6359_v35 }
 0xfd7   :  { %v4431_v5 = vpop.f32.mrb[121].mxu1  ;;  %v3145_v30 = vmul.f32 %v4872_v18, %v3122_v36 }
 0xfd8   :  { %v3125_v51 = vpop.f32.mrb[122].mxu1 }
 0xfd9   :  { %v3146_v49 = vmul.f32 %v4870_v55, %v3125_v51  ;;  %v4432_v46 = vpop.f32.mrb[123].mxu1 }
 0xfdb   :  { %v4600_v4 = vpack.i.bf16 %v3146_v49, %v3145_v30 }
 0xfdd   :  { %4601 = vrot.lane.b32.xlu1 %v4600_v4, %s6625_s7 }
 0xfde   :  { %v3130_v42 = vpop.f32.mrb[124].mxu1 }
 0xfdf   :  { %v4435_v31 = vpop.f32.mrb[125].mxu1  ;;  %v3147_v2 = vmul.f32 %v4876_v1, %v3130_v42 }
 0xfe0   :  { %v3133_v15 = vpop.f32.mrb[126].mxu1 }
 0xfe1   :  { %v3148_v45 = vmul.f32 %v4874_v10, %v3133_v15  ;;  %4606 = vrot.lane.b32.xlu1 %v4605_v19, %s6623_s5  ;;  %v4436_v6 = vpop.f32.mrb[127].mxu1  ;;  %v2325_v19 = vpop.xlane.xlu0 %2324 }
 0xfe2   :  { %4885 = vrcp.f32 %v2325_v19 }
 0xfe3   :  { %v4615_v62 = vpack.i.bf16 %v3148_v45, %v3147_v2  ;;  %4887 = vrcp.f32 %v2322_v50 }
 0xfe5   :  { %4616 = vrot.lane.b32.xlu1 %v4615_v62, %s6625_s7  ;;  %v2331_v9 = vpop.xlane.xlu0 %2330 }
 0xfe6   :  { %v3138_v21 = vpop.f32.mrb[128].mxu1  ;;  %4889 = vrcp.f32 %v2331_v9 }
 0xfe7   :  { %v4439_v60 = vpop.f32.mrb[129].mxu1  ;;  %v3149_v14 = vmul.f32 %v4880_v37, %v3138_v21  ;;  %4891 = vrcp.f32 %v2328_v25 }
 0xfe8   :  { %v3141_v41 = vpop.f32.mrb[130].mxu1 }
 0xfe9   :  { %v3150_v22 = vmul.f32 %v4878_v47, %v3141_v41  ;;  %4626 = vrot.lane.b32.xlu1 %v4625_v56, %s6624_s10  ;;  %v4440_v27 = vpop.f32.mrb[131].mxu1 }
 0xfeb   :  { %v4630_v53 = vpack.i.bf16 %v3150_v22, %v3149_v14 }
 0xfec   :  { %v4886_v28 = vpop.eup %4885 }
 0xfed   :  { %4631 = vrot.lane.b32.xlu0 %v4630_v53, %s6625_s7  ;;  %v4888_v5 = vpop.eup %4887  ;;  %v2419_v0 = vmul.f32 %v4886_v28, %v6365_v13 }
 0xfee   :  { %v2418_v24 = vmul.f32 %v4888_v5, %v6363_v43 }
 0xfef   :  { %v4592_v57 = vpop.permute.xlu1 %4591 }
 0xff0   :  { %v4594_v44 = vunpack.i.h.bf16 %v4592_v57  ;;  %v4593_v33 = vunpack.i.l.bf16 %v4592_v57  ;;  %v4890_v62 = vpop.eup %4889 }
 0xff1   :  { %v4892_v37 = vpop.eup %4891  ;;  %v2421_v50 = vmul.f32 %v4890_v62, %v6369_v54  ;;  %v3859_v54 = vld [vmem:[%s6584_s8 + $0x1] ss:$0 sm:$0xff] }
 0xff2   :  { %v3224_v63 = vsel %vm488_vm2, %v2417_v38, %v4594_v44  ;;  %v3223_v56 = vsel %vm488_vm2, %v2416_v39, %v4593_v33  ;;  %v2420_v40 = vmul.f32 %v4892_v37, %v6367_v32 }
0x1036   :  { %v4597_v26 = vpop.permute.xlu0 %4596 }
0x1037   :  { %v4599_v23 = vunpack.i.h.bf16 %v4597_v26  ;;  %v4598_v59 = vunpack.i.l.bf16 %v4597_v26 }
0x1039   :  { %v3230_v18 = vsel %vm1528_vm4, %v3224_v63, %v4599_v23  ;;  %v3229_v51 = vsel %vm1528_vm4, %v3223_v56, %v4598_v59 }
0x103e   :  { %v4612_v34 = vpop.permute.xlu0 %4611 }
0x103f   :  { %v4614_v1 = vunpack.i.h.bf16 %v4612_v34  ;;  %v4613_v15 = vunpack.i.l.bf16 %v4612_v34 }
0x1042   :  { %v4622_v43 = vpop.permute.xlu0 %4621 }
0x1043   :  { %v4624_v22 = vunpack.i.h.bf16 %v4622_v43  ;;  %v4623_v27 = vunpack.i.l.bf16 %v4622_v43 }
0x1045   :  { %v3228_v25 = vsel %vm488_vm2, %v2421_v50, %v4624_v22  ;;  %v3227_v9 = vsel %vm488_vm2, %v2420_v40, %v4623_v27 }
0x104f   :  { %v4602_v48 = vpop.permute.xlu1 %4601 }
0x1050   :  { %v4604_v36 = vunpack.i.h.bf16 %v4602_v48  ;;  %v4603_v55 = vunpack.i.l.bf16 %v4602_v48 }
0x1052   :  { %v3236_v30 = vsel %vm1535_vm5, %v3230_v18, %v4604_v36  ;;  %v3235_v35 = vsel %vm1535_vm5, %v3229_v51, %v4603_v55 }
0x1053   :  { %v3241_v49 = vpack.c.bf16 %v3236_v30, %v3235_v35  ;;  %v4607_v46 = vpop.permute.xlu1 %4606 }
0x1054   :  { %v4609_v4 = vunpack.i.h.bf16 %v4607_v46  ;;  %v4608_v42 = vunpack.i.l.bf16 %v4607_v46 }
0x1055   :  { %4446 = vmatmul.mubr.msk.bf16.vlgmr.msra.gmra.mrb[120].mxu0 %vm280_vm0, %v3241_v49 }
0x1056   :  { %v3226_v10 = vsel %vm488_vm2, %v2419_v0, %v4609_v4  ;;  %v3225_v31 = vsel %vm488_vm2, %v2418_v24, %v4608_v42  ;;  %4449 = vmatprep.mubr.msk.bf16.mxu0 %vm4916_vm1, %v4915_v16 }
0x1057   :  { %v4617_v2 = vpop.permute.xlu1 %4616  ;;  %v3231_v13 = vsel %vm1528_vm4, %v3225_v31, %v4613_v15  ;;  %v3232_v21 = vsel %vm1528_vm4, %v3226_v10, %v4614_v1 }
0x1058   :  { %v4619_v45 = vunpack.i.h.bf16 %v4617_v2  ;;  %v4618_v6 = vunpack.i.l.bf16 %v4617_v2 }
0x105a   :  { %v3238_v47 = vsel %vm1535_vm5, %v3232_v21, %v4619_v45  ;;  %v3237_v60 = vsel %vm1535_vm5, %v3231_v13, %v4618_v6 }
0x105b   :  { %v3242_v41 = vpack.c.bf16 %v3238_v47, %v3237_v60  ;;  %v4627_v14 = vpop.permute.xlu1 %4626 }
0x105c   :  { %v4629_v53 = vunpack.i.h.bf16 %v4627_v14  ;;  %v4628_v8 = vunpack.i.l.bf16 %v4627_v14 }
0x105d   :  { %4450 = vmatmul.mubr.msk.bf16.gmra.mrb[124].mxu0 %vm280_vm0, %v3242_v41 }
0x105e   :  { %4453 = vmatprep.mubr.msk.bf16.mxu0 %vm4916_vm1, %v4915_v16  ;;  %v3234_v26 = vsel %vm1528_vm4, %v3228_v25, %v4629_v53  ;;  %v3233_v61 = vsel %vm1528_vm4, %v3227_v9, %v4628_v8 }
0x105f   :  { %v4632_v19 = vpop.permute.xlu0 %4631 }
0x1060   :  { %v4634_v57 = vunpack.i.h.bf16 %v4632_v19  ;;  %v4633_v12 = vunpack.i.l.bf16 %v4632_v19 }
0x1062   :  { %v3240_v44 = vsel %vm1535_vm5, %v3234_v26, %v4634_v57  ;;  %v3239_v32 = vsel %vm1535_vm5, %v3233_v61, %v4633_v12 }
0x1063   :  { %v3243_v33 = vpack.c.bf16 %v3240_v44, %v3239_v32 }
0x1065   :  { %4454 = vmatmul.mubr.msk.bf16.gmra.mrb[128].mxu0 %vm280_vm0, %v3243_v33 }
0x1066   :  { %4489 = vmatprep.mubr.msk.bf16.mxu0 %vm4916_vm1, %v4915_v16 }
0x1128   :  { %v3312_v23 = vpop.f32.mrb[120].mxu0 }
0x1129   :  { %v3313_v59 = vadd.f32 %v3859_v54, %v3312_v23  ;;  %v4447_v39 = vpop.f32.mrb[121].mxu0  ;;  %v4654_v23 = vld [vmem:[%s6585_s13 + $0x18] sm:$0xff]  }
0x112a   :  { %v3315_v38 = vpop.f32.mrb[122].mxu0  ;;  %v4656_v39 = vld [vmem:[%s6586_s15 + $0x48] sm:$0xff]  }
0x112b   :  { %v3335_v48 = vadd.f32 %v3313_v59, %v5860_v3  ;;  %v3316_v28 = vadd.f32 %v3859_v54, %v3315_v38  ;;  %v4448_v63 = vpop.f32.mrb[123].mxu0  ;;  %v4655_v59 = vld [vmem:[%s6586_s15 + $0x40] sm:$0xff]   ;;  %v4657_v38 = vld [vmem:[%s6586_s15 + $0x50] sm:$0xff]  }
0x112c   :  { %4474 = vmatpush3.bf16.msra.mxu0 %v4655_v59  ;;  %v4660_v63 = vld [vmem:[%s6586_s15 + $0x68] sm:$0xff]  }
0x112d   :  { %v3336_v56 = vadd.f32 %v3316_v28, %v5863_v29  ;;  %v3345_v36 = vsel %vm280_vm0, %v3335_v48, 0.0  ;;  %4475 = vmatprep.subr.bf16.mxu0 %v4915_v16  ;;  %v4659_v28 = vld [vmem:[%s6586_s15 + $0x60] sm:$0xff]  }
0x112e   :  { %3346 = vadd.xlane.f32.xlu1 %v3345_v36 }
0x112f   :  { %v3348_v55 = vsel %vm280_vm0, %v3336_v56, 0.0 }
0x1130   :  { %v3320_v5 = vpop.f32.mrb[124].mxu0  ;;  %3349 = vadd.xlane.f32.xlu0 %v3348_v55  ;;  %4476 = vmatpush3.bf16.msra.mxu0 %v4656_v39 }
0x1131   :  { %v3321_v18 = vadd.f32 %v3859_v54, %v3320_v5  ;;  %v4451_v51 = vpop.f32.mrb[125].mxu0  ;;  %4477 = vmatprep.subr.bf16.mxu0 %v4915_v16 }
0x1132   :  { %v3323_v30 = vpop.f32.mrb[126].mxu0 }
0x1133   :  { %v6438_v35 = vadd.f32 %v3321_v18, %v5870_v17  ;;  %v3324_v34 = vadd.f32 %v3859_v54, %v3323_v30  ;;  %v4452_v49 = vpop.f32.mrb[127].mxu0 }
0x1134   :  { %4478 = vmatpush3.bf16.msra.mxu0 %v4657_v38 }
0x1135   :  { %v3338_v3 = vadd.f32 %v3324_v34, %v5873_v20  ;;  %v3351_v29 = vsel %vm280_vm0, %v6438_v35, 0.0  ;;  %4479 = vmatprep.subr.bf16.mxu0 %v4915_v16 }
0x1136   :  { %3352 = vadd.xlane.f32.xlu0 %v3351_v29 }
0x1137   :  { %v3354_v46 = vsel %vm280_vm0, %v3338_v3, 0.0 }
0x1138   :  { %3355 = vadd.xlane.f32.xlu1 %v3354_v46  ;;  %v3328_v24 = vpop.f32.mrb[128].mxu0 }
0x1139   :  { %v3329_v0 = vadd.f32 %v3859_v54, %v3328_v24  ;;  %v4455_v4 = vpop.f32.mrb[129].mxu0 }
0x113a   :  { %v3331_v42 = vpop.f32.mrb[130].mxu0 }
0x113b   :  { %v3339_v10 = vadd.f32 %v3329_v0, %v5880_v52  ;;  %v3332_v31 = vadd.f32 %v3859_v54, %v3331_v42  ;;  %v4456_v17 = vpop.f32.mrb[131].mxu0  ;;  %v4653_v54 = vld [vmem:[%s6585_s13 + $0x10] sm:$0xff]   ;;  %v3867_v0 = vld [vmem:[%s6587_s11 + $0x1] ss:$0 sm:$0xff] }
0x113c   :  { %4458 = vmatpush3.bf16.msra.mxu1 %v4653_v54 }
0x113d   :  { %v6446_v1 = vadd.f32 %v3332_v31, %v5883_v58  ;;  %v3357_v20 = vsel %vm280_vm0, %v3339_v10, 0.0  ;;  %4459 = vmatprep.subr.bf16.mxu1 %v4915_v16 }
0x113e   :  { %3358 = vadd.xlane.f32.xlu0 %v3357_v20 }
0x113f   :  { %v3360_v15 = vsel %vm280_vm0, %v6446_v1, 0.0 }
0x1140   :  { %3361 = vadd.xlane.f32.xlu1 %v3360_v15  ;;  %4460 = vmatpush3.bf16.msra.mxu1 %v4654_v23 }
0x1141   :  { %4501 = vmatprep.subr.bf16.mxu1 %v4915_v16 }
0x11bb   :  { %v3347_v2 = vpop.xlane.xlu1 %3346 }
0x11bc   :  { %v3363_v45 = vmul.f32 0.03125, %v3347_v2  ;;  %v3868_v2 = vld [vmem:[%s6588_s12 + $0x1] ss:$0 sm:$0xff] }
0x11bd   :  { %v3350_v6 = vpop.xlane.xlu0 %3349 }
0x11be   :  { %v6451_v62 = vsub.f32 %v3335_v48, %v3363_v45  ;;  %v3364_v43 = vmul.f32 0.03125, %v3350_v6  ;;  %v4658_v48 = vld [vmem:[%s6586_s15 + $0x58] sm:$0xff]  }
0x11bf   :  { %4480 = vmatpush3.bf16.msra.mxu0 %v4658_v48 }
0x11c0   :  { %v6453_v13 = vsub.f32 %v3336_v56, %v3364_v43  ;;  %v3375_v52 = vmul.f32 %v6451_v62, %v6451_v62  ;;  %4481 = vmatprep.subr.bf16.mxu0 %v4915_v16 }
0x11c2   :  { %v3381_v58 = vsel %vm280_vm0, %v3375_v52, 0.0  ;;  %v3376_v21 = vmul.f32 %v6453_v13, %v6453_v13 }
0x11c3   :  { %v3353_v47 = vpop.xlane.xlu0 %3352  ;;  %3382 = vadd.xlane.f32.xlu0 %v3381_v58  ;;  %4482 = vmatpush3.bf16.msra.mxu0 %v4659_v28 }
0x11c4   :  { %v3365_v60 = vmul.f32 0.03125, %v3353_v47  ;;  %v3384_v37 = vsel %vm280_vm0, %v3376_v21, 0.0  ;;  %4483 = vmatprep.subr.bf16.mxu0 %v4915_v16 }
0x11c5   :  { %v3356_v41 = vpop.xlane.xlu1 %3355  ;;  %3385 = vadd.xlane.f32.xlu1 %v3384_v37 }
0x11c6   :  { %v6462_v14 = vsub.f32 %v6438_v35, %v3365_v60  ;;  %v3366_v22 = vmul.f32 0.03125, %v3356_v41 }
0x11c7   :  { %4484 = vmatpush3.bf16.msra.mxu0 %v4660_v63 }
0x11c8   :  { %v6464_v27 = vsub.f32 %v3338_v3, %v3366_v22  ;;  %v3377_v53 = vmul.f32 %v6462_v14, %v6462_v14  ;;  %4485 = vmatprep.subr.bf16.mxu0 %v4915_v16 }
0x11ca   :  { %v3387_v8 = vsel %vm280_vm0, %v3377_v53, 0.0  ;;  %v3378_v40 = vmul.f32 %v6464_v27, %v6464_v27 }
0x11cb   :  { %3388 = vadd.xlane.f32.xlu0 %v3387_v8  ;;  %v3359_v50 = vpop.xlane.xlu0 %3358 }
0x11cc   :  { %v3367_v19 = vmul.f32 0.03125, %v3359_v50  ;;  %v3390_v25 = vsel %vm280_vm0, %v3378_v40, 0.0 }
0x11cd   :  { %3391 = vadd.xlane.f32.xlu1 %v3390_v25  ;;  %v3362_v9 = vpop.xlane.xlu1 %3361 }
0x11ce   :  { %v6472_v57 = vsub.f32 %v3339_v10, %v3367_v19  ;;  %v3368_v12 = vmul.f32 0.03125, %v3362_v9 }
0x11d0   :  { %v6475_v26 = vsub.f32 %v6446_v1, %v3368_v12  ;;  %v3379_v61 = vmul.f32 %v6472_v57, %v6472_v57 }
0x11d2   :  { %v3393_v44 = vsel %vm280_vm0, %v3379_v61, 0.0  ;;  %v3380_v32 = vmul.f32 %v6475_v26, %v6475_v26 }
0x11d3   :  { %3394 = vadd.xlane.f32.xlu0 %v3393_v44 }
0x11d4   :  { %v3396_v33 = vsel %vm280_vm0, %v3380_v32, 0.0  ;;  %v3874_v32 = vld [vmem:[%s6589_s14 + $0x1] ss:$0 sm:$0xff] }
0x11d5   :  { %3397 = vadd.xlane.f32.xlu1 %v3396_v33 }
0x1250   :  { %v3383_v56 = vpop.xlane.xlu0 %3382 }
0x1251   :  { %v3399_v36 = vmul.f32 0.03125, %v3383_v56 }
0x1252   :  { %v3386_v55 = vpop.xlane.xlu1 %3385 }
0x1253   :  { %v3405_v5 = vadd.f32 1e-05, %v3399_v36  ;;  %v3400_v18 = vmul.f32 0.03125, %v3386_v55 }
0x1255   :  { %4893 = vrsqrt.f32 %v3405_v5  ;;  %v3406_v51 = vadd.f32 1e-05, %v3400_v18 }
0x1257   :  { %4895 = vrsqrt.f32 %v3406_v51 }
0x1258   :  { %v3389_v30 = vpop.xlane.xlu0 %3388 }
0x1259   :  { %v3401_v34 = vmul.f32 0.03125, %v3389_v30 }
0x125a   :  { %v3392_v49 = vpop.xlane.xlu1 %3391 }
0x125b   :  { %v3407_v3 = vadd.f32 1e-05, %v3401_v34  ;;  %v3402_v29 = vmul.f32 0.03125, %v3392_v49 }
0x125d   :  { %4897 = vrsqrt.f32 %v3407_v3  ;;  %v3408_v46 = vadd.f32 1e-05, %v3402_v29 }
0x125f   :  { %v4894_v24 = vpop.eup %4893  ;;  %4899 = vrsqrt.f32 %v3408_v46 }
0x1260   :  { %v3417_v4 = vmul.f32 %v4894_v24, %v6451_v62  ;;  %v3395_v42 = vpop.xlane.xlu0 %3394 }
0x1261   :  { %v4896_v10 = vpop.eup %4895  ;;  %v3403_v31 = vmul.f32 0.03125, %v3395_v42 }
0x1262   :  { %v3429_v17 = vmul.f32 %v3867_v0, %v3417_v4  ;;  %v3418_v20 = vmul.f32 %v4896_v10, %v6453_v13  ;;  %v3398_v15 = vpop.xlane.xlu1 %3397 }
0x1263   :  { %v3409_v45 = vadd.f32 1e-05, %v3403_v31  ;;  %v3404_v6 = vmul.f32 0.03125, %v3398_v15 }
0x1264   :  { %v3430_v43 = vmul.f32 %v3867_v0, %v3418_v20  ;;  %v3441_v58 = vadd.f32 %v3868_v2, %v3429_v17  ;;  %v4663_v17 = vld [vmem:[%s6591_s17] sm:$0xff]   ;;  %v4664_v20 = vld [vmem:[%s6591_s17 + $0x8] sm:$0xff]  }
0x1265   :  { %4901 = vrsqrt.f32 %v3409_v45  ;;  %v3410_v52 = vadd.f32 1e-05, %v3404_v6 }
0x1266   :  { %v3442_v21 = vadd.f32 %v3868_v2, %v3430_v43 }
0x1267   :  { %v4898_v47 = vpop.eup %4897  ;;  %4903 = vrsqrt.f32 %v3410_v52 }
0x1268   :  { %v3419_v62 = vmul.f32 %v4898_v47, %v6462_v14  ;;  %v3447_v60 = vpack.c.bf16 %v3442_v21, %v3441_v58  ;;  %v3897_v47 = vld [vmem:[%s6590_s16 + $0x1] ss:$0 sm:$0xff] }
0x1269   :  { %v4900_v37 = vpop.eup %4899 }
0x126a   :  { %v3420_v13 = vmul.f32 %v4900_v37, %v6464_v27  ;;  %4462 = vmatmul.mubr.msk.bf16.vlgmr.msra.gmra.mrb[132].mxu1 %vm280_vm0, %v3447_v60  ;;  %v3431_v41 = vmul.f32 %v3867_v0, %v3419_v62 }
0x126b   :  { %4465 = vmatprep.mubr.msk.bf16.mxu1 %vm4916_vm1, %v4915_v16  ;;  %4502 = vmatpush3.bf16.msra.mxu1 %v4663_v17 }
0x126c   :  { %v3432_v22 = vmul.f32 %v3867_v0, %v3420_v13  ;;  %v3443_v53 = vadd.f32 %v3868_v2, %v3431_v41  ;;  %4503 = vmatprep.subr.bf16.mxu1 %v4915_v16 }
0x126e   :  { %v3444_v8 = vadd.f32 %v3868_v2, %v3432_v22 }
0x126f   :  { %v4902_v40 = vpop.eup %4901  ;;  %4504 = vmatpush3.bf16.msra.mxu1 %v4664_v20 }
0x1270   :  { %v3421_v50 = vmul.f32 %v4902_v40, %v6472_v57  ;;  %v3448_v19 = vpack.c.bf16 %v3444_v8, %v3443_v53  ;;  %v4661_v57 = vld [vmem:[%s6586_s15 + $0x70] sm:$0xff]   ;;  %v3906_v40 = vld [vmem:[%s6592_s18] ss:$0 sm:$0xff] }
0x1271   :  { %v4904_v25 = vpop.eup %4903  ;;  %4486 = vmatpush3.bf16.msra.mxu0 %v4661_v57 }
0x1272   :  { %v3422_v14 = vmul.f32 %v4904_v25, %v6475_v26  ;;  %4466 = vmatmul.mubr.msk.bf16.gmra.mrb[136].mxu1 %vm280_vm0, %v3448_v19  ;;  %v3433_v9 = vmul.f32 %v3867_v0, %v3421_v50  ;;  %4487 = vmatprep.subr.bf16.mxu0 %v4915_v16  ;;  %v4662_v26 = vld [vmem:[%s6586_s15 + $0x78] sm:$0xff]  }
0x1273   :  { %4469 = vmatprep.mubr.msk.bf16.mxu1 %vm4916_vm1, %v4915_v16 }
0x1274   :  { %v3434_v27 = vmul.f32 %v3867_v0, %v3422_v14  ;;  %v3445_v12 = vadd.f32 %v3868_v2, %v3433_v9 }
0x1275   :  { %4488 = vmatpush3.bf16.msra.mxu0 %v4662_v26 }
0x1276   :  { %v3446_v61 = vadd.f32 %v3868_v2, %v3434_v27 }
0x1278   :  { %v3449_v44 = vpack.c.bf16 %v3446_v61, %v3445_v12 }
0x127a   :  { %4470 = vmatmul.mubr.msk.bf16.gmra.mrb[140].mxu1 %vm280_vm0, %v3449_v44 }
0x127b   :  { %4505 = vmatprep.mubr.msk.bf16.mxu1 %vm4916_vm1, %v4915_v16 }
0x133d   :  { %v3518_v33 = vpop.f32.mrb[132].mxu1 }
0x133e   :  { %v3519_v54 = vadd.f32 %v3874_v32, %v3518_v33  ;;  %v4463_v23 = vpop.f32.mrb[133].mxu1 }
0x133f   :  { %v3521_v59 = vpop.f32.mrb[134].mxu1 }
0x1340   :  { %v3522_v39 = vadd.f32 %v3874_v32, %v3521_v59  ;;  %v4464_v38 = vpop.f32.mrb[135].mxu1  ;;  %v3541_v48 = vmax.f32 %v3519_v54, 0.0 }
0x1342   :  { %v3542_v28 = vmax.f32 %v3522_v39, 0.0 }
0x1344   :  { %v3547_v63 = vpack.c.bf16 %v3542_v28, %v3541_v48 }
0x1345   :  { %v3526_v56 = vpop.f32.mrb[136].mxu1 }
0x1346   :  { %v3527_v36 = vadd.f32 %v3874_v32, %v3526_v56  ;;  %v4467_v55 = vpop.f32.mrb[137].mxu1  ;;  %4490 = vmatmul.mubr.bf16.vlgmr.msra.gmra.mrb[132].mxu0 %v3547_v63 }
0x1347   :  { %v3529_v5 = vpop.f32.mrb[138].mxu1  ;;  %4493 = vmatprep.mubr.msk.bf16.mxu0 %vm4916_vm1, %v4915_v16 }
0x1348   :  { %v3530_v18 = vadd.f32 %v3874_v32, %v3529_v5  ;;  %v4468_v51 = vpop.f32.mrb[139].mxu1  ;;  %v3543_v30 = vmax.f32 %v3527_v36, 0.0 }
0x134a   :  { %v3544_v34 = vmax.f32 %v3530_v18, 0.0 }
0x134c   :  { %v3548_v49 = vpack.c.bf16 %v3544_v34, %v3543_v30 }
0x134d   :  { %v3534_v3 = vpop.f32.mrb[140].mxu1 }
0x134e   :  { %v3535_v29 = vadd.f32 %v3874_v32, %v3534_v3  ;;  %v4471_v46 = vpop.f32.mrb[141].mxu1  ;;  %4494 = vmatmul.mubr.bf16.gmra.mrb[136].mxu0 %v3548_v49 }
0x134f   :  { %v3537_v24 = vpop.f32.mrb[142].mxu1  ;;  %4497 = vmatprep.mubr.msk.bf16.mxu0 %vm4916_vm1, %v4915_v16 }
0x1350   :  { %v3538_v0 = vadd.f32 %v3874_v32, %v3537_v24  ;;  %v4472_v4 = vpop.f32.mrb[143].mxu1  ;;  %v3545_v42 = vmax.f32 %v3535_v29, 0.0 }
0x1352   :  { %v3546_v10 = vmax.f32 %v3538_v0, 0.0 }
0x1354   :  { %v3549_v31 = vpack.c.bf16 %v3546_v10, %v3545_v42 }
0x1356   :  { %4498 = vmatmul.mubr.bf16.gmra.mrb[140].mxu0 %v3549_v31 }
0x1419   :  { %v3657_v15 = vpop.f32.mrb[132].mxu0 }
0x141a   :  { %v4491_v2 = vpop.f32.mrb[133].mxu0 }
0x141b   :  { %v3659_v45 = vpop.f32.mrb[134].mxu0 }
0x141c   :  { %v4492_v6 = vpop.f32.mrb[135].mxu0 }
0x1421   :  { %v3663_v43 = vpop.f32.mrb[136].mxu0 }
0x1422   :  { %v4495_v52 = vpop.f32.mrb[137].mxu0  ;;  %v3664_v60 = vadd.f32 %v3897_v47, %v3663_v43 }
0x1423   :  { %v3666_v58 = vpop.f32.mrb[138].mxu0 }
0x1424   :  { %v4496_v21 = vpop.f32.mrb[139].mxu0  ;;  %v3676_v22 = vadd.f32 %v3664_v60, %v6438_v35 }
0x1429   :  { %v3670_v62 = vpop.f32.mrb[140].mxu0 }
0x142a   :  { %v4499_v16 = vpop.f32.mrb[141].mxu0 }
0x142b   :  { %v3672_v37 = vpop.f32.mrb[142].mxu0 }
0x142c   :  { %v3673_v13 = vadd.f32 %v3897_v47, %v3672_v37  ;;  %v4500_v41 = vpop.f32.mrb[143].mxu0 }
0x142e   :  { %v3677_v53 = vadd.f32 %v3673_v13, %v6446_v1 }
0x1430   :  { %v3678_v8 = vpack.c.bf16 %v3677_v53, %v3676_v22 }
0x1432   :  { %4506 = vmatmul.mubr.msk.bf16.vlgmr.msra.gmra.mrb[144].mxu1 %vm280_vm0, %v3678_v8 }
0x1505   :  { %v3739_v50 = vpop.f32.mrb[144].mxu1 }
0x1506   :  { %v3740_v19 = vadd.f32 %v3906_v40, %v3739_v50  ;;  %v4507_v25 = vpop.f32.mrb[145].mxu1 }
0x1507   :  { %v3742_v14 = vpop.f32.mrb[146].mxu1 }
0x1508   :  { %v3746_v9 = vadd.f32 %v3740_v19, %v5037_v7  ;;  %v3743_v27 = vadd.f32 %v3906_v40, %v3742_v14  ;;  %v4508_v12 = vpop.f32.mrb[147].mxu1 }
0x150a   :  { %3749 = vst.msk [vmem:[%s6593_s19] sm:$0xff] %vm3748_vm6, %v3746_v9  ;;  %v3747_v35 = vadd.f32 %v3743_v27, %v5044_v11 }
0x150c   :  { %3750 = vst.msk [vmem:[%s6593_s19 + $0x8] sm:$0xff] %vm3748_vm6, %v3747_v35 }

</bundles_post_ra>
